<compile_context>
chip_gen: v5e
topology: v5e:2x2
jax: 0.10.0
libtpu: 0.0.40
codegen_flags: <defaults>
</compile_context>

<pallas_src>
import functools

import jax
import jax.numpy as jnp
from jax import lax
from jax.experimental import pallas as pl
from jax.experimental.pallas import tpu as pltpu


def _round_up(x, m):
    return ((x + m - 1) // m) * m


# ----------------------------------------------------------------------------
# Grouped LSTM kernel.
#
# grid = (G, T // Tc).  Each grid step handles one group's chunk of Tc
# timesteps.  The x chunk arrives flattened as (Tc*Bp, HinP); the hoisted
# input projection fills gx_sc = x @ W_ih + b once per chunk, then the
# recurrence only does h @ W_hh per timestep.  (h, c) live in VMEM scratch
# across the time axis and are reset at tb == 0.
# Gate order in the packed weights is (i, f, o, g).
# ----------------------------------------------------------------------------
def _glstm_lstm_kernel(x_ref, wih_ref, whh_ref, b_ref, o_ref,
                       h_sc, c_sc, gx_sc, *, bp, unroll):
    tb = pl.program_id(1)

    @pl.when(tb == 0)
    def _():
        h_sc[...] = jnp.zeros_like(h_sc)
        c_sc[...] = jnp.zeros_like(c_sc)

    Hp = h_sc.shape[-1]
    n_steps = x_ref.shape[0] // bp
    cdt = wih_ref.dtype  # matmul compute dtype (bf16 by default, f32 optional)

    # --- hoisted input projection: one (Tc*Bp, HinP) x (HinP, 4*Hp) matmul ---
    # Bias folded in here (once per chunk, not per timestep).
    gx_sc[...] = jnp.dot(x_ref[...].astype(cdt), wih_ref[...],
                         preferred_element_type=jnp.float32) + b_ref[...]

    def step(t, carry):
        h, c = carry
        r = pl.multiple_of(t * bp, 8)  # sublane-aligned row offset
        gates = gx_sc[pl.ds(r, bp), :] + jnp.dot(
            h.astype(cdt), whh_ref[...], preferred_element_type=jnp.float32)
        # gate order (i, f, o, g): one wide sigmoid (tanh form) + one tanh.
        sig = jnp.tanh(0.5 * gates[:, :3 * Hp]) * 0.5 + 0.5
        i_g = sig[:, 0 * Hp:1 * Hp]
        f_g = sig[:, 1 * Hp:2 * Hp]
        o_g = sig[:, 2 * Hp:3 * Hp]
        g_g = jnp.tanh(gates[:, 3 * Hp:])
        c_new = f_g * c + i_g * g_g
        h_new = o_g * jnp.tanh(c_new)
        o_ref[pl.ds(r, bp), :] = h_new.astype(o_ref.dtype)  # lane-dense store
        return h_new, c_new

    h_last, c_last = lax.fori_loop(0, n_steps, step,
                                   (h_sc[...], c_sc[...]), unroll=unroll)
    h_sc[...] = h_last
    c_sc[...] = c_last


def grouped_lstm_pallas(xg, w_ih, w_hh, b, *, time_chunk, unroll=8):
    """All-groups single-layer LSTM.

    xg:    (Tp, Bp, G*HinP)  time-major, per-group lane-padded inputs (f32)
    w_ih:  (G, HinP, 4*Hp)   packed input weights   (gate order i,f,o,g)
    w_hh:  (G, Hp,  4*Hp)    packed recurrent weights
    b:     (G, 1,  4*Hp)     b_ih + b_hh (f32)
    returns (Tp, Bp, G*Hp)   per-group outputs, group-concatenated layout
    """
    Tp, Bp, _ = xg.shape
    G, HinP, H4 = w_ih.shape
    Hp = H4 // 4
    Tc = time_chunk
    assert Tp % Tc == 0 and Bp % 8 == 0

    x2 = xg.reshape(Tp * Bp, G * HinP)  # free view; group slice via BlockSpec

    # Explicit VMEM budget: double-buffered blocks + scratch (+30% margin).
    wbytes = jnp.dtype(w_ih.dtype).itemsize
    est = 2 * (Tc * Bp * (HinP + Hp) * 4            # x in + out blocks (f32)
               + (HinP + Hp) * H4 * wbytes + H4 * 4)  # weights + bias
    est += (2 * Bp * Hp + Tc * Bp * H4) * 4           # h/c/gx scratch
    vmem_limit = int(max(32 * 2 ** 20, min(128 * 2 ** 20, 1.3 * est + (1 << 20))))

    kernel = functools.partial(_glstm_lstm_kernel, bp=Bp,
                               unroll=int(min(unroll, Tc)))

    out = pl.pallas_call(
        kernel,
        out_shape=jax.ShapeDtypeStruct((Tp * Bp, G * Hp), xg.dtype),
        grid_spec=pltpu.PrefetchScalarGridSpec(
            num_scalar_prefetch=0,
            grid=(G, Tp // Tc),
            in_specs=[
                pl.BlockSpec((Tc * Bp, HinP), lambda g, tb: (tb, g)),
                pl.BlockSpec((None, HinP, H4), lambda g, tb: (g, 0, 0)),
                pl.BlockSpec((None, Hp, H4), lambda g, tb: (g, 0, 0)),
                pl.BlockSpec((None, 1, H4), lambda g, tb: (g, 0, 0)),
            ],
            out_specs=pl.BlockSpec((Tc * Bp, Hp), lambda g, tb: (tb, g)),
            scratch_shapes=[
                pltpu.VMEM((Bp, Hp), jnp.float32),          # h state
                pltpu.VMEM((Bp, Hp), jnp.float32),          # c state
                pltpu.VMEM((Tc * Bp, H4), jnp.float32),     # hoisted x-gates
            ],
        ),
        compiler_params=pltpu.CompilerParams(
            # groups are independent -> shard across cores (v7x megacore);
            # time axis carries the recurrence -> must stay sequential.
            dimension_semantics=("parallel", "arbitrary"),
            vmem_limit_bytes=vmem_limit),
    )(x2, w_ih, w_hh, b)

    return out.reshape(Tp, Bp, G * Hp)


# ----------------------------------------------------------------------------
# Row-tiled LayerNorm kernel over the last dim (HBM-bound, 512-row tiles).
# ----------------------------------------------------------------------------
def _layernorm_kernel(x_ref, g_ref, b_ref, o_ref):
    x = x_ref[...].astype(jnp.float32)
    mean = jnp.mean(x, axis=-1, keepdims=True)
    var = jnp.mean(jnp.square(x - mean), axis=-1, keepdims=True)
    xn = (x - mean) * lax.rsqrt(var + 1e-5)
    o_ref[...] = (xn * g_ref[...] + b_ref[...]).astype(o_ref.dtype)


def layernorm_pallas(x, gamma, beta, row_tile=512):
    orig_shape = x.shape
    D = orig_shape[-1]
    x2 = x.reshape(-1, D)
    N = x2.shape[0]

    Rt = min(row_tile, _round_up(N, 8))
    Np = _round_up(N, Rt)
    if Np != N:
        x2 = jnp.pad(x2, ((0, Np - N), (0, 0)))

    out = pl.pallas_call(
        _layernorm_kernel,
        out_shape=jax.ShapeDtypeStruct((Np, D), x.dtype),
        grid=(Np // Rt,),
        in_specs=[
            pl.BlockSpec((Rt, D), lambda i: (i, 0)),
            pl.BlockSpec((1, D), lambda i: (0, 0)),
            pl.BlockSpec((1, D), lambda i: (0, 0)),
        ],
        out_specs=pl.BlockSpec((Rt, D), lambda i: (i, 0)),
        compiler_params=pltpu.CompilerParams(
            dimension_semantics=("parallel",)),
    )(x2, gamma.reshape(1, D), beta.reshape(1, D))

    if Np != N:
        out = out[:N]
    return out.reshape(orig_shape)


# ----------------------------------------------------------------------------
# GLSTM forward: all heavy ops in Pallas, minimal XLA glue (one NCHW->time-major
# transpose, the module-inherent stage-1 interleave, one transpose back).
# ----------------------------------------------------------------------------
def _group_pad(a, Tp, Bp, G, Ht, HtP):
    """(T0, B0, G*Ht) -> (Tp, Bp, G*HtP); no-op when already aligned."""
    T0, B0, _ = a.shape
    if T0 == Tp and B0 == Bp and Ht == HtP:
        return a
    a = a.reshape(T0, B0, G, Ht)
    a = jnp.pad(a, ((0, Tp - T0), (0, Bp - B0), (0, 0), (0, HtP - Ht)))
    return a.reshape(Tp, Bp, G * HtP)


def glstm_forward(x, packed, groups, *, time_chunk=64, unroll=8):
    B, C, T, F = x.shape
    G = groups
    hidden = C * F
    Ht = hidden // G
    HtP = packed["w_hh1"].shape[1]  # per-group lane-padded width

    Bp = _round_up(B, 8)
    Tc = min(time_chunk, T)
    Tp = _round_up(T, Tc)

    # NCHW -> time-major features (T, B, hidden); same feature order as
    # x.transpose(1,2).view(B, T, -1) in PyTorch.
    feats = jnp.transpose(x, (2, 0, 1, 3)).reshape(T, B, hidden)

    # ---- stage 1: grouped LSTMs (group slice folded into BlockSpec) ----
    xg = _group_pad(feats, Tp, Bp, G, Ht, HtP)
    h1 = grouped_lstm_pallas(xg, packed["w_ih1"], packed["w_hh1"], packed["b1"],
                             time_chunk=Tc, unroll=unroll)
    # stack(dim=-1) + flatten  ->  feature index = h*G + g (inherent interleave)
    h1 = h1.reshape(Tp, Bp, G, HtP)[..., :Ht]
    out = jnp.transpose(h1, (0, 1, 3, 2)).reshape(Tp, Bp, hidden)

    out = layernorm_pallas(out, packed["ln1_g"], packed["ln1_b"])

    # ---- stage 2: grouped LSTMs; cat(dim=-1) is the kernel's native layout --
    xg = _group_pad(out, Tp, Bp, G, Ht, HtP)
    h2 = grouped_lstm_pallas(xg, packed["w_ih2"], packed["w_hh2"], packed["b2"],
                             time_chunk=Tc, unroll=unroll)
    if HtP == Ht:
        out = h2
    else:
        out = h2.reshape(Tp, Bp, G, HtP)[..., :Ht].reshape(Tp, Bp, hidden)

    out = layernorm_pallas(out, packed["ln2_g"], packed["ln2_b"])

    # back to (B, C, T, F)
    out = out[:T, :B].reshape(T, B, C, F)
    return jnp.transpose(out, (1, 2, 0, 3))


# ----------------------------------------------------------------------------
# Parameters: raw PyTorch-layout weights + packing into padded, fused tiles.
# ----------------------------------------------------------------------------
def init_params(key, hidden, groups):
    """Raw parameters in nn.LSTM / nn.LayerNorm layout (gate order i,f,g,o)."""
    Ht = hidden // groups
    scale = 1.0 / jnp.sqrt(jnp.float32(Ht))

    def make_raw(k):
        k1, k2, k3, k4 = jax.random.split(k, 4)
        w_ih = jax.random.uniform(k1, (4 * Ht, Ht), jnp.float32, -scale, scale)
        w_hh = jax.random.uniform(k2, (4 * Ht, Ht), jnp.float32, -scale, scale)
        b_ih = jax.random.uniform(k3, (4 * Ht,), jnp.float32, -scale, scale)
        b_hh = jax.random.uniform(k4, (4 * Ht,), jnp.float32, -scale, scale)
        return (w_ih, w_hh, b_ih, b_hh)

    keys = jax.random.split(key, 2 * groups)
    return {
        "lstm1": [make_raw(keys[g]) for g in range(groups)],
        "lstm2": [make_raw(keys[groups + g]) for g in range(groups)],
        "ln1_g": jnp.ones((hidden,), jnp.float32),
        "ln1_b": jnp.zeros((hidden,), jnp.float32),
        "ln2_g": jnp.ones((hidden,), jnp.float32),
        "ln2_b": jnp.zeros((hidden,), jnp.float32),
    }


def pack_params(raw, hidden, groups, compute_dtype=jnp.bfloat16):
    """Pack per-group weights into lane-padded (HinP, 4*HtP) tiles.

    Gate order is reordered from PyTorch's (i, f, g, o) to (i, f, o, g) so the
    kernel issues one wide sigmoid over the first 3*Hp gate columns and one
    tanh over the last Hp.  Padded gate columns carry zero weights/bias, which
    keeps padded h/c lanes exactly zero through the recurrence.
    """
    G = groups
    Ht = hidden // G
    HtP = _round_up(Ht, 128)
    order = [0, 1, 3, 2]  # (i, f, g, o) -> (i, f, o, g)

    def pack_w(w):  # (4*Ht, Hin) -> (HinP, 4*HtP)
        Hin = w.shape[1]
        HinP = _round_up(Hin, 128)
        w = jnp.transpose(w.reshape(4, Ht, Hin), (2, 0, 1))  # (Hin, gate, j)
        w = w[:, order, :]
        w = jnp.pad(w, ((0, HinP - Hin), (0, 0), (0, HtP - Ht)))
        return w.reshape(HinP, 4 * HtP).astype(compute_dtype)

    def pack_b(b_ih, b_hh):
        bb = (b_ih + b_hh).reshape(4, Ht)[order, :]
        bb = jnp.pad(bb, ((0, 0), (0, HtP - Ht)))
        return bb.reshape(1, 4 * HtP).astype(jnp.float32)

    packed = {}
    for name, tag in (("lstm1", "1"), ("lstm2", "2")):
        packed["w_ih" + tag] = jnp.stack([pack_w(p[0]) for p in raw[name]])
        packed["w_hh" + tag] = jnp.stack([pack_w(p[1]) for p in raw[name]])
        packed["b" + tag] = jnp.stack([pack_b(p[2], p[3]) for p in raw[name]])
    for k in ("ln1_g", "ln1_b", "ln2_g", "ln2_b"):
        packed[k] = raw[k]
    return packed


# ----------------------------------------------------------------------------
# Pure-JAX reference (mirrors the PyTorch module) for numerical checks.
# ----------------------------------------------------------------------------
def _lstm_ref(x_btd, w_ih, w_hh, b_ih, b_hh):
    B, T, _ = x_btd.shape
    H = w_hh.shape[1]

    def step(carry, x_t):
        h, c = carry
        gates = x_t @ w_ih.T + h @ w_hh.T + b_ih + b_hh
        i, f, g, o = jnp.split(gates, 4, axis=-1)
        i, f, o = jax.nn.sigmoid(i), jax.nn.sigmoid(f), jax.nn.sigmoid(o)
        g = jnp.tanh(g)
        c = f * c + i * g
        h = o * jnp.tanh(c)
        return (h, c), h

    init = (jnp.zeros((B, H), jnp.float32), jnp.zeros((B, H), jnp.float32))
    _, hs = lax.scan(step, init, jnp.transpose(x_btd, (1, 0, 2)))
    return jnp.transpose(hs, (1, 0, 2))


def _layernorm_ref(x, g, b):
    m = jnp.mean(x, -1, keepdims=True)
    v = jnp.mean(jnp.square(x - m), -1, keepdims=True)
    return (x - m) * lax.rsqrt(v + 1e-5) * g + b


def glstm_forward_ref(x, raw, groups):
    B, C, T, F = x.shape
    hidden = C * F
    Ht = hidden // groups
    out = jnp.transpose(x, (0, 2, 1, 3)).reshape(B, T, hidden)
    chunks = [out[..., g * Ht:(g + 1) * Ht] for g in range(groups)]
    l1 = [_lstm_ref(chunks[g], *raw["lstm1"][g]) for g in range(groups)]
    out = jnp.stack(l1, axis=-1).reshape(B, T, hidden)
    out = _layernorm_ref(out, raw["ln1_g"], raw["ln1_b"])
    chunks = [out[..., g * Ht:(g + 1) * Ht] for g in range(groups)]
    l2 = [_lstm_ref(chunks[g], *raw["lstm2"][g]) for g in range(groups)]
    out = jnp.concatenate(l2, axis=-1)
    out = _layernorm_ref(out, raw["ln2_g"], raw["ln2_b"])
    return out.reshape(B, T, C, F).transpose(0, 2, 1, 3)


if __name__ == "__main__":
    key = jax.random.PRNGKey(0)
    # small shapes: (B, C, T, F); hidden_size = C*F = 64, groups = 2
    B, C, T, F = 2, 4, 8, 16
    groups = 2
    hidden = C * F

    kx, kp = jax.random.split(key)
    x = jax.random.normal(kx, (B, C, T, F), jnp.float32)
    raw = init_params(kp, hidden, groups)
    out_ref = glstm_forward_ref(x, raw, groups)

    # --- f32 compute path: tight correctness check against the reference ---
    packed_f32 = pack_params(raw, hidden, groups, compute_dtype=jnp.float32)
    fwd_f32 = jax.jit(lambda xx: glstm_forward(xx, packed_f32, groups))
    out_f32 = jax.block_until_ready(fwd_f32(x))
    assert out_f32.shape == (B, C, T, F), out_f32.shape
    err_f32 = float(jnp.max(jnp.abs(out_f32 - out_ref)))
    assert err_f32 < 2e-3, err_f32

    # --- bf16 matmul path (production default): finite + loose sanity check.
    # bf16 operand rounding is amplified by the LayerNorms at these toy
    # magnitudes, so only a coarse tolerance is meaningful here.
    packed_bf16 = pack_params(raw, hidden, groups)  # default bfloat16
    fwd_bf16 = jax.jit(lambda xx: glstm_forward(xx, packed_bf16, groups))
    out_bf16 = jax.block_until_ready(fwd_bf16(x))
    assert out_bf16.shape == (B, C, T, F), out_bf16.shape
    assert bool(jnp.all(jnp.isfinite(out_bf16)))
    err_bf16 = float(jnp.max(jnp.abs(out_bf16 - out_ref)))
    assert err_bf16 < 0.5, err_bf16

    print("KERNEL_OK")
</pallas_src>

<mosaic_0001>
module attributes {stable_mosaic.version = 11 : i64} {
  func.func @_glstm_lstm_kernel(%arg0: i32, %arg1: i32, %arg2: memref<64x128xf32, #tpu.memory_space<vmem>>, %arg3: memref<1x128x512xf32, #tpu.memory_space<vmem>>, %arg4: memref<1x128x512xf32, #tpu.memory_space<vmem>>, %arg5: memref<1x1x512xf32, #tpu.memory_space<vmem>>, %arg6: memref<64x128xf32, #tpu.memory_space<vmem>>, %arg7: memref<8x128xf32, #tpu.memory_space<vmem>>, %arg8: memref<8x128xf32, #tpu.memory_space<vmem>>, %arg9: memref<64x512xf32, #tpu.memory_space<vmem>>) attributes {dimension_semantics = [#tpu.dimension_semantics<parallel>, #tpu.dimension_semantics<arbitrary>], iteration_bounds = array<i64: 2, 1>, scalar_prefetch = 0 : i64, scratch_operands = 3 : i64, tpu.core_type = #tpu.core_type<tc>, window_params = [{transform_indices = @transform_0, window_bounds = array<i64: 64, 128>}, {transform_indices = @transform_1, window_bounds = array<i64: 1, 128, 512>}, {transform_indices = @transform_2, window_bounds = array<i64: 1, 128, 512>}, {transform_indices = @transform_3, window_bounds = array<i64: 1, 1, 512>}, {transform_indices = @transform_4, window_bounds = array<i64: 64, 128>}]} {
    %c0_i32 = arith.constant 0 : i32
    %0 = arith.cmpi eq, %arg1, %c0_i32 : i32
    %1 = arith.extui %0 : i1 to i32
    %c0_i32_0 = arith.constant 0 : i32
    %2 = arith.cmpi ne, %1, %c0_i32_0 : i32
    scf.if %2 {
      %cst_99 = arith.constant 0.000000e+00 : f32
      %240 = vector.broadcast %cst_99 : f32 to vector<8x128xf32>
      %c0_100 = arith.constant 0 : index
      %c0_101 = arith.constant 0 : index
      %241 = vector.load %arg7[%c0_100, %c0_101] : memref<8x128xf32, #tpu.memory_space<vmem>>, vector<8x128xf32>
      tpu.vector_store %arg7[%c0_100, %c0_101], %240 {strides = array<i32>} : memref<8x128xf32, #tpu.memory_space<vmem>>, vector<8x128xf32>,
      %cst_102 = arith.constant 0.000000e+00 : f32
      %242 = vector.broadcast %cst_102 : f32 to vector<8x128xf32>
      %c0_103 = arith.constant 0 : index
      %c0_104 = arith.constant 0 : index
      %243 = vector.load %arg8[%c0_103, %c0_104] : memref<8x128xf32, #tpu.memory_space<vmem>>, vector<8x128xf32>
      tpu.vector_store %arg8[%c0_103, %c0_104], %242 {strides = array<i32>} : memref<8x128xf32, #tpu.memory_space<vmem>>, vector<8x128xf32>,
    } else {
    }
    %c0 = arith.constant 0 : index
    %c0_1 = arith.constant 0 : index
    %3 = vector.load %arg2[%c0, %c0_1] : memref<64x128xf32, #tpu.memory_space<vmem>>, vector<64x128xf32>
    %c0_2 = arith.constant 0 : index
    %c0_3 = arith.constant 0 : index
    %c0_4 = arith.constant 0 : index
    %4 = vector.load %arg3[%c0_2, %c0_3, %c0_4] : memref<1x128x512xf32, #tpu.memory_space<vmem>>, vector<1x128x512xf32>
    %5 = vector.shape_cast %4 : vector<1x128x512xf32> to vector<128x512xf32>
    %cst = arith.constant dense<0.000000e+00> : vector<64x512xf32>
    %6 = tpu.matmul %3, %5, %cst {dimension_numbers = #tpu.dot_dimension_numbers<[1], [0], [0], [1], [0, 0, 1, 1], [], []>} : vector<64x128xf32>, vector<128x512xf32>, vector<64x512xf32> -> vector<64x512xf32>
    %c0_5 = arith.constant 0 : index
    %c0_6 = arith.constant 0 : index
    %c0_7 = arith.constant 0 : index
    %7 = vector.load %arg5[%c0_5, %c0_6, %c0_7] : memref<1x1x512xf32, #tpu.memory_space<vmem>>, vector<1x1x512xf32>
    %8 = vector.shape_cast %7 : vector<1x1x512xf32> to vector<1x512xf32>
    %9 = vector.broadcast %8 : vector<1x512xf32> to vector<64x512xf32>
    %10 = arith.addf %6, %9 : vector<64x512xf32>
    %c0_8 = arith.constant 0 : index
    %c0_9 = arith.constant 0 : index
    %11 = vector.load %arg9[%c0_8, %c0_9] : memref<64x512xf32, #tpu.memory_space<vmem>>, vector<64x512xf32>
    tpu.vector_store %arg9[%c0_8, %c0_9], %10 {strides = array<i32>} : memref<64x512xf32, #tpu.memory_space<vmem>>, vector<64x512xf32>,
    %c0_10 = arith.constant 0 : index
    %c0_11 = arith.constant 0 : index
    %12 = vector.load %arg7[%c0_10, %c0_11] : memref<8x128xf32, #tpu.memory_space<vmem>>, vector<8x128xf32>
    %c0_12 = arith.constant 0 : index
    %c0_13 = arith.constant 0 : index
    %13 = vector.load %arg8[%c0_12, %c0_13] : memref<8x128xf32, #tpu.memory_space<vmem>>, vector<8x128xf32>
    %c0_i32_14 = arith.constant 0 : i32
    %c8_i32 = arith.constant 8 : i32
    %14 = arith.muli %c0_i32_14, %c8_i32 : i32
    %15 = tpu.assume_multiple %14, 8 : i32
    %16 = arith.index_cast %15 : i32 to index
    %c0_15 = arith.constant 0 : index
    %17 = vector.load %arg9[%16, %c0_15] : memref<64x512xf32, #tpu.memory_space<vmem>>, vector<8x512xf32>
    %c0_16 = arith.constant 0 : index
    %c0_17 = arith.constant 0 : index
    %c0_18 = arith.constant 0 : index
    %18 = vector.load %arg4[%c0_16, %c0_17, %c0_18] : memref<1x128x512xf32, #tpu.memory_space<vmem>>, vector<1x128x512xf32>
    %19 = vector.shape_cast %18 : vector<1x128x512xf32> to vector<128x512xf32>
    %cst_19 = arith.constant dense<0.000000e+00> : vector<8x512xf32>
    %20 = tpu.matmul %12, %19, %cst_19 {dimension_numbers = #tpu.dot_dimension_numbers<[1], [0], [0], [1], [0, 0, 1, 1], [], []>} : vector<8x128xf32>, vector<128x512xf32>, vector<8x512xf32> -> vector<8x512xf32>
    %21 = arith.addf %17, %20 : vector<8x512xf32>
    %22 = vector.extract_strided_slice %21 {offsets = [0, 0], sizes = [8, 384], strides = [1, 1]} : vector<8x512xf32> to vector<8x384xf32>
    %cst_20 = arith.constant 5.000000e-01 : f32
    %23 = vector.broadcast %cst_20 : f32 to vector<8x384xf32>
    %24 = arith.mulf %23, %22 : vector<8x384xf32>
    %25 = math.tanh %24 : vector<8x384xf32>
    %cst_21 = arith.constant 5.000000e-01 : f32
    %26 = vector.broadcast %cst_21 : f32 to vector<8x384xf32>
    %27 = arith.mulf %25, %26 : vector<8x384xf32>
    %cst_22 = arith.constant 5.000000e-01 : f32
    %28 = vector.broadcast %cst_22 : f32 to vector<8x384xf32>
    %29 = arith.addf %27, %28 : vector<8x384xf32>
    %30 = vector.extract_strided_slice %29 {offsets = [0, 0], sizes = [8, 128], strides = [1, 1]} : vector<8x384xf32> to vector<8x128xf32>
    %31 = vector.extract_strided_slice %29 {offsets = [0, 128], sizes = [8, 128], strides = [1, 1]} : vector<8x384xf32> to vector<8x128xf32>
    %32 = vector.extract_strided_slice %29 {offsets = [0, 256], sizes = [8, 128], strides = [1, 1]} : vector<8x384xf32> to vector<8x128xf32>
    %33 = vector.extract_strided_slice %21 {offsets = [0, 384], sizes = [8, 128], strides = [1, 1]} : vector<8x512xf32> to vector<8x128xf32>
    %34 = math.tanh %33 : vector<8x128xf32>
    %35 = arith.mulf %31, %13 : vector<8x128xf32>
    %36 = arith.mulf %30, %34 : vector<8x128xf32>
    %37 = arith.addf %35, %36 : vector<8x128xf32>
    %38 = math.tanh %37 : vector<8x128xf32>
    %39 = arith.mulf %32, %38 : vector<8x128xf32>
    %40 = arith.index_cast %15 : i32 to index
    %c0_23 = arith.constant 0 : index
    %41 = vector.load %arg6[%40, %c0_23] : memref<64x128xf32, #tpu.memory_space<vmem>>, vector<8x128xf32>
    tpu.vector_store %arg6[%40, %c0_23], %39 {strides = array<i32>} : memref<64x128xf32, #tpu.memory_space<vmem>>, vector<8x128xf32>,
    %c1_i32 = arith.constant 1 : i32
    %c8_i32_24 = arith.constant 8 : i32
    %42 = arith.muli %c1_i32, %c8_i32_24 : i32
    %43 = tpu.assume_multiple %42, 8 : i32
    %44 = arith.index_cast %43 : i32 to index
    %c0_25 = arith.constant 0 : index
    %45 = vector.load %arg9[%44, %c0_25] : memref<64x512xf32, #tpu.memory_space<vmem>>, vector<8x512xf32>
    %c0_26 = arith.constant 0 : index
    %c0_27 = arith.constant 0 : index
    %c0_28 = arith.constant 0 : index
    %46 = vector.load %arg4[%c0_26, %c0_27, %c0_28] : memref<1x128x512xf32, #tpu.memory_space<vmem>>, vector<1x128x512xf32>
    %47 = vector.shape_cast %46 : vector<1x128x512xf32> to vector<128x512xf32>
    %cst_29 = arith.constant dense<0.000000e+00> : vector<8x512xf32>
    %48 = tpu.matmul %39, %47, %cst_29 {dimension_numbers = #tpu.dot_dimension_numbers<[1], [0], [0], [1], [0, 0, 1, 1], [], []>} : vector<8x128xf32>, vector<128x512xf32>, vector<8x512xf32> -> vector<8x512xf32>
    %49 = arith.addf %45, %48 : vector<8x512xf32>
    %50 = vector.extract_strided_slice %49 {offsets = [0, 0], sizes = [8, 384], strides = [1, 1]} : vector<8x512xf32> to vector<8x384xf32>
    %cst_30 = arith.constant 5.000000e-01 : f32
    %51 = vector.broadcast %cst_30 : f32 to vector<8x384xf32>
    %52 = arith.mulf %51, %50 : vector<8x384xf32>
    %53 = math.tanh %52 : vector<8x384xf32>
    %cst_31 = arith.constant 5.000000e-01 : f32
    %54 = vector.broadcast %cst_31 : f32 to vector<8x384xf32>
    %55 = arith.mulf %53, %54 : vector<8x384xf32>
    %cst_32 = arith.constant 5.000000e-01 : f32
    %56 = vector.broadcast %cst_32 : f32 to vector<8x384xf32>
    %57 = arith.addf %55, %56 : vector<8x384xf32>
    %58 = vector.extract_strided_slice %57 {offsets = [0, 0], sizes = [8, 128], strides = [1, 1]} : vector<8x384xf32> to vector<8x128xf32>
    %59 = vector.extract_strided_slice %57 {offsets = [0, 128], sizes = [8, 128], strides = [1, 1]} : vector<8x384xf32> to vector<8x128xf32>
    %60 = vector.extract_strided_slice %57 {offsets = [0, 256], sizes = [8, 128], strides = [1, 1]} : vector<8x384xf32> to vector<8x128xf32>
    %61 = vector.extract_strided_slice %49 {offsets = [0, 384], sizes = [8, 128], strides = [1, 1]} : vector<8x512xf32> to vector<8x128xf32>
    %62 = math.tanh %61 : vector<8x128xf32>
    %63 = arith.mulf %59, %37 : vector<8x128xf32>
    %64 = arith.mulf %58, %62 : vector<8x128xf32>
    %65 = arith.addf %63, %64 : vector<8x128xf32>
    %66 = math.tanh %65 : vector<8x128xf32>
    %67 = arith.mulf %60, %66 : vector<8x128xf32>
    %68 = arith.index_cast %43 : i32 to index
    %c0_33 = arith.constant 0 : index
    %69 = vector.load %arg6[%68, %c0_33] : memref<64x128xf32, #tpu.memory_space<vmem>>, vector<8x128xf32>
    tpu.vector_store %arg6[%68, %c0_33], %67 {strides = array<i32>} : memref<64x128xf32, #tpu.memory_space<vmem>>, vector<8x128xf32>,
    %c2_i32 = arith.constant 2 : i32
    %c8_i32_34 = arith.constant 8 : i32
    %70 = arith.muli %c2_i32, %c8_i32_34 : i32
    %71 = tpu.assume_multiple %70, 8 : i32
    %72 = arith.index_cast %71 : i32 to index
    %c0_35 = arith.constant 0 : index
    %73 = vector.load %arg9[%72, %c0_35] : memref<64x512xf32, #tpu.memory_space<vmem>>, vector<8x512xf32>
    %c0_36 = arith.constant 0 : index
    %c0_37 = arith.constant 0 : index
    %c0_38 = arith.constant 0 : index
    %74 = vector.load %arg4[%c0_36, %c0_37, %c0_38] : memref<1x128x512xf32, #tpu.memory_space<vmem>>, vector<1x128x512xf32>
    %75 = vector.shape_cast %74 : vector<1x128x512xf32> to vector<128x512xf32>
    %cst_39 = arith.constant dense<0.000000e+00> : vector<8x512xf32>
    %76 = tpu.matmul %67, %75, %cst_39 {dimension_numbers = #tpu.dot_dimension_numbers<[1], [0], [0], [1], [0, 0, 1, 1], [], []>} : vector<8x128xf32>, vector<128x512xf32>, vector<8x512xf32> -> vector<8x512xf32>
    %77 = arith.addf %73, %76 : vector<8x512xf32>
    %78 = vector.extract_strided_slice %77 {offsets = [0, 0], sizes = [8, 384], strides = [1, 1]} : vector<8x512xf32> to vector<8x384xf32>
    %cst_40 = arith.constant 5.000000e-01 : f32
    %79 = vector.broadcast %cst_40 : f32 to vector<8x384xf32>
    %80 = arith.mulf %79, %78 : vector<8x384xf32>
    %81 = math.tanh %80 : vector<8x384xf32>
    %cst_41 = arith.constant 5.000000e-01 : f32
    %82 = vector.broadcast %cst_41 : f32 to vector<8x384xf32>
    %83 = arith.mulf %81, %82 : vector<8x384xf32>
    %cst_42 = arith.constant 5.000000e-01 : f32
    %84 = vector.broadcast %cst_42 : f32 to vector<8x384xf32>
    %85 = arith.addf %83, %84 : vector<8x384xf32>
    %86 = vector.extract_strided_slice %85 {offsets = [0, 0], sizes = [8, 128], strides = [1, 1]} : vector<8x384xf32> to vector<8x128xf32>
    %87 = vector.extract_strided_slice %85 {offsets = [0, 128], sizes = [8, 128], strides = [1, 1]} : vector<8x384xf32> to vector<8x128xf32>
    %88 = vector.extract_strided_slice %85 {offsets = [0, 256], sizes = [8, 128], strides = [1, 1]} : vector<8x384xf32> to vector<8x128xf32>
    %89 = vector.extract_strided_slice %77 {offsets = [0, 384], sizes = [8, 128], strides = [1, 1]} : vector<8x512xf32> to vector<8x128xf32>
    %90 = math.tanh %89 : vector<8x128xf32>
    %91 = arith.mulf %87, %65 : vector<8x128xf32>
    %92 = arith.mulf %86, %90 : vector<8x128xf32>
    %93 = arith.addf %91, %92 : vector<8x128xf32>
    %94 = math.tanh %93 : vector<8x128xf32>
    %95 = arith.mulf %88, %94 : vector<8x128xf32>
    %96 = arith.index_cast %71 : i32 to index
    %c0_43 = arith.constant 0 : index
    %97 = vector.load %arg6[%96, %c0_43] : memref<64x128xf32, #tpu.memory_space<vmem>>, vector<8x128xf32>
    tpu.vector_store %arg6[%96, %c0_43], %95 {strides = array<i32>} : memref<64x128xf32, #tpu.memory_space<vmem>>, vector<8x128xf32>,
    %c3_i32 = arith.constant 3 : i32
    %c8_i32_44 = arith.constant 8 : i32
    %98 = arith.muli %c3_i32, %c8_i32_44 : i32
    %99 = tpu.assume_multiple %98, 8 : i32
    %100 = arith.index_cast %99 : i32 to index
    %c0_45 = arith.constant 0 : index
    %101 = vector.load %arg9[%100, %c0_45] : memref<64x512xf32, #tpu.memory_space<vmem>>, vector<8x512xf32>
    %c0_46 = arith.constant 0 : index
    %c0_47 = arith.constant 0 : index
    %c0_48 = arith.constant 0 : index
    %102 = vector.load %arg4[%c0_46, %c0_47, %c0_48] : memref<1x128x512xf32, #tpu.memory_space<vmem>>, vector<1x128x512xf32>
    %103 = vector.shape_cast %102 : vector<1x128x512xf32> to vector<128x512xf32>
    %cst_49 = arith.constant dense<0.000000e+00> : vector<8x512xf32>
    %104 = tpu.matmul %95, %103, %cst_49 {dimension_numbers = #tpu.dot_dimension_numbers<[1], [0], [0], [1], [0, 0, 1, 1], [], []>} : vector<8x128xf32>, vector<128x512xf32>, vector<8x512xf32> -> vector<8x512xf32>
    %105 = arith.addf %101, %104 : vector<8x512xf32>
    %106 = vector.extract_strided_slice %105 {offsets = [0, 0], sizes = [8, 384], strides = [1, 1]} : vector<8x512xf32> to vector<8x384xf32>
    %cst_50 = arith.constant 5.000000e-01 : f32
    %107 = vector.broadcast %cst_50 : f32 to vector<8x384xf32>
    %108 = arith.mulf %107, %106 : vector<8x384xf32>
    %109 = math.tanh %108 : vector<8x384xf32>
    %cst_51 = arith.constant 5.000000e-01 : f32
    %110 = vector.broadcast %cst_51 : f32 to vector<8x384xf32>
    %111 = arith.mulf %109, %110 : vector<8x384xf32>
    %cst_52 = arith.constant 5.000000e-01 : f32
    %112 = vector.broadcast %cst_52 : f32 to vector<8x384xf32>
    %113 = arith.addf %111, %112 : vector<8x384xf32>
    %114 = vector.extract_strided_slice %113 {offsets = [0, 0], sizes = [8, 128], strides = [1, 1]} : vector<8x384xf32> to vector<8x128xf32>
    %115 = vector.extract_strided_slice %113 {offsets = [0, 128], sizes = [8, 128], strides = [1, 1]} : vector<8x384xf32> to vector<8x128xf32>
    %116 = vector.extract_strided_slice %113 {offsets = [0, 256], sizes = [8, 128], strides = [1, 1]} : vector<8x384xf32> to vector<8x128xf32>
    %117 = vector.extract_strided_slice %105 {offsets = [0, 384], sizes = [8, 128], strides = [1, 1]} : vector<8x512xf32> to vector<8x128xf32>
    %118 = math.tanh %117 : vector<8x128xf32>
    %119 = arith.mulf %115, %93 : vector<8x128xf32>
    %120 = arith.mulf %114, %118 : vector<8x128xf32>
    %121 = arith.addf %119, %120 : vector<8x128xf32>
    %122 = math.tanh %121 : vector<8x128xf32>
    %123 = arith.mulf %116, %122 : vector<8x128xf32>
    %124 = arith.index_cast %99 : i32 to index
    %c0_53 = arith.constant 0 : index
    %125 = vector.load %arg6[%124, %c0_53] : memref<64x128xf32, #tpu.memory_space<vmem>>, vector<8x128xf32>
    tpu.vector_store %arg6[%124, %c0_53], %123 {strides = array<i32>} : memref<64x128xf32, #tpu.memory_space<vmem>>, vector<8x128xf32>,
    %c4_i32 = arith.constant 4 : i32
    %c8_i32_54 = arith.constant 8 : i32
    %126 = arith.muli %c4_i32, %c8_i32_54 : i32
    %127 = tpu.assume_multiple %126, 8 : i32
    %128 = arith.index_cast %127 : i32 to index
    %c0_55 = arith.constant 0 : index
    %129 = vector.load %arg9[%128, %c0_55] : memref<64x512xf32, #tpu.memory_space<vmem>>, vector<8x512xf32>
    %c0_56 = arith.constant 0 : index
    %c0_57 = arith.constant 0 : index
    %c0_58 = arith.constant 0 : index
    %130 = vector.load %arg4[%c0_56, %c0_57, %c0_58] : memref<1x128x512xf32, #tpu.memory_space<vmem>>, vector<1x128x512xf32>
    %131 = vector.shape_cast %130 : vector<1x128x512xf32> to vector<128x512xf32>
    %cst_59 = arith.constant dense<0.000000e+00> : vector<8x512xf32>
    %132 = tpu.matmul %123, %131, %cst_59 {dimension_numbers = #tpu.dot_dimension_numbers<[1], [0], [0], [1], [0, 0, 1, 1], [], []>} : vector<8x128xf32>, vector<128x512xf32>, vector<8x512xf32> -> vector<8x512xf32>
    %133 = arith.addf %129, %132 : vector<8x512xf32>
    %134 = vector.extract_strided_slice %133 {offsets = [0, 0], sizes = [8, 384], strides = [1, 1]} : vector<8x512xf32> to vector<8x384xf32>
    %cst_60 = arith.constant 5.000000e-01 : f32
    %135 = vector.broadcast %cst_60 : f32 to vector<8x384xf32>
    %136 = arith.mulf %135, %134 : vector<8x384xf32>
    %137 = math.tanh %136 : vector<8x384xf32>
    %cst_61 = arith.constant 5.000000e-01 : f32
    %138 = vector.broadcast %cst_61 : f32 to vector<8x384xf32>
    %139 = arith.mulf %137, %138 : vector<8x384xf32>
    %cst_62 = arith.constant 5.000000e-01 : f32
    %140 = vector.broadcast %cst_62 : f32 to vector<8x384xf32>
    %141 = arith.addf %139, %140 : vector<8x384xf32>
    %142 = vector.extract_strided_slice %141 {offsets = [0, 0], sizes = [8, 128], strides = [1, 1]} : vector<8x384xf32> to vector<8x128xf32>
    %143 = vector.extract_strided_slice %141 {offsets = [0, 128], sizes = [8, 128], strides = [1, 1]} : vector<8x384xf32> to vector<8x128xf32>
    %144 = vector.extract_strided_slice %141 {offsets = [0, 256], sizes = [8, 128], strides = [1, 1]} : vector<8x384xf32> to vector<8x128xf32>
    %145 = vector.extract_strided_slice %133 {offsets = [0, 384], sizes = [8, 128], strides = [1, 1]} : vector<8x512xf32> to vector<8x128xf32>
    %146 = math.tanh %145 : vector<8x128xf32>
    %147 = arith.mulf %143, %121 : vector<8x128xf32>
    %148 = arith.mulf %142, %146 : vector<8x128xf32>
    %149 = arith.addf %147, %148 : vector<8x128xf32>
    %150 = math.tanh %149 : vector<8x128xf32>
    %151 = arith.mulf %144, %150 : vector<8x128xf32>
    %152 = arith.index_cast %127 : i32 to index
    %c0_63 = arith.constant 0 : index
    %153 = vector.load %arg6[%152, %c0_63] : memref<64x128xf32, #tpu.memory_space<vmem>>, vector<8x128xf32>
    tpu.vector_store %arg6[%152, %c0_63], %151 {strides = array<i32>} : memref<64x128xf32, #tpu.memory_space<vmem>>, vector<8x128xf32>,
    %c5_i32 = arith.constant 5 : i32
    %c8_i32_64 = arith.constant 8 : i32
    %154 = arith.muli %c5_i32, %c8_i32_64 : i32
    %155 = tpu.assume_multiple %154, 8 : i32
    %156 = arith.index_cast %155 : i32 to index
    %c0_65 = arith.constant 0 : index
    %157 = vector.load %arg9[%156, %c0_65] : memref<64x512xf32, #tpu.memory_space<vmem>>, vector<8x512xf32>
    %c0_66 = arith.constant 0 : index
    %c0_67 = arith.constant 0 : index
    %c0_68 = arith.constant 0 : index
    %158 = vector.load %arg4[%c0_66, %c0_67, %c0_68] : memref<1x128x512xf32, #tpu.memory_space<vmem>>, vector<1x128x512xf32>
    %159 = vector.shape_cast %158 : vector<1x128x512xf32> to vector<128x512xf32>
    %cst_69 = arith.constant dense<0.000000e+00> : vector<8x512xf32>
    %160 = tpu.matmul %151, %159, %cst_69 {dimension_numbers = #tpu.dot_dimension_numbers<[1], [0], [0], [1], [0, 0, 1, 1], [], []>} : vector<8x128xf32>, vector<128x512xf32>, vector<8x512xf32> -> vector<8x512xf32>
    %161 = arith.addf %157, %160 : vector<8x512xf32>
    %162 = vector.extract_strided_slice %161 {offsets = [0, 0], sizes = [8, 384], strides = [1, 1]} : vector<8x512xf32> to vector<8x384xf32>
    %cst_70 = arith.constant 5.000000e-01 : f32
    %163 = vector.broadcast %cst_70 : f32 to vector<8x384xf32>
    %164 = arith.mulf %163, %162 : vector<8x384xf32>
    %165 = math.tanh %164 : vector<8x384xf32>
    %cst_71 = arith.constant 5.000000e-01 : f32
    %166 = vector.broadcast %cst_71 : f32 to vector<8x384xf32>
    %167 = arith.mulf %165, %166 : vector<8x384xf32>
    %cst_72 = arith.constant 5.000000e-01 : f32
    %168 = vector.broadcast %cst_72 : f32 to vector<8x384xf32>
    %169 = arith.addf %167, %168 : vector<8x384xf32>
    %170 = vector.extract_strided_slice %169 {offsets = [0, 0], sizes = [8, 128], strides = [1, 1]} : vector<8x384xf32> to vector<8x128xf32>
    %171 = vector.extract_strided_slice %169 {offsets = [0, 128], sizes = [8, 128], strides = [1, 1]} : vector<8x384xf32> to vector<8x128xf32>
    %172 = vector.extract_strided_slice %169 {offsets = [0, 256], sizes = [8, 128], strides = [1, 1]} : vector<8x384xf32> to vector<8x128xf32>
    %173 = vector.extract_strided_slice %161 {offsets = [0, 384], sizes = [8, 128], strides = [1, 1]} : vector<8x512xf32> to vector<8x128xf32>
    %174 = math.tanh %173 : vector<8x128xf32>
    %175 = arith.mulf %171, %149 : vector<8x128xf32>
    %176 = arith.mulf %170, %174 : vector<8x128xf32>
    %177 = arith.addf %175, %176 : vector<8x128xf32>
    %178 = math.tanh %177 : vector<8x128xf32>
    %179 = arith.mulf %172, %178 : vector<8x128xf32>
    %180 = arith.index_cast %155 : i32 to index
    %c0_73 = arith.constant 0 : index
    %181 = vector.load %arg6[%180, %c0_73] : memref<64x128xf32, #tpu.memory_space<vmem>>, vector<8x128xf32>
    tpu.vector_store %arg6[%180, %c0_73], %179 {strides = array<i32>} : memref<64x128xf32, #tpu.memory_space<vmem>>, vector<8x128xf32>,
    %c6_i32 = arith.constant 6 : i32
    %c8_i32_74 = arith.constant 8 : i32
    %182 = arith.muli %c6_i32, %c8_i32_74 : i32
    %183 = tpu.assume_multiple %182, 8 : i32
    %184 = arith.index_cast %183 : i32 to index
    %c0_75 = arith.constant 0 : index
    %185 = vector.load %arg9[%184, %c0_75] : memref<64x512xf32, #tpu.memory_space<vmem>>, vector<8x512xf32>
    %c0_76 = arith.constant 0 : index
    %c0_77 = arith.constant 0 : index
    %c0_78 = arith.constant 0 : index
    %186 = vector.load %arg4[%c0_76, %c0_77, %c0_78] : memref<1x128x512xf32, #tpu.memory_space<vmem>>, vector<1x128x512xf32>
    %187 = vector.shape_cast %186 : vector<1x128x512xf32> to vector<128x512xf32>
    %cst_79 = arith.constant dense<0.000000e+00> : vector<8x512xf32>
    %188 = tpu.matmul %179, %187, %cst_79 {dimension_numbers = #tpu.dot_dimension_numbers<[1], [0], [0], [1], [0, 0, 1, 1], [], []>} : vector<8x128xf32>, vector<128x512xf32>, vector<8x512xf32> -> vector<8x512xf32>
    %189 = arith.addf %185, %188 : vector<8x512xf32>
    %190 = vector.extract_strided_slice %189 {offsets = [0, 0], sizes = [8, 384], strides = [1, 1]} : vector<8x512xf32> to vector<8x384xf32>
    %cst_80 = arith.constant 5.000000e-01 : f32
    %191 = vector.broadcast %cst_80 : f32 to vector<8x384xf32>
    %192 = arith.mulf %191, %190 : vector<8x384xf32>
    %193 = math.tanh %192 : vector<8x384xf32>
    %cst_81 = arith.constant 5.000000e-01 : f32
    %194 = vector.broadcast %cst_81 : f32 to vector<8x384xf32>
    %195 = arith.mulf %193, %194 : vector<8x384xf32>
    %cst_82 = arith.constant 5.000000e-01 : f32
    %196 = vector.broadcast %cst_82 : f32 to vector<8x384xf32>
    %197 = arith.addf %195, %196 : vector<8x384xf32>
    %198 = vector.extract_strided_slice %197 {offsets = [0, 0], sizes = [8, 128], strides = [1, 1]} : vector<8x384xf32> to vector<8x128xf32>
    %199 = vector.extract_strided_slice %197 {offsets = [0, 128], sizes = [8, 128], strides = [1, 1]} : vector<8x384xf32> to vector<8x128xf32>
    %200 = vector.extract_strided_slice %197 {offsets = [0, 256], sizes = [8, 128], strides = [1, 1]} : vector<8x384xf32> to vector<8x128xf32>
    %201 = vector.extract_strided_slice %189 {offsets = [0, 384], sizes = [8, 128], strides = [1, 1]} : vector<8x512xf32> to vector<8x128xf32>
    %202 = math.tanh %201 : vector<8x128xf32>
    %203 = arith.mulf %199, %177 : vector<8x128xf32>
    %204 = arith.mulf %198, %202 : vector<8x128xf32>
    %205 = arith.addf %203, %204 : vector<8x128xf32>
    %206 = math.tanh %205 : vector<8x128xf32>
    %207 = arith.mulf %200, %206 : vector<8x128xf32>
    %208 = arith.index_cast %183 : i32 to index
    %c0_83 = arith.constant 0 : index
    %209 = vector.load %arg6[%208, %c0_83] : memref<64x128xf32, #tpu.memory_space<vmem>>, vector<8x128xf32>
    tpu.vector_store %arg6[%208, %c0_83], %207 {strides = array<i32>} : memref<64x128xf32, #tpu.memory_space<vmem>>, vector<8x128xf32>,
    %c7_i32 = arith.constant 7 : i32
    %c8_i32_84 = arith.constant 8 : i32
    %210 = arith.muli %c7_i32, %c8_i32_84 : i32
    %211 = tpu.assume_multiple %210, 8 : i32
    %212 = arith.index_cast %211 : i32 to index
    %c0_85 = arith.constant 0 : index
    %213 = vector.load %arg9[%212, %c0_85] : memref<64x512xf32, #tpu.memory_space<vmem>>, vector<8x512xf32>
    %c0_86 = arith.constant 0 : index
    %c0_87 = arith.constant 0 : index
    %c0_88 = arith.constant 0 : index
    %214 = vector.load %arg4[%c0_86, %c0_87, %c0_88] : memref<1x128x512xf32, #tpu.memory_space<vmem>>, vector<1x128x512xf32>
    %215 = vector.shape_cast %214 : vector<1x128x512xf32> to vector<128x512xf32>
    %cst_89 = arith.constant dense<0.000000e+00> : vector<8x512xf32>
    %216 = tpu.matmul %207, %215, %cst_89 {dimension_numbers = #tpu.dot_dimension_numbers<[1], [0], [0], [1], [0, 0, 1, 1], [], []>} : vector<8x128xf32>, vector<128x512xf32>, vector<8x512xf32> -> vector<8x512xf32>
    %217 = arith.addf %213, %216 : vector<8x512xf32>
    %218 = vector.extract_strided_slice %217 {offsets = [0, 0], sizes = [8, 384], strides = [1, 1]} : vector<8x512xf32> to vector<8x384xf32>
    %cst_90 = arith.constant 5.000000e-01 : f32
    %219 = vector.broadcast %cst_90 : f32 to vector<8x384xf32>
    %220 = arith.mulf %219, %218 : vector<8x384xf32>
    %221 = math.tanh %220 : vector<8x384xf32>
    %cst_91 = arith.constant 5.000000e-01 : f32
    %222 = vector.broadcast %cst_91 : f32 to vector<8x384xf32>
    %223 = arith.mulf %221, %222 : vector<8x384xf32>
    %cst_92 = arith.constant 5.000000e-01 : f32
    %224 = vector.broadcast %cst_92 : f32 to vector<8x384xf32>
    %225 = arith.addf %223, %224 : vector<8x384xf32>
    %226 = vector.extract_strided_slice %225 {offsets = [0, 0], sizes = [8, 128], strides = [1, 1]} : vector<8x384xf32> to vector<8x128xf32>
    %227 = vector.extract_strided_slice %225 {offsets = [0, 128], sizes = [8, 128], strides = [1, 1]} : vector<8x384xf32> to vector<8x128xf32>
    %228 = vector.extract_strided_slice %225 {offsets = [0, 256], sizes = [8, 128], strides = [1, 1]} : vector<8x384xf32> to vector<8x128xf32>
    %229 = vector.extract_strided_slice %217 {offsets = [0, 384], sizes = [8, 128], strides = [1, 1]} : vector<8x512xf32> to vector<8x128xf32>
    %230 = math.tanh %229 : vector<8x128xf32>
    %231 = arith.mulf %227, %205 : vector<8x128xf32>
    %232 = arith.mulf %226, %230 : vector<8x128xf32>
    %233 = arith.addf %231, %232 : vector<8x128xf32>
    %234 = math.tanh %233 : vector<8x128xf32>
    %235 = arith.mulf %228, %234 : vector<8x128xf32>
    %236 = arith.index_cast %211 : i32 to index
    %c0_93 = arith.constant 0 : index
    %237 = vector.load %arg6[%236, %c0_93] : memref<64x128xf32, #tpu.memory_space<vmem>>, vector<8x128xf32>
    tpu.vector_store %arg6[%236, %c0_93], %235 {strides = array<i32>} : memref<64x128xf32, #tpu.memory_space<vmem>>, vector<8x128xf32>,
    %c8_i32_94 = arith.constant 8 : i32
    %c0_95 = arith.constant 0 : index
    %c0_96 = arith.constant 0 : index
    %238 = vector.load %arg7[%c0_95, %c0_96] : memref<8x128xf32, #tpu.memory_space<vmem>>, vector<8x128xf32>
    tpu.vector_store %arg7[%c0_95, %c0_96], %235 {strides = array<i32>} : memref<8x128xf32, #tpu.memory_space<vmem>>, vector<8x128xf32>,
    %c0_97 = arith.constant 0 : index
    %c0_98 = arith.constant 0 : index
    %239 = vector.load %arg8[%c0_97, %c0_98] : memref<8x128xf32, #tpu.memory_space<vmem>>, vector<8x128xf32>
    tpu.vector_store %arg8[%c0_97, %c0_98], %233 {strides = array<i32>} : memref<8x128xf32, #tpu.memory_space<vmem>>, vector<8x128xf32>,
    return
  }
  func.func @transform_0(%arg0: i32, %arg1: i32) -> (i32, i32) {
    %c0_i32 = arith.constant 0 : i32
    return %arg1, %arg0 : i32, i32
  }
  func.func @transform_1(%arg0: i32, %arg1: i32) -> (i32, i32, i32) {
    %c0_i32 = arith.constant 0 : i32
    %c0_i32_0 = arith.constant 0 : i32
    %c0_i32_1 = arith.constant 0 : i32
    return %arg0, %c0_i32, %c0_i32_0 : i32, i32, i32
  }
  func.func @transform_2(%arg0: i32, %arg1: i32) -> (i32, i32, i32) {
    %c0_i32 = arith.constant 0 : i32
    %c0_i32_0 = arith.constant 0 : i32
    %c0_i32_1 = arith.constant 0 : i32
    return %arg0, %c0_i32, %c0_i32_0 : i32, i32, i32
  }
  func.func @transform_3(%arg0: i32, %arg1: i32) -> (i32, i32, i32) {
    %c0_i32 = arith.constant 0 : i32
    %c0_i32_0 = arith.constant 0 : i32
    %c0_i32_1 = arith.constant 0 : i32
    return %arg0, %c0_i32, %c0_i32_0 : i32, i32, i32
  }
  func.func @transform_4(%arg0: i32, %arg1: i32) -> (i32, i32) {
    %c0_i32 = arith.constant 0 : i32
    return %arg1, %arg0 : i32, i32
  }
}

module attributes {stable_mosaic.version = 11 : i64} {
  func.func @_layernorm_kernel(%arg0: i32, %arg1: memref<64x64xf32, #tpu.memory_space<vmem>>, %arg2: memref<1x64xf32, #tpu.memory_space<vmem>>, %arg3: memref<1x64xf32, #tpu.memory_space<vmem>>, %arg4: memref<64x64xf32, #tpu.memory_space<vmem>>) attributes {dimension_semantics = [#tpu.dimension_semantics<parallel>], iteration_bounds = array<i64: 1>, scalar_prefetch = 0 : i64, scratch_operands = 0 : i64, tpu.core_type = #tpu.core_type<tc>, window_params = [{transform_indices = @transform_0, window_bounds = array<i64: 64, 64>}, {pipeline_mode = #tpu.pipeline_mode<synchronous>, transform_indices = @transform_1, window_bounds = array<i64: 1, 64>}, {pipeline_mode = #tpu.pipeline_mode<synchronous>, transform_indices = @transform_2, window_bounds = array<i64: 1, 64>}, {transform_indices = @transform_3, window_bounds = array<i64: 64, 64>}]} {
    %c0 = arith.constant 0 : index
    %c0_0 = arith.constant 0 : index
    %0 = vector.load %arg1[%c0, %c0_0] : memref<64x64xf32, #tpu.memory_space<vmem>>, vector<64x64xf32>
    %cst = arith.constant dense<0.000000e+00> : vector<64xf32>
    %1 = vector.multi_reduction <add>, %0, %cst [1] : vector<64x64xf32> to vector<64xf32>
    %2 = vector.shape_cast %1 : vector<64xf32> to vector<64x1xf32>
    %cst_1 = arith.constant 6.400000e+01 : f32
    %3 = vector.broadcast %cst_1 : f32 to vector<64x1xf32>
    %4 = arith.divf %2, %3 : vector<64x1xf32>
    %5 = vector.broadcast %4 : vector<64x1xf32> to vector<64x64xf32>
    %6 = arith.subf %0, %5 : vector<64x64xf32>
    %7 = arith.mulf %6, %6 : vector<64x64xf32>
    %cst_2 = arith.constant dense<0.000000e+00> : vector<64xf32>
    %8 = vector.multi_reduction <add>, %7, %cst_2 [1] : vector<64x64xf32> to vector<64xf32>
    %9 = vector.shape_cast %8 : vector<64xf32> to vector<64x1xf32>
    %cst_3 = arith.constant 6.400000e+01 : f32
    %10 = vector.broadcast %cst_3 : f32 to vector<64x1xf32>
    %11 = arith.divf %9, %10 : vector<64x1xf32>
    %12 = vector.broadcast %4 : vector<64x1xf32> to vector<64x64xf32>
    %13 = arith.subf %0, %12 : vector<64x64xf32>
    %cst_4 = arith.constant 9.99999974E-6 : f32
    %14 = vector.broadcast %cst_4 : f32 to vector<64x1xf32>
    %15 = arith.addf %11, %14 : vector<64x1xf32>
    %16 = math.rsqrt %15 : vector<64x1xf32>
    %17 = vector.broadcast %16 : vector<64x1xf32> to vector<64x64xf32>
    %18 = arith.mulf %13, %17 : vector<64x64xf32>
    %c0_5 = arith.constant 0 : index
    %c0_6 = arith.constant 0 : index
    %19 = vector.load %arg2[%c0_5, %c0_6] : memref<1x64xf32, #tpu.memory_space<vmem>>, vector<1x64xf32>
    %20 = vector.broadcast %19 : vector<1x64xf32> to vector<64x64xf32>
    %21 = arith.mulf %18, %20 : vector<64x64xf32>
    %c0_7 = arith.constant 0 : index
    %c0_8 = arith.constant 0 : index
    %22 = vector.load %arg3[%c0_7, %c0_8] : memref<1x64xf32, #tpu.memory_space<vmem>>, vector<1x64xf32>
    %23 = vector.broadcast %22 : vector<1x64xf32> to vector<64x64xf32>
    %24 = arith.addf %21, %23 : vector<64x64xf32>
    %c0_9 = arith.constant 0 : index
    %c0_10 = arith.constant 0 : index
    %25 = vector.load %arg4[%c0_9, %c0_10] : memref<64x64xf32, #tpu.memory_space<vmem>>, vector<64x64xf32>
    tpu.vector_store %arg4[%c0_9, %c0_10], %24 {strides = array<i32>} : memref<64x64xf32, #tpu.memory_space<vmem>>, vector<64x64xf32>,
    return
  }
  func.func @transform_0(%arg0: i32) -> (i32, i32) {
    %c0_i32 = arith.constant 0 : i32
    %c0_i32_0 = arith.constant 0 : i32
    return %arg0, %c0_i32 : i32, i32
  }
  func.func @transform_1(%arg0: i32) -> (i32, i32) {
    %c0_i32 = arith.constant 0 : i32
    %c0_i32_0 = arith.constant 0 : i32
    %c0_i32_1 = arith.constant 0 : i32
    return %c0_i32, %c0_i32_0 : i32, i32
  }
  func.func @transform_2(%arg0: i32) -> (i32, i32) {
    %c0_i32 = arith.constant 0 : i32
    %c0_i32_0 = arith.constant 0 : i32
    %c0_i32_1 = arith.constant 0 : i32
    return %c0_i32, %c0_i32_0 : i32, i32
  }
  func.func @transform_3(%arg0: i32) -> (i32, i32) {
    %c0_i32 = arith.constant 0 : i32
    %c0_i32_0 = arith.constant 0 : i32
    return %arg0, %c0_i32 : i32, i32
  }
}

module attributes {stable_mosaic.version = 11 : i64} {
  func.func @_glstm_lstm_kernel(%arg0: i32, %arg1: i32, %arg2: memref<64x128xf32, #tpu.memory_space<vmem>>, %arg3: memref<1x128x512xf32, #tpu.memory_space<vmem>>, %arg4: memref<1x128x512xf32, #tpu.memory_space<vmem>>, %arg5: memref<1x1x512xf32, #tpu.memory_space<vmem>>, %arg6: memref<64x128xf32, #tpu.memory_space<vmem>>, %arg7: memref<8x128xf32, #tpu.memory_space<vmem>>, %arg8: memref<8x128xf32, #tpu.memory_space<vmem>>, %arg9: memref<64x512xf32, #tpu.memory_space<vmem>>) attributes {dimension_semantics = [#tpu.dimension_semantics<parallel>, #tpu.dimension_semantics<arbitrary>], iteration_bounds = array<i64: 2, 1>, scalar_prefetch = 0 : i64, scratch_operands = 3 : i64, tpu.core_type = #tpu.core_type<tc>, window_params = [{transform_indices = @transform_0, window_bounds = array<i64: 64, 128>}, {transform_indices = @transform_1, window_bounds = array<i64: 1, 128, 512>}, {transform_indices = @transform_2, window_bounds = array<i64: 1, 128, 512>}, {transform_indices = @transform_3, window_bounds = array<i64: 1, 1, 512>}, {transform_indices = @transform_4, window_bounds = array<i64: 64, 128>}]} {
    %c0_i32 = arith.constant 0 : i32
    %0 = arith.cmpi eq, %arg1, %c0_i32 : i32
    %1 = arith.extui %0 : i1 to i32
    %c0_i32_0 = arith.constant 0 : i32
    %2 = arith.cmpi ne, %1, %c0_i32_0 : i32
    scf.if %2 {
      %cst_99 = arith.constant 0.000000e+00 : f32
      %240 = vector.broadcast %cst_99 : f32 to vector<8x128xf32>
      %c0_100 = arith.constant 0 : index
      %c0_101 = arith.constant 0 : index
      %241 = vector.load %arg7[%c0_100, %c0_101] : memref<8x128xf32, #tpu.memory_space<vmem>>, vector<8x128xf32>
      tpu.vector_store %arg7[%c0_100, %c0_101], %240 {strides = array<i32>} : memref<8x128xf32, #tpu.memory_space<vmem>>, vector<8x128xf32>,
      %cst_102 = arith.constant 0.000000e+00 : f32
      %242 = vector.broadcast %cst_102 : f32 to vector<8x128xf32>
      %c0_103 = arith.constant 0 : index
      %c0_104 = arith.constant 0 : index
      %243 = vector.load %arg8[%c0_103, %c0_104] : memref<8x128xf32, #tpu.memory_space<vmem>>, vector<8x128xf32>
      tpu.vector_store %arg8[%c0_103, %c0_104], %242 {strides = array<i32>} : memref<8x128xf32, #tpu.memory_space<vmem>>, vector<8x128xf32>,
    } else {
    }
    %c0 = arith.constant 0 : index
    %c0_1 = arith.constant 0 : index
    %3 = vector.load %arg2[%c0, %c0_1] : memref<64x128xf32, #tpu.memory_space<vmem>>, vector<64x128xf32>
    %c0_2 = arith.constant 0 : index
    %c0_3 = arith.constant 0 : index
    %c0_4 = arith.constant 0 : index
    %4 = vector.load %arg3[%c0_2, %c0_3, %c0_4] : memref<1x128x512xf32, #tpu.memory_space<vmem>>, vector<1x128x512xf32>
    %5 = vector.shape_cast %4 : vector<1x128x512xf32> to vector<128x512xf32>
    %cst = arith.constant dense<0.000000e+00> : vector<64x512xf32>
    %6 = tpu.matmul %3, %5, %cst {dimension_numbers = #tpu.dot_dimension_numbers<[1], [0], [0], [1], [0, 0, 1, 1], [], []>} : vector<64x128xf32>, vector<128x512xf32>, vector<64x512xf32> -> vector<64x512xf32>
    %c0_5 = arith.constant 0 : index
    %c0_6 = arith.constant 0 : index
    %c0_7 = arith.constant 0 : index
    %7 = vector.load %arg5[%c0_5, %c0_6, %c0_7] : memref<1x1x512xf32, #tpu.memory_space<vmem>>, vector<1x1x512xf32>
    %8 = vector.shape_cast %7 : vector<1x1x512xf32> to vector<1x512xf32>
    %9 = vector.broadcast %8 : vector<1x512xf32> to vector<64x512xf32>
    %10 = arith.addf %6, %9 : vector<64x512xf32>
    %c0_8 = arith.constant 0 : index
    %c0_9 = arith.constant 0 : index
    %11 = vector.load %arg9[%c0_8, %c0_9] : memref<64x512xf32, #tpu.memory_space<vmem>>, vector<64x512xf32>
    tpu.vector_store %arg9[%c0_8, %c0_9], %10 {strides = array<i32>} : memref<64x512xf32, #tpu.memory_space<vmem>>, vector<64x512xf32>,
    %c0_10 = arith.constant 0 : index
    %c0_11 = arith.constant 0 : index
    %12 = vector.load %arg7[%c0_10, %c0_11] : memref<8x128xf32, #tpu.memory_space<vmem>>, vector<8x128xf32>
    %c0_12 = arith.constant 0 : index
    %c0_13 = arith.constant 0 : index
    %13 = vector.load %arg8[%c0_12, %c0_13] : memref<8x128xf32, #tpu.memory_space<vmem>>, vector<8x128xf32>
    %c0_i32_14 = arith.constant 0 : i32
    %c8_i32 = arith.constant 8 : i32
    %14 = arith.muli %c0_i32_14, %c8_i32 : i32
    %15 = tpu.assume_multiple %14, 8 : i32
    %16 = arith.index_cast %15 : i32 to index
    %c0_15 = arith.constant 0 : index
    %17 = vector.load %arg9[%16, %c0_15] : memref<64x512xf32, #tpu.memory_space<vmem>>, vector<8x512xf32>
    %c0_16 = arith.constant 0 : index
    %c0_17 = arith.constant 0 : index
    %c0_18 = arith.constant 0 : index
    %18 = vector.load %arg4[%c0_16, %c0_17, %c0_18] : memref<1x128x512xf32, #tpu.memory_space<vmem>>, vector<1x128x512xf32>
    %19 = vector.shape_cast %18 : vector<1x128x512xf32> to vector<128x512xf32>
    %cst_19 = arith.constant dense<0.000000e+00> : vector<8x512xf32>
    %20 = tpu.matmul %12, %19, %cst_19 {dimension_numbers = #tpu.dot_dimension_numbers<[1], [0], [0], [1], [0, 0, 1, 1], [], []>} : vector<8x128xf32>, vector<128x512xf32>, vector<8x512xf32> -> vector<8x512xf32>
    %21 = arith.addf %17, %20 : vector<8x512xf32>
    %22 = vector.extract_strided_slice %21 {offsets = [0, 0], sizes = [8, 384], strides = [1, 1]} : vector<8x512xf32> to vector<8x384xf32>
    %cst_20 = arith.constant 5.000000e-01 : f32
    %23 = vector.broadcast %cst_20 : f32 to vector<8x384xf32>
    %24 = arith.mulf %23, %22 : vector<8x384xf32>
    %25 = math.tanh %24 : vector<8x384xf32>
    %cst_21 = arith.constant 5.000000e-01 : f32
    %26 = vector.broadcast %cst_21 : f32 to vector<8x384xf32>
    %27 = arith.mulf %25, %26 : vector<8x384xf32>
    %cst_22 = arith.constant 5.000000e-01 : f32
    %28 = vector.broadcast %cst_22 : f32 to vector<8x384xf32>
    %29 = arith.addf %27, %28 : vector<8x384xf32>
    %30 = vector.extract_strided_slice %29 {offsets = [0, 0], sizes = [8, 128], strides = [1, 1]} : vector<8x384xf32> to vector<8x128xf32>
    %31 = vector.extract_strided_slice %29 {offsets = [0, 128], sizes = [8, 128], strides = [1, 1]} : vector<8x384xf32> to vector<8x128xf32>
    %32 = vector.extract_strided_slice %29 {offsets = [0, 256], sizes = [8, 128], strides = [1, 1]} : vector<8x384xf32> to vector<8x128xf32>
    %33 = vector.extract_strided_slice %21 {offsets = [0, 384], sizes = [8, 128], strides = [1, 1]} : vector<8x512xf32> to vector<8x128xf32>
    %34 = math.tanh %33 : vector<8x128xf32>
    %35 = arith.mulf %31, %13 : vector<8x128xf32>
    %36 = arith.mulf %30, %34 : vector<8x128xf32>
    %37 = arith.addf %35, %36 : vector<8x128xf32>
    %38 = math.tanh %37 : vector<8x128xf32>
    %39 = arith.mulf %32, %38 : vector<8x128xf32>
    %40 = arith.index_cast %15 : i32 to index
    %c0_23 = arith.constant 0 : index
    %41 = vector.load %arg6[%40, %c0_23] : memref<64x128xf32, #tpu.memory_space<vmem>>, vector<8x128xf32>
    tpu.vector_store %arg6[%40, %c0_23], %39 {strides = array<i32>} : memref<64x128xf32, #tpu.memory_space<vmem>>, vector<8x128xf32>,
    %c1_i32 = arith.constant 1 : i32
    %c8_i32_24 = arith.constant 8 : i32
    %42 = arith.muli %c1_i32, %c8_i32_24 : i32
    %43 = tpu.assume_multiple %42, 8 : i32
    %44 = arith.index_cast %43 : i32 to index
    %c0_25 = arith.constant 0 : index
    %45 = vector.load %arg9[%44, %c0_25] : memref<64x512xf32, #tpu.memory_space<vmem>>, vector<8x512xf32>
    %c0_26 = arith.constant 0 : index
    %c0_27 = arith.constant 0 : index
    %c0_28 = arith.constant 0 : index
    %46 = vector.load %arg4[%c0_26, %c0_27, %c0_28] : memref<1x128x512xf32, #tpu.memory_space<vmem>>, vector<1x128x512xf32>
    %47 = vector.shape_cast %46 : vector<1x128x512xf32> to vector<128x512xf32>
    %cst_29 = arith.constant dense<0.000000e+00> : vector<8x512xf32>
    %48 = tpu.matmul %39, %47, %cst_29 {dimension_numbers = #tpu.dot_dimension_numbers<[1], [0], [0], [1], [0, 0, 1, 1], [], []>} : vector<8x128xf32>, vector<128x512xf32>, vector<8x512xf32> -> vector<8x512xf32>
    %49 = arith.addf %45, %48 : vector<8x512xf32>
    %50 = vector.extract_strided_slice %49 {offsets = [0, 0], sizes = [8, 384], strides = [1, 1]} : vector<8x512xf32> to vector<8x384xf32>
    %cst_30 = arith.constant 5.000000e-01 : f32
    %51 = vector.broadcast %cst_30 : f32 to vector<8x384xf32>
    %52 = arith.mulf %51, %50 : vector<8x384xf32>
    %53 = math.tanh %52 : vector<8x384xf32>
    %cst_31 = arith.constant 5.000000e-01 : f32
    %54 = vector.broadcast %cst_31 : f32 to vector<8x384xf32>
    %55 = arith.mulf %53, %54 : vector<8x384xf32>
    %cst_32 = arith.constant 5.000000e-01 : f32
    %56 = vector.broadcast %cst_32 : f32 to vector<8x384xf32>
    %57 = arith.addf %55, %56 : vector<8x384xf32>
    %58 = vector.extract_strided_slice %57 {offsets = [0, 0], sizes = [8, 128], strides = [1, 1]} : vector<8x384xf32> to vector<8x128xf32>
    %59 = vector.extract_strided_slice %57 {offsets = [0, 128], sizes = [8, 128], strides = [1, 1]} : vector<8x384xf32> to vector<8x128xf32>
    %60 = vector.extract_strided_slice %57 {offsets = [0, 256], sizes = [8, 128], strides = [1, 1]} : vector<8x384xf32> to vector<8x128xf32>
    %61 = vector.extract_strided_slice %49 {offsets = [0, 384], sizes = [8, 128], strides = [1, 1]} : vector<8x512xf32> to vector<8x128xf32>
    %62 = math.tanh %61 : vector<8x128xf32>
    %63 = arith.mulf %59, %37 : vector<8x128xf32>
    %64 = arith.mulf %58, %62 : vector<8x128xf32>
    %65 = arith.addf %63, %64 : vector<8x128xf32>
    %66 = math.tanh %65 : vector<8x128xf32>
    %67 = arith.mulf %60, %66 : vector<8x128xf32>
    %68 = arith.index_cast %43 : i32 to index
    %c0_33 = arith.constant 0 : index
    %69 = vector.load %arg6[%68, %c0_33] : memref<64x128xf32, #tpu.memory_space<vmem>>, vector<8x128xf32>
    tpu.vector_store %arg6[%68, %c0_33], %67 {strides = array<i32>} : memref<64x128xf32, #tpu.memory_space<vmem>>, vector<8x128xf32>,
    %c2_i32 = arith.constant 2 : i32
    %c8_i32_34 = arith.constant 8 : i32
    %70 = arith.muli %c2_i32, %c8_i32_34 : i32
    %71 = tpu.assume_multiple %70, 8 : i32
    %72 = arith.index_cast %71 : i32 to index
    %c0_35 = arith.constant 0 : index
    %73 = vector.load %arg9[%72, %c0_35] : memref<64x512xf32, #tpu.memory_space<vmem>>, vector<8x512xf32>
    %c0_36 = arith.constant 0 : index
    %c0_37 = arith.constant 0 : index
    %c0_38 = arith.constant 0 : index
    %74 = vector.load %arg4[%c0_36, %c0_37, %c0_38] : memref<1x128x512xf32, #tpu.memory_space<vmem>>, vector<1x128x512xf32>
    %75 = vector.shape_cast %74 : vector<1x128x512xf32> to vector<128x512xf32>
    %cst_39 = arith.constant dense<0.000000e+00> : vector<8x512xf32>
    %76 = tpu.matmul %67, %75, %cst_39 {dimension_numbers = #tpu.dot_dimension_numbers<[1], [0], [0], [1], [0, 0, 1, 1], [], []>} : vector<8x128xf32>, vector<128x512xf32>, vector<8x512xf32> -> vector<8x512xf32>
    %77 = arith.addf %73, %76 : vector<8x512xf32>
    %78 = vector.extract_strided_slice %77 {offsets = [0, 0], sizes = [8, 384], strides = [1, 1]} : vector<8x512xf32> to vector<8x384xf32>
    %cst_40 = arith.constant 5.000000e-01 : f32
    %79 = vector.broadcast %cst_40 : f32 to vector<8x384xf32>
    %80 = arith.mulf %79, %78 : vector<8x384xf32>
    %81 = math.tanh %80 : vector<8x384xf32>
    %cst_41 = arith.constant 5.000000e-01 : f32
    %82 = vector.broadcast %cst_41 : f32 to vector<8x384xf32>
    %83 = arith.mulf %81, %82 : vector<8x384xf32>
    %cst_42 = arith.constant 5.000000e-01 : f32
    %84 = vector.broadcast %cst_42 : f32 to vector<8x384xf32>
    %85 = arith.addf %83, %84 : vector<8x384xf32>
    %86 = vector.extract_strided_slice %85 {offsets = [0, 0], sizes = [8, 128], strides = [1, 1]} : vector<8x384xf32> to vector<8x128xf32>
    %87 = vector.extract_strided_slice %85 {offsets = [0, 128], sizes = [8, 128], strides = [1, 1]} : vector<8x384xf32> to vector<8x128xf32>
    %88 = vector.extract_strided_slice %85 {offsets = [0, 256], sizes = [8, 128], strides = [1, 1]} : vector<8x384xf32> to vector<8x128xf32>
    %89 = vector.extract_strided_slice %77 {offsets = [0, 384], sizes = [8, 128], strides = [1, 1]} : vector<8x512xf32> to vector<8x128xf32>
    %90 = math.tanh %89 : vector<8x128xf32>
    %91 = arith.mulf %87, %65 : vector<8x128xf32>
    %92 = arith.mulf %86, %90 : vector<8x128xf32>
    %93 = arith.addf %91, %92 : vector<8x128xf32>
    %94 = math.tanh %93 : vector<8x128xf32>
    %95 = arith.mulf %88, %94 : vector<8x128xf32>
    %96 = arith.index_cast %71 : i32 to index
    %c0_43 = arith.constant 0 : index
    %97 = vector.load %arg6[%96, %c0_43] : memref<64x128xf32, #tpu.memory_space<vmem>>, vector<8x128xf32>
    tpu.vector_store %arg6[%96, %c0_43], %95 {strides = array<i32>} : memref<64x128xf32, #tpu.memory_space<vmem>>, vector<8x128xf32>,
    %c3_i32 = arith.constant 3 : i32
    %c8_i32_44 = arith.constant 8 : i32
    %98 = arith.muli %c3_i32, %c8_i32_44 : i32
    %99 = tpu.assume_multiple %98, 8 : i32
    %100 = arith.index_cast %99 : i32 to index
    %c0_45 = arith.constant 0 : index
    %101 = vector.load %arg9[%100, %c0_45] : memref<64x512xf32, #tpu.memory_space<vmem>>, vector<8x512xf32>
    %c0_46 = arith.constant 0 : index
    %c0_47 = arith.constant 0 : index
    %c0_48 = arith.constant 0 : index
    %102 = vector.load %arg4[%c0_46, %c0_47, %c0_48] : memref<1x128x512xf32, #tpu.memory_space<vmem>>, vector<1x128x512xf32>
    %103 = vector.shape_cast %102 : vector<1x128x512xf32> to vector<128x512xf32>
    %cst_49 = arith.constant dense<0.000000e+00> : vector<8x512xf32>
    %104 = tpu.matmul %95, %103, %cst_49 {dimension_numbers = #tpu.dot_dimension_numbers<[1], [0], [0], [1], [0, 0, 1, 1], [], []>} : vector<8x128xf32>, vector<128x512xf32>, vector<8x512xf32> -> vector<8x512xf32>
    %105 = arith.addf %101, %104 : vector<8x512xf32>
    %106 = vector.extract_strided_slice %105 {offsets = [0, 0], sizes = [8, 384], strides = [1, 1]} : vector<8x512xf32> to vector<8x384xf32>
    %cst_50 = arith.constant 5.000000e-01 : f32
    %107 = vector.broadcast %cst_50 : f32 to vector<8x384xf32>
    %108 = arith.mulf %107, %106 : vector<8x384xf32>
    %109 = math.tanh %108 : vector<8x384xf32>
    %cst_51 = arith.constant 5.000000e-01 : f32
    %110 = vector.broadcast %cst_51 : f32 to vector<8x384xf32>
    %111 = arith.mulf %109, %110 : vector<8x384xf32>
    %cst_52 = arith.constant 5.000000e-01 : f32
    %112 = vector.broadcast %cst_52 : f32 to vector<8x384xf32>
    %113 = arith.addf %111, %112 : vector<8x384xf32>
    %114 = vector.extract_strided_slice %113 {offsets = [0, 0], sizes = [8, 128], strides = [1, 1]} : vector<8x384xf32> to vector<8x128xf32>
    %115 = vector.extract_strided_slice %113 {offsets = [0, 128], sizes = [8, 128], strides = [1, 1]} : vector<8x384xf32> to vector<8x128xf32>
    %116 = vector.extract_strided_slice %113 {offsets = [0, 256], sizes = [8, 128], strides = [1, 1]} : vector<8x384xf32> to vector<8x128xf32>
    %117 = vector.extract_strided_slice %105 {offsets = [0, 384], sizes = [8, 128], strides = [1, 1]} : vector<8x512xf32> to vector<8x128xf32>
    %118 = math.tanh %117 : vector<8x128xf32>
    %119 = arith.mulf %115, %93 : vector<8x128xf32>
    %120 = arith.mulf %114, %118 : vector<8x128xf32>
    %121 = arith.addf %119, %120 : vector<8x128xf32>
    %122 = math.tanh %121 : vector<8x128xf32>
    %123 = arith.mulf %116, %122 : vector<8x128xf32>
    %124 = arith.index_cast %99 : i32 to index
    %c0_53 = arith.constant 0 : index
    %125 = vector.load %arg6[%124, %c0_53] : memref<64x128xf32, #tpu.memory_space<vmem>>, vector<8x128xf32>
    tpu.vector_store %arg6[%124, %c0_53], %123 {strides = array<i32>} : memref<64x128xf32, #tpu.memory_space<vmem>>, vector<8x128xf32>,
    %c4_i32 = arith.constant 4 : i32
    %c8_i32_54 = arith.constant 8 : i32
    %126 = arith.muli %c4_i32, %c8_i32_54 : i32
    %127 = tpu.assume_multiple %126, 8 : i32
    %128 = arith.index_cast %127 : i32 to index
    %c0_55 = arith.constant 0 : index
    %129 = vector.load %arg9[%128, %c0_55] : memref<64x512xf32, #tpu.memory_space<vmem>>, vector<8x512xf32>
    %c0_56 = arith.constant 0 : index
    %c0_57 = arith.constant 0 : index
    %c0_58 = arith.constant 0 : index
    %130 = vector.load %arg4[%c0_56, %c0_57, %c0_58] : memref<1x128x512xf32, #tpu.memory_space<vmem>>, vector<1x128x512xf32>
    %131 = vector.shape_cast %130 : vector<1x128x512xf32> to vector<128x512xf32>
    %cst_59 = arith.constant dense<0.000000e+00> : vector<8x512xf32>
    %132 = tpu.matmul %123, %131, %cst_59 {dimension_numbers = #tpu.dot_dimension_numbers<[1], [0], [0], [1], [0, 0, 1, 1], [], []>} : vector<8x128xf32>, vector<128x512xf32>, vector<8x512xf32> -> vector<8x512xf32>
    %133 = arith.addf %129, %132 : vector<8x512xf32>
    %134 = vector.extract_strided_slice %133 {offsets = [0, 0], sizes = [8, 384], strides = [1, 1]} : vector<8x512xf32> to vector<8x384xf32>
    %cst_60 = arith.constant 5.000000e-01 : f32
    %135 = vector.broadcast %cst_60 : f32 to vector<8x384xf32>
    %136 = arith.mulf %135, %134 : vector<8x384xf32>
    %137 = math.tanh %136 : vector<8x384xf32>
    %cst_61 = arith.constant 5.000000e-01 : f32
    %138 = vector.broadcast %cst_61 : f32 to vector<8x384xf32>
    %139 = arith.mulf %137, %138 : vector<8x384xf32>
    %cst_62 = arith.constant 5.000000e-01 : f32
    %140 = vector.broadcast %cst_62 : f32 to vector<8x384xf32>
    %141 = arith.addf %139, %140 : vector<8x384xf32>
    %142 = vector.extract_strided_slice %141 {offsets = [0, 0], sizes = [8, 128], strides = [1, 1]} : vector<8x384xf32> to vector<8x128xf32>
    %143 = vector.extract_strided_slice %141 {offsets = [0, 128], sizes = [8, 128], strides = [1, 1]} : vector<8x384xf32> to vector<8x128xf32>
    %144 = vector.extract_strided_slice %141 {offsets = [0, 256], sizes = [8, 128], strides = [1, 1]} : vector<8x384xf32> to vector<8x128xf32>
    %145 = vector.extract_strided_slice %133 {offsets = [0, 384], sizes = [8, 128], strides = [1, 1]} : vector<8x512xf32> to vector<8x128xf32>
    %146 = math.tanh %145 : vector<8x128xf32>
    %147 = arith.mulf %143, %121 : vector<8x128xf32>
    %148 = arith.mulf %142, %146 : vector<8x128xf32>
    %149 = arith.addf %147, %148 : vector<8x128xf32>
    %150 = math.tanh %149 : vector<8x128xf32>
    %151 = arith.mulf %144, %150 : vector<8x128xf32>
    %152 = arith.index_cast %127 : i32 to index
    %c0_63 = arith.constant 0 : index
    %153 = vector.load %arg6[%152, %c0_63] : memref<64x128xf32, #tpu.memory_space<vmem>>, vector<8x128xf32>
    tpu.vector_store %arg6[%152, %c0_63], %151 {strides = array<i32>} : memref<64x128xf32, #tpu.memory_space<vmem>>, vector<8x128xf32>,
    %c5_i32 = arith.constant 5 : i32
    %c8_i32_64 = arith.constant 8 : i32
    %154 = arith.muli %c5_i32, %c8_i32_64 : i32
    %155 = tpu.assume_multiple %154, 8 : i32
    %156 = arith.index_cast %155 : i32 to index
    %c0_65 = arith.constant 0 : index
    %157 = vector.load %arg9[%156, %c0_65] : memref<64x512xf32, #tpu.memory_space<vmem>>, vector<8x512xf32>
    %c0_66 = arith.constant 0 : index
    %c0_67 = arith.constant 0 : index
    %c0_68 = arith.constant 0 : index
    %158 = vector.load %arg4[%c0_66, %c0_67, %c0_68] : memref<1x128x512xf32, #tpu.memory_space<vmem>>, vector<1x128x512xf32>
    %159 = vector.shape_cast %158 : vector<1x128x512xf32> to vector<128x512xf32>
    %cst_69 = arith.constant dense<0.000000e+00> : vector<8x512xf32>
    %160 = tpu.matmul %151, %159, %cst_69 {dimension_numbers = #tpu.dot_dimension_numbers<[1], [0], [0], [1], [0, 0, 1, 1], [], []>} : vector<8x128xf32>, vector<128x512xf32>, vector<8x512xf32> -> vector<8x512xf32>
    %161 = arith.addf %157, %160 : vector<8x512xf32>
    %162 = vector.extract_strided_slice %161 {offsets = [0, 0], sizes = [8, 384], strides = [1, 1]} : vector<8x512xf32> to vector<8x384xf32>
    %cst_70 = arith.constant 5.000000e-01 : f32
    %163 = vector.broadcast %cst_70 : f32 to vector<8x384xf32>
    %164 = arith.mulf %163, %162 : vector<8x384xf32>
    %165 = math.tanh %164 : vector<8x384xf32>
    %cst_71 = arith.constant 5.000000e-01 : f32
    %166 = vector.broadcast %cst_71 : f32 to vector<8x384xf32>
    %167 = arith.mulf %165, %166 : vector<8x384xf32>
    %cst_72 = arith.constant 5.000000e-01 : f32
    %168 = vector.broadcast %cst_72 : f32 to vector<8x384xf32>
    %169 = arith.addf %167, %168 : vector<8x384xf32>
    %170 = vector.extract_strided_slice %169 {offsets = [0, 0], sizes = [8, 128], strides = [1, 1]} : vector<8x384xf32> to vector<8x128xf32>
    %171 = vector.extract_strided_slice %169 {offsets = [0, 128], sizes = [8, 128], strides = [1, 1]} : vector<8x384xf32> to vector<8x128xf32>
    %172 = vector.extract_strided_slice %169 {offsets = [0, 256], sizes = [8, 128], strides = [1, 1]} : vector<8x384xf32> to vector<8x128xf32>
    %173 = vector.extract_strided_slice %161 {offsets = [0, 384], sizes = [8, 128], strides = [1, 1]} : vector<8x512xf32> to vector<8x128xf32>
    %174 = math.tanh %173 : vector<8x128xf32>
    %175 = arith.mulf %171, %149 : vector<8x128xf32>
    %176 = arith.mulf %170, %174 : vector<8x128xf32>
    %177 = arith.addf %175, %176 : vector<8x128xf32>
    %178 = math.tanh %177 : vector<8x128xf32>
    %179 = arith.mulf %172, %178 : vector<8x128xf32>
    %180 = arith.index_cast %155 : i32 to index
    %c0_73 = arith.constant 0 : index
    %181 = vector.load %arg6[%180, %c0_73] : memref<64x128xf32, #tpu.memory_space<vmem>>, vector<8x128xf32>
    tpu.vector_store %arg6[%180, %c0_73], %179 {strides = array<i32>} : memref<64x128xf32, #tpu.memory_space<vmem>>, vector<8x128xf32>,
    %c6_i32 = arith.constant 6 : i32
    %c8_i32_74 = arith.constant 8 : i32
    %182 = arith.muli %c6_i32, %c8_i32_74 : i32
    %183 = tpu.assume_multiple %182, 8 : i32
    %184 = arith.index_cast %183 : i32 to index
    %c0_75 = arith.constant 0 : index
    %185 = vector.load %arg9[%184, %c0_75] : memref<64x512xf32, #tpu.memory_space<vmem>>, vector<8x512xf32>
    %c0_76 = arith.constant 0 : index
    %c0_77 = arith.constant 0 : index
    %c0_78 = arith.constant 0 : index
    %186 = vector.load %arg4[%c0_76, %c0_77, %c0_78] : memref<1x128x512xf32, #tpu.memory_space<vmem>>, vector<1x128x512xf32>
    %187 = vector.shape_cast %186 : vector<1x128x512xf32> to vector<128x512xf32>
    %cst_79 = arith.constant dense<0.000000e+00> : vector<8x512xf32>
    %188 = tpu.matmul %179, %187, %cst_79 {dimension_numbers = #tpu.dot_dimension_numbers<[1], [0], [0], [1], [0, 0, 1, 1], [], []>} : vector<8x128xf32>, vector<128x512xf32>, vector<8x512xf32> -> vector<8x512xf32>
    %189 = arith.addf %185, %188 : vector<8x512xf32>
    %190 = vector.extract_strided_slice %189 {offsets = [0, 0], sizes = [8, 384], strides = [1, 1]} : vector<8x512xf32> to vector<8x384xf32>
    %cst_80 = arith.constant 5.000000e-01 : f32
    %191 = vector.broadcast %cst_80 : f32 to vector<8x384xf32>
    %192 = arith.mulf %191, %190 : vector<8x384xf32>
    %193 = math.tanh %192 : vector<8x384xf32>
    %cst_81 = arith.constant 5.000000e-01 : f32
    %194 = vector.broadcast %cst_81 : f32 to vector<8x384xf32>
    %195 = arith.mulf %193, %194 : vector<8x384xf32>
    %cst_82 = arith.constant 5.000000e-01 : f32
    %196 = vector.broadcast %cst_82 : f32 to vector<8x384xf32>
    %197 = arith.addf %195, %196 : vector<8x384xf32>
    %198 = vector.extract_strided_slice %197 {offsets = [0, 0], sizes = [8, 128], strides = [1, 1]} : vector<8x384xf32> to vector<8x128xf32>
    %199 = vector.extract_strided_slice %197 {offsets = [0, 128], sizes = [8, 128], strides = [1, 1]} : vector<8x384xf32> to vector<8x128xf32>
    %200 = vector.extract_strided_slice %197 {offsets = [0, 256], sizes = [8, 128], strides = [1, 1]} : vector<8x384xf32> to vector<8x128xf32>
    %201 = vector.extract_strided_slice %189 {offsets = [0, 384], sizes = [8, 128], strides = [1, 1]} : vector<8x512xf32> to vector<8x128xf32>
    %202 = math.tanh %201 : vector<8x128xf32>
    %203 = arith.mulf %199, %177 : vector<8x128xf32>
    %204 = arith.mulf %198, %202 : vector<8x128xf32>
    %205 = arith.addf %203, %204 : vector<8x128xf32>
    %206 = math.tanh %205 : vector<8x128xf32>
    %207 = arith.mulf %200, %206 : vector<8x128xf32>
    %208 = arith.index_cast %183 : i32 to index
    %c0_83 = arith.constant 0 : index
    %209 = vector.load %arg6[%208, %c0_83] : memref<64x128xf32, #tpu.memory_space<vmem>>, vector<8x128xf32>
    tpu.vector_store %arg6[%208, %c0_83], %207 {strides = array<i32>} : memref<64x128xf32, #tpu.memory_space<vmem>>, vector<8x128xf32>,
    %c7_i32 = arith.constant 7 : i32
    %c8_i32_84 = arith.constant 8 : i32
    %210 = arith.muli %c7_i32, %c8_i32_84 : i32
    %211 = tpu.assume_multiple %210, 8 : i32
    %212 = arith.index_cast %211 : i32 to index
    %c0_85 = arith.constant 0 : index
    %213 = vector.load %arg9[%212, %c0_85] : memref<64x512xf32, #tpu.memory_space<vmem>>, vector<8x512xf32>
    %c0_86 = arith.constant 0 : index
    %c0_87 = arith.constant 0 : index
    %c0_88 = arith.constant 0 : index
    %214 = vector.load %arg4[%c0_86, %c0_87, %c0_88] : memref<1x128x512xf32, #tpu.memory_space<vmem>>, vector<1x128x512xf32>
    %215 = vector.shape_cast %214 : vector<1x128x512xf32> to vector<128x512xf32>
    %cst_89 = arith.constant dense<0.000000e+00> : vector<8x512xf32>
    %216 = tpu.matmul %207, %215, %cst_89 {dimension_numbers = #tpu.dot_dimension_numbers<[1], [0], [0], [1], [0, 0, 1, 1], [], []>} : vector<8x128xf32>, vector<128x512xf32>, vector<8x512xf32> -> vector<8x512xf32>
    %217 = arith.addf %213, %216 : vector<8x512xf32>
    %218 = vector.extract_strided_slice %217 {offsets = [0, 0], sizes = [8, 384], strides = [1, 1]} : vector<8x512xf32> to vector<8x384xf32>
    %cst_90 = arith.constant 5.000000e-01 : f32
    %219 = vector.broadcast %cst_90 : f32 to vector<8x384xf32>
    %220 = arith.mulf %219, %218 : vector<8x384xf32>
    %221 = math.tanh %220 : vector<8x384xf32>
    %cst_91 = arith.constant 5.000000e-01 : f32
    %222 = vector.broadcast %cst_91 : f32 to vector<8x384xf32>
    %223 = arith.mulf %221, %222 : vector<8x384xf32>
    %cst_92 = arith.constant 5.000000e-01 : f32
    %224 = vector.broadcast %cst_92 : f32 to vector<8x384xf32>
    %225 = arith.addf %223, %224 : vector<8x384xf32>
    %226 = vector.extract_strided_slice %225 {offsets = [0, 0], sizes = [8, 128], strides = [1, 1]} : vector<8x384xf32> to vector<8x128xf32>
    %227 = vector.extract_strided_slice %225 {offsets = [0, 128], sizes = [8, 128], strides = [1, 1]} : vector<8x384xf32> to vector<8x128xf32>
    %228 = vector.extract_strided_slice %225 {offsets = [0, 256], sizes = [8, 128], strides = [1, 1]} : vector<8x384xf32> to vector<8x128xf32>
    %229 = vector.extract_strided_slice %217 {offsets = [0, 384], sizes = [8, 128], strides = [1, 1]} : vector<8x512xf32> to vector<8x128xf32>
    %230 = math.tanh %229 : vector<8x128xf32>
    %231 = arith.mulf %227, %205 : vector<8x128xf32>
    %232 = arith.mulf %226, %230 : vector<8x128xf32>
    %233 = arith.addf %231, %232 : vector<8x128xf32>
    %234 = math.tanh %233 : vector<8x128xf32>
    %235 = arith.mulf %228, %234 : vector<8x128xf32>
    %236 = arith.index_cast %211 : i32 to index
    %c0_93 = arith.constant 0 : index
    %237 = vector.load %arg6[%236, %c0_93] : memref<64x128xf32, #tpu.memory_space<vmem>>, vector<8x128xf32>
    tpu.vector_store %arg6[%236, %c0_93], %235 {strides = array<i32>} : memref<64x128xf32, #tpu.memory_space<vmem>>, vector<8x128xf32>,
    %c8_i32_94 = arith.constant 8 : i32
    %c0_95 = arith.constant 0 : index
    %c0_96 = arith.constant 0 : index
    %238 = vector.load %arg7[%c0_95, %c0_96] : memref<8x128xf32, #tpu.memory_space<vmem>>, vector<8x128xf32>
    tpu.vector_store %arg7[%c0_95, %c0_96], %235 {strides = array<i32>} : memref<8x128xf32, #tpu.memory_space<vmem>>, vector<8x128xf32>,
    %c0_97 = arith.constant 0 : index
    %c0_98 = arith.constant 0 : index
    %239 = vector.load %arg8[%c0_97, %c0_98] : memref<8x128xf32, #tpu.memory_space<vmem>>, vector<8x128xf32>
    tpu.vector_store %arg8[%c0_97, %c0_98], %233 {strides = array<i32>} : memref<8x128xf32, #tpu.memory_space<vmem>>, vector<8x128xf32>,
    return
  }
  func.func @transform_0(%arg0: i32, %arg1: i32) -> (i32, i32) {
    %c0_i32 = arith.constant 0 : i32
    return %arg1, %arg0 : i32, i32
  }
  func.func @transform_1(%arg0: i32, %arg1: i32) -> (i32, i32, i32) {
    %c0_i32 = arith.constant 0 : i32
    %c0_i32_0 = arith.constant 0 : i32
    %c0_i32_1 = arith.constant 0 : i32
    return %arg0, %c0_i32, %c0_i32_0 : i32, i32, i32
  }
  func.func @transform_2(%arg0: i32, %arg1: i32) -> (i32, i32, i32) {
    %c0_i32 = arith.constant 0 : i32
    %c0_i32_0 = arith.constant 0 : i32
    %c0_i32_1 = arith.constant 0 : i32
    return %arg0, %c0_i32, %c0_i32_0 : i32, i32, i32
  }
  func.func @transform_3(%arg0: i32, %arg1: i32) -> (i32, i32, i32) {
    %c0_i32 = arith.constant 0 : i32
    %c0_i32_0 = arith.constant 0 : i32
    %c0_i32_1 = arith.constant 0 : i32
    return %arg0, %c0_i32, %c0_i32_0 : i32, i32, i32
  }
  func.func @transform_4(%arg0: i32, %arg1: i32) -> (i32, i32) {
    %c0_i32 = arith.constant 0 : i32
    return %arg1, %arg0 : i32, i32
  }
}

</mosaic_0001>

<bundles_post_ra>
// kernel: _lambda_.5
= control target key start
LH: loop header
LB: loop body
LE: loop exit
PB: predicated region body
PF: predicated region fallthrough
CT: control target
= control target key end

     0   :  { %vm22_vm0 = vcmask 523264   ;;  %v263_v16 = vmov 64.0   ;;  %s471_s0 = inlined_call_operand.vmem [shape: f32[64,64], index: 0, kind: input, shape index: {}]   ;;  %s472_s1 = inlined_call_operand.vmem [shape: f32[1,64], index: 1, kind: input, shape index: {}]   ;;  %s473_s2 = inlined_call_operand.vmem [shape: f32[1,64], index: 2, kind: input, shape index: {}]   ;;  %s474_s3 = inlined_call_operand.vmem [shape: f32[64,64], index: 3, kind: output, shape index: {}]  }
   0x1   :  { %v18_v0 = vld [vmem:[%s471_s0 + $0x20] sm:$0xff]  ;;  %v16_v1 = vld [vmem:[%s471_s0 + $0x10] sm:$0xff]  ;;  %v19_v6 = vld [vmem:[%s471_s0 + $0x28] sm:$0xff]  ;;  %245 = vrcp.f32 %v263_v16 }
   0x2   :  { %v14_v2 = vld [vmem:[%s471_s0] sm:$0xff]  ;;  %v35_v3 = vsel %vm22_vm0, %v18_v0, 0.0  ;;  %v29_v4 = vsel %vm22_vm0, %v16_v1, 0.0  ;;  %v17_v7 = vld [vmem:[%s471_s0 + $0x18] sm:$0xff]  ;;  %v15_v8 = vld [vmem:[%s471_s0 + $0x8] sm:$0xff]  ;;  %v38_v9 = vsel %vm22_vm0, %v19_v6, 0.0 }
   0x3   :  { %v23_v5 = vsel %vm22_vm0, %v14_v2, 0.0  ;;  %36 = vadd.xlane.f32.xlu2 %v35_v3  ;;  %30 = vadd.xlane.f32.xlu1 %v29_v4  ;;  %v32_v10 = vsel %vm22_vm0, %v17_v7, 0.0  ;;  %v26_v11 = vsel %vm22_vm0, %v15_v8, 0.0  ;;  %v21_v12 = vld [vmem:[%s471_s0 + $0x38] sm:$0xff]  ;;  %v20_v13 = vld [vmem:[%s471_s0 + $0x30] sm:$0xff] }
   0x4   :  { %24 = vadd.xlane.f32.xlu0 %v23_v5  ;;  %v44_v14 = vsel %vm22_vm0, %v21_v12, 0.0  ;;  %v41_v15 = vsel %vm22_vm0, %v20_v13, 0.0 }
   0x7   :  { %v246_v17 = vpop.eup %245 }
   0x8   :  { %v48_v18 = vmul.f32 64.0, %v246_v17  ;;  %vm52_vm1 = vweird.f32 %v246_v17 }
   0xa   :  { %v49_v19 = vsub.f32 1.0, %v48_v18 }
   0xb   :  { %39 = vadd.xlane.f32.xlu2 %v38_v9  ;;  %33 = vadd.xlane.f32.xlu1 %v32_v10 }
   0xc   :  { %27 = vadd.xlane.f32.xlu0 %v26_v11  ;;  %v50_v20 = vmul.f32 %v246_v17, %v49_v19 }
   0xe   :  { %v51_v21 = vadd.f32 %v246_v17, %v50_v20 }
  0x10   :  { %v316_v22 = vsel %vm52_vm1, %v246_v17, %v51_v21 }
  0x13   :  { %45 = vadd.xlane.f32.xlu1 %v44_v14 }
  0x14   :  { %42 = vadd.xlane.f32.xlu0 %v41_v15 }
  0x76   :  { %v37_v23 = vpop.xlane.xlu2 %36  ;;  %v31_v24 = vpop.xlane.xlu1 %30 }
  0x77   :  { %v56_v25 = vmul.f32 %v316_v22, %v31_v24  ;;  %v25_v26 = vpop.xlane.xlu0 %24  ;;  %v58_v39 = vmul.f32 %v316_v22, %v37_v23 }
  0x78   :  { %v54_v27 = vmul.f32 %v316_v22, %v25_v26 }
  0x79   :  { %v320_v28 = vsub.f32 %v16_v1, %v56_v25  ;;  %v344_v46 = vsub.f32 %v18_v0, %v58_v39 }
  0x7a   :  { %v322_v29 = vsub.f32 %v14_v2, %v54_v27 }
  0x7b   :  { %v72_v30 = vmul.f32 %v320_v28, %v320_v28  ;;  %v74_v55 = vmul.f32 %v344_v46, %v344_v46 }
  0x7c   :  { %v70_v31 = vmul.f32 %v322_v29, %v322_v29 }
  0x7d   :  { %v84_v32 = vsel %vm22_vm0, %v72_v30, 0.0  ;;  %v90_v58 = vsel %vm22_vm0, %v74_v55, 0.0 }
  0x7e   :  { %v40_v33 = vpop.xlane.xlu2 %39  ;;  %85 = vadd.xlane.f32.xlu1 %v84_v32  ;;  %v34_v34 = vpop.xlane.xlu1 %33  ;;  %v78_v35 = vsel %vm22_vm0, %v70_v31, 0.0 }
  0x7f   :  { %v59_v36 = vmul.f32 %v316_v22, %v40_v33  ;;  %v57_v37 = vmul.f32 %v316_v22, %v34_v34  ;;  %79 = vadd.xlane.f32.xlu2 %v78_v35  ;;  %v28_v38 = vpop.xlane.xlu0 %27 }
  0x80   :  { %v55_v40 = vmul.f32 %v316_v22, %v28_v38 }
  0x81   :  { %v334_v41 = vsub.f32 %v19_v6, %v59_v36  ;;  %v336_v42 = vsub.f32 %v17_v7, %v57_v37  ;;  %v384_v37 = vld [vmem:[%s472_s1] ss:$0 sm:$0xff] }
  0x82   :  { %v338_v43 = vsub.f32 %v15_v8, %v55_v40 }
  0x83   :  { %v75_v44 = vmul.f32 %v334_v41, %v334_v41  ;;  %v73_v45 = vmul.f32 %v336_v42, %v336_v42 }
  0x84   :  { %v71_v47 = vmul.f32 %v338_v43, %v338_v43 }
  0x85   :  { %v93_v48 = vsel %vm22_vm0, %v75_v44, 0.0  ;;  %v87_v49 = vsel %vm22_vm0, %v73_v45, 0.0 }
  0x86   :  { %94 = vadd.xlane.f32.xlu1 %v93_v48  ;;  %v81_v50 = vsel %vm22_vm0, %v71_v47, 0.0  ;;  %v46_v51 = vpop.xlane.xlu1 %45  ;;  %v394_v48 = vld [vmem:[%s473_s2] ss:$0 sm:$0xff] }
  0x87   :  { %88 = vadd.xlane.f32.xlu2 %v87_v49  ;;  %82 = vadd.xlane.f32.xlu0 %v81_v50  ;;  %v43_v52 = vpop.xlane.xlu0 %42  ;;  %v61_v54 = vmul.f32 %v316_v22, %v46_v51 }
  0x88   :  { %v60_v53 = vmul.f32 %v316_v22, %v43_v52 }
  0x89   :  { %v357_v57 = vsub.f32 %v21_v12, %v61_v54 }
  0x8a   :  { %v355_v56 = vsub.f32 %v20_v13, %v60_v53 }
  0x8b   :  { %v77_v61 = vmul.f32 %v357_v57, %v357_v57 }
  0x8c   :  { %v76_v59 = vmul.f32 %v355_v56, %v355_v56 }
  0x8d   :  { %v99_v62 = vsel %vm22_vm0, %v77_v61, 0.0 }
  0x8e   :  { %v96_v60 = vsel %vm22_vm0, %v76_v59, 0.0 }
  0x8f   :  { %91 = vadd.xlane.f32.xlu0 %v90_v58  ;;  %97 = vadd.xlane.f32.xlu2 %v96_v60 }
  0x97   :  { %100 = vadd.xlane.f32.xlu0 %v99_v62 }
  0xf1   :  { %v86_v63 = vpop.xlane.xlu1 %85 }
  0xf2   :  { %v104_v0 = vmul.f32 %v86_v63, %v316_v22  ;;  %v80_v1 = vpop.xlane.xlu2 %79 }
  0xf3   :  { %v102_v2 = vmul.f32 %v80_v1, %v316_v22 }
  0xf4   :  { %v112_v3 = vadd.f32 1e-05, %v104_v0 }
  0xf5   :  { %v110_v4 = vadd.f32 1e-05, %v102_v2 }
  0xf6   :  { %247 = vrsqrt.f32 %v112_v3  ;;  %vm144_vm2 = vweird.f32 %v112_v3 }
  0xf7   :  { %249 = vrsqrt.f32 %v110_v4  ;;  %vm124_vm6 = vweird.f32 %v110_v4 }
  0xf9   :  { %v95_v5 = vpop.xlane.xlu1 %94 }
  0xfa   :  { %v107_v6 = vmul.f32 %v95_v5, %v316_v22  ;;  %v89_v7 = vpop.xlane.xlu2 %88  ;;  %v83_v8 = vpop.xlane.xlu0 %82 }
  0xfb   :  { %v105_v9 = vmul.f32 %v89_v7, %v316_v22  ;;  %v103_v10 = vmul.f32 %v83_v8, %v316_v22 }
  0xfc   :  { %v248_v11 = vpop.eup %247  ;;  %v115_v12 = vadd.f32 1e-05, %v107_v6 }
  0xfd   :  { %v250_v13 = vpop.eup %249  ;;  %v139_v14 = vmul.f32 %v248_v11, %v112_v3  ;;  %v371_v15 = vadd.f32 1e-05, %v105_v9  ;;  %v373_v16 = vadd.f32 1e-05, %v103_v10  ;;  %vm145_vm3 = vweird.f32 %v248_v11 }
  0xfe   :  { %v119_v17 = vmul.f32 %v250_v13, %v110_v4  ;;  %251 = vrsqrt.f32 %v115_v12  ;;  %vm125_vm4 = vweird.f32 %v250_v13  ;;  %vm146_vm5 = vmor %vm144_vm2, %vm145_vm3  ;;  %vm174_vm8 = vweird.f32 %v115_v12 }
  0xff   :  { %v140_v18 = vmul.f32 %v248_v11, %v139_v14  ;;  %253 = vrsqrt.f32 %v371_v15  ;;  %vm126_vm7 = vmor %vm124_vm6, %vm125_vm4  ;;  %vm154_vm10 = vweird.f32 %v371_v15  ;;  %vm134_vm15 = vweird.f32 %v373_v16 }
 0x100   :  { %v120_v19 = vmul.f32 %v250_v13, %v119_v17  ;;  %255 = vrsqrt.f32 %v373_v16 }
 0x101   :  { %v141_v20 = vmul.f32 0.5, %v140_v18 }
 0x102   :  { %v121_v21 = vmul.f32 0.5, %v120_v19  ;;  %v98_v23 = vpop.xlane.xlu2 %97  ;;  %v92_v24 = vpop.xlane.xlu0 %91 }
 0x103   :  { %v142_v25 = vsub.f32 1.5, %v141_v20  ;;  %v108_v26 = vmul.f32 %v98_v23, %v316_v22  ;;  %v106_v27 = vmul.f32 %v92_v24, %v316_v22 }
 0x104   :  { %v252_v30 = vpop.eup %251  ;;  %v122_v31 = vsub.f32 1.5, %v121_v21 }
 0x105   :  { %v254_v32 = vpop.eup %253  ;;  %v143_v33 = vmul.f32 %v248_v11, %v142_v25  ;;  %v169_v34 = vmul.f32 %v252_v30, %v115_v12  ;;  %v379_v35 = vadd.f32 1e-05, %v108_v26  ;;  %v388_v40 = vadd.f32 1e-05, %v106_v27 }
 0x106   :  { %v256_v36 = vpop.eup %255  ;;  %v123_v38 = vmul.f32 %v250_v13, %v122_v31  ;;  %v149_v39 = vmul.f32 %v254_v32, %v371_v15  ;;  %vm175_vm9 = vweird.f32 %v252_v30  ;;  %vm155_vm12 = vweird.f32 %v254_v32 }
 0x107   :  { %v147_v44 = vsel %vm146_vm5, %v248_v11, %v143_v33  ;;  %v170_v45 = vmul.f32 %v252_v30, %v169_v34  ;;  %v129_v47 = vmul.f32 %v256_v36, %v373_v16  ;;  %257 = vrsqrt.f32 %v379_v35  ;;  %vm406_vm11 = vmor %vm174_vm8, %vm175_vm9 }
 0x108   :  { %v200_v49 = vmul.f32 %v147_v44, %v320_v28  ;;  %v127_v50 = vsel %vm126_vm7, %v250_v13, %v123_v38  ;;  %v150_v51 = vmul.f32 %v254_v32, %v149_v39  ;;  %259 = vrsqrt.f32 %v388_v40  ;;  %vm156_vm14 = vmor %vm154_vm10, %vm155_vm12 }
 0x109   :  { %v198_v52 = vmul.f32 %v127_v50, %v322_v29  ;;  %v171_v53 = vmul.f32 0.5, %v170_v45  ;;  %v130_v54 = vmul.f32 %v256_v36, %v129_v47  ;;  %vm135_vm13 = vweird.f32 %v256_v36 }
 0x10a   :  { %v212_v55 = vmul.f32 %v384_v37, %v200_v49  ;;  %v151_v58 = vmul.f32 0.5, %v150_v51  ;;  %v101_v59 = vpop.xlane.xlu0 %100  ;;  %vm136_vm1 = vmor %vm134_vm15, %vm135_vm13  ;;  %vm184_vm2 = vweird.f32 %v379_v35  ;;  %vm164_vm6 = vweird.f32 %v388_v40 }
 0x10b   :  { %v210_v60 = vmul.f32 %v384_v37, %v198_v52  ;;  %v172_v28 = vsub.f32 1.5, %v171_v53  ;;  %v131_v61 = vmul.f32 0.5, %v130_v54  ;;  %v109_v62 = vmul.f32 %v101_v59, %v316_v22 }
 0x10c   :  { %v224_v63 = vadd.f32 %v394_v48, %v212_v55  ;;  %v152_v0 = vsub.f32 1.5, %v151_v58 }
 0x10d   :  { %v222_v1 = vadd.f32 %v394_v48, %v210_v60  ;;  %v173_v2 = vmul.f32 %v252_v30, %v172_v28  ;;  %v132_v3 = vsub.f32 1.5, %v131_v61  ;;  %v117_v4 = vadd.f32 1e-05, %v109_v62  ;;  %v258_v5 = vpop.eup %257 }
 0x10e   :  { %232 = vst.msk [vmem:[%s474_s3 + $0x10] sm:$0xff] %vm22_vm0, %v224_v63  ;;  %v153_v22 = vmul.f32 %v254_v32, %v152_v0  ;;  %v179_v8 = vmul.f32 %v258_v5, %v379_v35  ;;  %v260_v9 = vpop.eup %259  ;;  %vm185_vm3 = vweird.f32 %v258_v5 }
 0x10f   :  { %230 = vst.msk [vmem:[%s474_s3] sm:$0xff] %vm22_vm0, %v222_v1  ;;  %v177_v6 = vsel %vm406_vm11, %v252_v30, %v173_v2  ;;  %v133_v7 = vmul.f32 %v256_v36, %v132_v3  ;;  %261 = vrsqrt.f32 %v117_v4  ;;  %v159_v17 = vmul.f32 %v260_v9, %v388_v40  ;;  %vm186_vm5 = vmor %vm184_vm2, %vm185_vm3 }
 0x110   :  { %v203_v10 = vmul.f32 %v177_v6, %v334_v41  ;;  %v157_v11 = vsel %vm156_vm14, %v254_v32, %v153_v22  ;;  %v180_v14 = vmul.f32 %v258_v5, %v179_v8  ;;  %vm165_vm4 = vweird.f32 %v260_v9 }
 0x111   :  { %v201_v12 = vmul.f32 %v157_v11, %v336_v42  ;;  %v137_v13 = vsel %vm136_vm1, %v256_v36, %v133_v7  ;;  %v160_v20 = vmul.f32 %v260_v9, %v159_v17  ;;  %vm166_vm7 = vmor %vm164_vm6, %vm165_vm4  ;;  %vm194_vm9 = vweird.f32 %v117_v4 }
 0x112   :  { %v215_v15 = vmul.f32 %v384_v37, %v203_v10  ;;  %v199_v18 = vmul.f32 %v137_v13, %v338_v43  ;;  %v181_v19 = vmul.f32 0.5, %v180_v14 }
 0x113   :  { %v213_v16 = vmul.f32 %v384_v37, %v201_v12  ;;  %v161_v24 = vmul.f32 0.5, %v160_v20 }
 0x114   :  { %v227_v41 = vadd.f32 %v394_v48, %v215_v15  ;;  %v211_v21 = vmul.f32 %v384_v37, %v199_v18  ;;  %v182_v23 = vsub.f32 1.5, %v181_v19 }
 0x115   :  { %v225_v42 = vadd.f32 %v394_v48, %v213_v16  ;;  %v262_v25 = vpop.eup %261  ;;  %v162_v27 = vsub.f32 1.5, %v161_v24 }
 0x116   :  { %235 = vst.msk [vmem:[%s474_s3 + $0x28] sm:$0xff] %vm22_vm0, %v227_v41  ;;  %v223_v43 = vadd.f32 %v394_v48, %v211_v21  ;;  %v183_v26 = vmul.f32 %v258_v5, %v182_v23  ;;  %v189_v30 = vmul.f32 %v262_v25, %v117_v4  ;;  %vm195_vm8 = vweird.f32 %v262_v25 }
 0x117   :  { %233 = vst.msk [vmem:[%s474_s3 + $0x18] sm:$0xff] %vm22_vm0, %v225_v42  ;;  %v163_v32 = vmul.f32 %v260_v9, %v162_v27  ;;  %vm196_vm10 = vmor %vm194_vm9, %vm195_vm8 }
 0x118   :  { %231 = vst.msk [vmem:[%s474_s3 + $0x8] sm:$0xff] %vm22_vm0, %v223_v43  ;;  %v187_v31 = vsel %vm186_vm5, %v258_v5, %v183_v26  ;;  %v190_v33 = vmul.f32 %v262_v25, %v189_v30 }
 0x119   :  { %v204_v34 = vmul.f32 %v187_v31, %v355_v56  ;;  %v167_v35 = vsel %vm166_vm7, %v260_v9, %v163_v32 }
 0x11a   :  { %v191_v36 = vmul.f32 0.5, %v190_v33  ;;  %v202_v39 = vmul.f32 %v167_v35, %v344_v46 }
 0x11b   :  { %v216_v38 = vmul.f32 %v384_v37, %v204_v34 }
 0x11c   :  { %v192_v44 = vsub.f32 1.5, %v191_v36  ;;  %v214_v47 = vmul.f32 %v384_v37, %v202_v39 }
 0x11d   :  { %v228_v45 = vadd.f32 %v394_v48, %v216_v38 }
 0x11e   :  { %v193_v49 = vmul.f32 %v262_v25, %v192_v44  ;;  %v226_v56 = vadd.f32 %v394_v48, %v214_v47 }
 0x11f   :  { %236 = vst.msk [vmem:[%s474_s3 + $0x30] sm:$0xff] %vm22_vm0, %v228_v45 }
 0x120   :  { %v197_v40 = vsel %vm196_vm10, %v262_v25, %v193_v49  ;;  %234 = vst.msk [vmem:[%s474_s3 + $0x20] sm:$0xff] %vm22_vm0, %v226_v56 }
 0x121   :  { %v205_v46 = vmul.f32 %v197_v40, %v357_v57 }
 0x123   :  { %v217_v50 = vmul.f32 %v384_v37, %v205_v46 }
 0x125   :  { %v229_v51 = vadd.f32 %v394_v48, %v217_v50 }
 0x127   :  { %237 = vst.msk [vmem:[%s474_s3 + $0x38] sm:$0xff] %vm22_vm0, %v229_v51 }

// kernel: _lambda_.4
= control target key start
LH: loop header
LB: loop body
LE: loop exit
PB: predicated region body
PF: predicated region fallthrough
CT: control target
= control target key end

     0   :  { %s3819_s0 = inlined_call_operand.vmem [shape: f32[64,256], index: 0, kind: input, shape index: {}]   ;;  %s3820_s1 = inlined_call_operand.hbm [shape: f32[2,128,512], index: 1, kind: input, shape index: {}]   ;;  %s3821_s2 = inlined_call_operand.hbm [shape: f32[2,128,512], index: 2, kind: input, shape index: {}]   ;;  %s3822_s3 = inlined_call_operand.vmem [shape: f32[2,1,512], index: 3, kind: input, shape index: {}]   ;;  %s3823_s4 = inlined_call_operand.vmem [shape: f32[64,256], index: 4, kind: output, shape index: {}]  }
   0x1   :  { %3869 = sst [smem:[#allocation56_spill]] %s3819_s0 }
   0x2   :  { %9 = vsyncpa [#allocation7], 0 }
   0x3   :  { %11 = vsyncpa [#allocation7 + $0x1], 0 }
   0x4   :  { %12 = vsyncpa [#allocation9], 0 }
   0x5   :  { %14 = vsyncpa [#allocation9 + $0x1], 0  ;;  %s2577_s15 = smov 0   ;;  %s2579_s16 = smov 0  }
   0x6   :  { %s2581_s17 = smov 0   ;;  %s2583_s18 = smov 0  }
   0x7   :  { %s2585_s19 = smov 0   ;;  %s2587_s20 = smov 0  }
   0x8 LB: > { %s2271_s21 = sadd.s32 4294967295, %s2547_s20   ;;  %s32_s22 = sadd.s32 1, %s2543_s19  ;;  %s2547_s20 = sphi %s2587_s20, %s20_s20   ;;  %s2543_s19 = sphi %s2585_s19, %s3979_s19   ;;  %s2539_s18 = sphi %s2583_s18, %s3978_s18   ;;  %s2535_s17 = sphi %s2581_s17, %s3977_s17   ;;  %s2531_s16 = sphi %s2579_s16, %s3976_s16   ;;  %s2527_s15 = sphi %s2577_s15, %s3975_s15  }
   0x9   : > { %p34_p0 = scmp.ge.s32.totalorder %s32_s22, 2  ;;  %s41_s23 = sadd.s32 1, %s2535_s17 }
   0xa   : > { %p48_p1 = scmp.ne.s32.totalorder %s2535_s17, %s2531_s16  ;;  %p49_p2 = scmp.eq.s32.totalorder %s2547_s20, 0 }
   0xb   : > { %s3981_s22 = smov (%p34_p0, %s32_s22), 0  ;;  %p80_p4 = scmp.ne.s32.totalorder %s2531_s16, %s2527_s15 }
   0xc   : > { %3870 = sst [smem:[#allocation13_spill]] %s3981_s22  ;;  %p2613_p3 = por %p49_p2, %p48_p1 }
   0xd   : > { %s37_s25 = ssub.s32 %s2543_s19, %s3981_s22  ;;  %p81_p5 = scmp.eq.s32.totalorder %s2271_s21, 0 }
   0xe   : > { %p39_p6 = scmp.eq.s32.totalorder %s37_s25, 0  ;;  %p158_p7 = scmp.eq.s32.totalorder %s2271_s21, 1 }
   0xf   : > { %p2620_p8 = por %p81_p5, %p80_p4  ;;  %p2274_p10 = scmp.ge.s32.totalorder %s2547_s20, 2 }
  0x10   : > { %s2625_s27 = scalar_select %p39_p6, %s2535_s17, %s41_s23  }
  0x11   : > { %p2627_p9 = por %p158_p7, %p48_p1  ;;  %180 = sbr.rel (%p2274_p10) target bundleno = 50 (0x32), region = 16 }
  0x16   : > { %183 = sbr.rel (!%p2613_p3) target bundleno = 40 (0x28), region = 20  ;;  %s185_s29 = sand.u32 (%p2613_p3), 1, %s2535_s17  }
  0x17   : > { %s2276_s30 = sshll.u32 (%p2613_p3), %s2543_s19, 3  ;;  %s2275_s5 = sshll.u32 (%p2613_p3), %s185_s29, 6 }
  0x18   : > { %s3874_s0 = sld [smem:[#allocation56_spill]] (%p2613_p3)  ;;  %s187_s9 = scalar_lea.vmem (%p2613_p3), [#allocation5], %s2275_s5 }
  0x1e   : > { %s192_s8 = scalar_lea.vmem %s3874_s0, %s2276_s30 }
  0x1f   : > { %v235_v0 = vld [vmem:[%s192_s8] sm:$0xff]  ;;  %v237_v1 = vld [vmem:[%s192_s8 + $0x10] sm:$0xff] }
  0x20   : > { %v239_v2 = vld [vmem:[%s192_s8 + $0x20] sm:$0xff]  ;;  %236 = vst [vmem:[%s187_s9] sm:$0xff] %v235_v0  ;;  %v241_v3 = vld [vmem:[%s192_s8 + $0x30] sm:$0xff] }
  0x21   : > { %238 = vst [vmem:[%s187_s9 + $0x8] sm:$0xff] %v237_v1  ;;  %v243_v4 = vld [vmem:[%s192_s8 + $0x40] sm:$0xff]  ;;  %v245_v5 = vld [vmem:[%s192_s8 + $0x50] sm:$0xff] }
  0x22   : > { %240 = vst [vmem:[%s187_s9 + $0x10] sm:$0xff] %v239_v2  ;;  %v247_v6 = vld [vmem:[%s192_s8 + $0x60] sm:$0xff]  ;;  %v249_v7 = vld [vmem:[%s192_s8 + $0x70] sm:$0xff] }
  0x23   : > { %242 = vst [vmem:[%s187_s9 + $0x18] sm:$0xff] %v241_v3 }
  0x24   : > { %244 = vst [vmem:[%s187_s9 + $0x20] sm:$0xff] %v243_v4 }
  0x25   : > { %246 = vst [vmem:[%s187_s9 + $0x28] sm:$0xff] %v245_v5 }
  0x26   : > { %248 = vst [vmem:[%s187_s9 + $0x30] sm:$0xff] %v247_v6 }
  0x27   : > { %250 = vst [vmem:[%s187_s9 + $0x38] sm:$0xff] %v249_v7 }
  0x28 PF: > { %s257_s10 = sand.u32 1, %s2535_s17   ;;  %s2300_s11 = sshll.u32 %s2543_s19, 9 }
  0x29   : > { %s2277_s12 = sshll.u32 %s257_s10, 9  ;;  %s266_s15 = scalar_lea.hbm %s3820_s1, %s2300_s11 }
  0x2a   : > { %s267_s21 = sshll.u32 %s266_s15, 4  ;;  %s261_s23 = scalar_lea.vmem [#allocation6], %s2277_s12  ;;  %s268_s21 = int_to_ptr.hbm [resolvable:$true] %s267_s21 }
  0x2b   : > { %s269_s25 = sshll.u32 %s261_s23, 4  ;;  %s258_s29 = scalar_lea.sflag [#allocation7], %s257_s10  ;;  %s270_s25 = int_to_ptr.vmem [resolvable:$true] %s269_s25 }
  0x2c   : > { %s2549_s30 = smov 512   ;;  %s2550_s5 = smov 32  }
  0x2d   : > { %2302 = dma.hbm_to_vmem [thread:$0]  (%p2613_p3), %s268_s21, 8192, %s270_s25, %s258_s29, %s2549_s30, %s2549_s30, %s2550_s5  }
  0x2e   : > { %s288_s8 = scalar_lea.hbm %s3821_s2, %s2300_s11  ;;  %s283_s9 = scalar_lea.vmem [#allocation8], %s2277_s12 }
  0x2f   : > { %s291_s0 = sshll.u32 %s283_s9, 4  ;;  %s289_s22 = sshll.u32 %s288_s8, 4  ;;  %s292_s0 = int_to_ptr.vmem [resolvable:$true] %s291_s0  ;;  %s290_s22 = int_to_ptr.hbm [resolvable:$true] %s289_s22 }
  0x30   : > { %s280_s13 = scalar_lea.sflag [#allocation9], %s257_s10 }
  0x31   : > { %2303 = dma.hbm_to_vmem [thread:$0]  (%p2613_p3), %s290_s22, 8192, %s292_s0, %s280_s13, %s2549_s30, %s2549_s30, %s2550_s5  }
  0x32 PF: > { %p2283_p11 = scmp.ge.s32.totalorder %s2547_s20, 1  ;;  %p306_p12 = scmp.lt.s32.totalorder %s2547_s20, 3 }
  0x34   : > { %p307_p13 = pnand %p2283_p11, %p306_p12 }
  0x36   : > { %310 = sbr.rel (%p307_p13) target bundleno = 1412 (0x584), region = 70 }
  0x3b   : > { %s2654_s14 = sand.u32 1, %s2531_s16  }
  0x3c   : > { %s2284_s11 = sshll.u32 %s2654_s14, 6  ;;  %s2285_s12 = sshll.u32 %s2654_s14, 9 }
  0x3d   : > { %s2660_s24 = scalar_lea.vmem [#allocation5], %s2284_s11  ;;  %s320_s0 = scalar_lea.sflag [#allocation7], %s2654_s14 }
  0x3e   : > { %s2663_s22 = scalar_lea.vmem [#allocation6], %s2285_s12 }
  0x3f   : > { %2518 = dma.done.wait (%p2620_p8), %s320_s0, 8192  }
  0x40   : > { %2520 = vsyncadd (%p2620_p8), %s320_s0, 4294959104  ;;  %s330_s10 = scalar_lea.sflag [#allocation9], %s2654_s14  ;;  %s2670_s15 = scalar_lea.vmem [#allocation8], %s2285_s12 }
  0x41   : > { %2522 = dma.done.wait (%p2620_p8), %s330_s10, 8192  }
  0x42   : > { %2524 = vsyncadd (%p2620_p8), %s330_s10, 4294959104  ;;  %v451_v8 = vld [vmem:[%s2663_s22 + $0x1e0] sm:$0xff]  ;;  %v452_v9 = vld [vmem:[%s2663_s22 + $0x1e8] sm:$0xff]  ;;  %p372_p0 = scmp.lt.s32.totalorder %s2539_s18, 1  ;;  %s3221_s30 = scalar_lea.vmem [#allocation10], %s2284_s11 }
  0x43   : > { %v453_v10 = vld [vmem:[%s2663_s22 + $0x1f0] sm:$0xff]  ;;  %465 = vmatpush.msra.mxu0 %v451_v8  ;;  %506 = vmatpush.msra.mxu1 %v452_v9  ;;  %v454_v11 = vld [vmem:[%s2663_s22 + $0x1f8] sm:$0xff]  ;;  %v447_v12 = vld [vmem:[%s2663_s22 + $0x1c0] sm:$0xff]  ;;  %s2297_s5 = sshll.u32 (%p2627_p9), %s2539_s18, 3 }
  0x44   : > { %v448_v13 = vld [vmem:[%s2663_s22 + $0x1c8] sm:$0xff]  ;;  %547 = vmatpush.msra.mxu2 %v453_v10  ;;  %588 = vmatpush.msra.mxu3 %v454_v11  ;;  %v449_v14 = vld [vmem:[%s2663_s22 + $0x1d0] sm:$0xff]  ;;  %v450_v15 = vld [vmem:[%s2663_s22 + $0x1d8] sm:$0xff]  ;;  %s373_s26 = scalar_select %p372_p0, %s2539_s18, 1 }
  0x45   : > { %v443_v16 = vld [vmem:[%s2663_s22 + $0x1a0] sm:$0xff]  ;;  %466 = vmatpush.msra.mxu0 %v447_v12  ;;  %507 = vmatpush.msra.mxu1 %v448_v13  ;;  %v444_v17 = vld [vmem:[%s2663_s22 + $0x1a8] sm:$0xff]  ;;  %v445_v18 = vld [vmem:[%s2663_s22 + $0x1b0] sm:$0xff]  ;;  %s2075_s8 = scalar_lea.vmem (%p2627_p9), %s3823_s4, %s2297_s5 }
  0x46   : > { %v446_v19 = vld [vmem:[%s2663_s22 + $0x1b8] sm:$0xff]  ;;  %548 = vmatpush.msra.mxu2 %v449_v14  ;;  %589 = vmatpush.msra.mxu3 %v450_v15  ;;  %v439_v20 = vld [vmem:[%s2663_s22 + $0x180] sm:$0xff]  ;;  %v440_v21 = vld [vmem:[%s2663_s22 + $0x188] sm:$0xff]  ;;  %s2288_s21 = sshll.u32 %s373_s26, 2 }
  0x47   : > { %467 = vmatpush.msra.mxu0 %v443_v16  ;;  %508 = vmatpush.msra.mxu1 %v444_v17  ;;  %v441_v22 = vld [vmem:[%s2663_s22 + $0x190] sm:$0xff]  ;;  %v442_v23 = vld [vmem:[%s2663_s22 + $0x198] sm:$0xff]  ;;  %v435_v24 = vld [vmem:[%s2663_s22 + $0x160] sm:$0xff]  ;;  %s375_s29 = scalar_lea.vmem %s3822_s3, %s2288_s21 }
  0x48   : > { %549 = vmatpush.msra.mxu2 %v445_v18  ;;  %590 = vmatpush.msra.mxu3 %v446_v19  ;;  %v436_v25 = vld [vmem:[%s2663_s22 + $0x168] sm:$0xff]  ;;  %v437_v26 = vld [vmem:[%s2663_s22 + $0x170] sm:$0xff]  ;;  %v438_v27 = vld [vmem:[%s2663_s22 + $0x178] sm:$0xff] }
  0x49   : > { %468 = vmatpush.msra.mxu0 %v439_v20  ;;  %509 = vmatpush.msra.mxu1 %v440_v21  ;;  %v431_v28 = vld [vmem:[%s2663_s22 + $0x140] sm:$0xff]  ;;  %v432_v29 = vld [vmem:[%s2663_s22 + $0x148] sm:$0xff]  ;;  %v433_v30 = vld [vmem:[%s2663_s22 + $0x150] sm:$0xff] }
  0x4a   : > { %550 = vmatpush.msra.mxu2 %v441_v22  ;;  %591 = vmatpush.msra.mxu3 %v442_v23  ;;  %v434_v31 = vld [vmem:[%s2663_s22 + $0x158] sm:$0xff]  ;;  %v427_v32 = vld [vmem:[%s2663_s22 + $0x120] sm:$0xff]  ;;  %v428_v33 = vld [vmem:[%s2663_s22 + $0x128] sm:$0xff] }
  0x4b   : > { %469 = vmatpush.msra.mxu0 %v435_v24  ;;  %510 = vmatpush.msra.mxu1 %v436_v25  ;;  %v429_v34 = vld [vmem:[%s2663_s22 + $0x130] sm:$0xff]  ;;  %v430_v35 = vld [vmem:[%s2663_s22 + $0x138] sm:$0xff]  ;;  %v423_v36 = vld [vmem:[%s2663_s22 + $0x100] sm:$0xff] }
  0x4c   : > { %551 = vmatpush.msra.mxu2 %v437_v26  ;;  %592 = vmatpush.msra.mxu3 %v438_v27  ;;  %v424_v37 = vld [vmem:[%s2663_s22 + $0x108] sm:$0xff]  ;;  %v425_v38 = vld [vmem:[%s2663_s22 + $0x110] sm:$0xff]  ;;  %v426_v39 = vld [vmem:[%s2663_s22 + $0x118] sm:$0xff] }
  0x4d   : > { %470 = vmatpush.msra.mxu0 %v431_v28  ;;  %511 = vmatpush.msra.mxu1 %v432_v29  ;;  %v419_v40 = vld [vmem:[%s2663_s22 + $0xe0] sm:$0xff]  ;;  %v420_v41 = vld [vmem:[%s2663_s22 + $0xe8] sm:$0xff]  ;;  %v421_v42 = vld [vmem:[%s2663_s22 + $0xf0] sm:$0xff] }
  0x4e   : > { %552 = vmatpush.msra.mxu2 %v433_v30  ;;  %593 = vmatpush.msra.mxu3 %v434_v31  ;;  %v422_v43 = vld [vmem:[%s2663_s22 + $0xf8] sm:$0xff]  ;;  %v415_v44 = vld [vmem:[%s2663_s22 + $0xc0] sm:$0xff]  ;;  %v416_v45 = vld [vmem:[%s2663_s22 + $0xc8] sm:$0xff] }
  0x4f   : > { %471 = vmatpush.msra.mxu0 %v427_v32  ;;  %512 = vmatpush.msra.mxu1 %v428_v33  ;;  %v417_v46 = vld [vmem:[%s2663_s22 + $0xd0] sm:$0xff]  ;;  %v418_v47 = vld [vmem:[%s2663_s22 + $0xd8] sm:$0xff]  ;;  %v411_v48 = vld [vmem:[%s2663_s22 + $0xa0] sm:$0xff] }
  0x50   : > { %553 = vmatpush.msra.mxu2 %v429_v34  ;;  %594 = vmatpush.msra.mxu3 %v430_v35  ;;  %v412_v49 = vld [vmem:[%s2663_s22 + $0xa8] sm:$0xff]  ;;  %v413_v50 = vld [vmem:[%s2663_s22 + $0xb0] sm:$0xff]  ;;  %v414_v51 = vld [vmem:[%s2663_s22 + $0xb8] sm:$0xff] }
  0x51   : > { %472 = vmatpush.msra.mxu0 %v423_v36  ;;  %513 = vmatpush.msra.mxu1 %v424_v37  ;;  %v407_v52 = vld [vmem:[%s2663_s22 + $0x80] sm:$0xff]  ;;  %v408_v53 = vld [vmem:[%s2663_s22 + $0x88] sm:$0xff]  ;;  %v409_v54 = vld [vmem:[%s2663_s22 + $0x90] sm:$0xff] }
  0x52   : > { %554 = vmatpush.msra.mxu2 %v425_v38  ;;  %595 = vmatpush.msra.mxu3 %v426_v39  ;;  %v410_v55 = vld [vmem:[%s2663_s22 + $0x98] sm:$0xff]  ;;  %v403_v56 = vld [vmem:[%s2663_s22 + $0x60] sm:$0xff]  ;;  %v404_v57 = vld [vmem:[%s2663_s22 + $0x68] sm:$0xff] }
  0x53   : > { %473 = vmatpush.msra.mxu0 %v419_v40  ;;  %514 = vmatpush.msra.mxu1 %v420_v41  ;;  %v405_v58 = vld [vmem:[%s2663_s22 + $0x70] sm:$0xff]  ;;  %v406_v59 = vld [vmem:[%s2663_s22 + $0x78] sm:$0xff]  ;;  %v399_v60 = vld [vmem:[%s2663_s22 + $0x40] sm:$0xff] }
  0x54   : > { %555 = vmatpush.msra.mxu2 %v421_v42  ;;  %596 = vmatpush.msra.mxu3 %v422_v43  ;;  %v400_v61 = vld [vmem:[%s2663_s22 + $0x48] sm:$0xff]  ;;  %v401_v62 = vld [vmem:[%s2663_s22 + $0x50] sm:$0xff]  ;;  %v402_v63 = vld [vmem:[%s2663_s22 + $0x58] sm:$0xff] }
  0x55   : > { %474 = vmatpush.msra.mxu0 %v415_v44  ;;  %515 = vmatpush.msra.mxu1 %v416_v45  ;;  %v395_v0 = vld [vmem:[%s2663_s22 + $0x20] sm:$0xff]  ;;  %v396_v1 = vld [vmem:[%s2663_s22 + $0x28] sm:$0xff]  ;;  %v397_v2 = vld [vmem:[%s2663_s22 + $0x30] sm:$0xff] }
  0x56   : > { %556 = vmatpush.msra.mxu2 %v417_v46  ;;  %597 = vmatpush.msra.mxu3 %v418_v47  ;;  %v398_v3 = vld [vmem:[%s2663_s22 + $0x38] sm:$0xff]  ;;  %v391_v4 = vld [vmem:[%s2663_s22] sm:$0xff]  ;;  %v392_v5 = vld [vmem:[%s2663_s22 + $0x8] sm:$0xff] }
  0x57   : > { %475 = vmatpush.msra.mxu0 %v411_v48  ;;  %516 = vmatpush.msra.mxu1 %v412_v49  ;;  %v393_v6 = vld [vmem:[%s2663_s22 + $0x10] sm:$0xff]  ;;  %v394_v7 = vld [vmem:[%s2663_s22 + $0x18] sm:$0xff]  ;;  %v383_v8 = vld [vmem:[%s2660_s24] sm:$0xff] }
  0x58   : > { %557 = vmatpush.msra.mxu2 %v413_v50  ;;  %598 = vmatpush.msra.mxu3 %v414_v51  ;;  %v2742_v9 = vld [vmem:[%s2670_s15 + $0x1e0] sm:$0xff]  ;;  %v2745_v10 = vld [vmem:[%s2670_s15 + $0x1e8] sm:$0xff]  ;;  %v2748_v11 = vld [vmem:[%s2670_s15 + $0x1f8] sm:$0xff] }
  0x59   : > { %476 = vmatpush.msra.mxu0 %v407_v52  ;;  %517 = vmatpush.msra.mxu1 %v408_v53  ;;  %v2751_v12 = vld [vmem:[%s2670_s15 + $0x1f0] sm:$0xff]  ;;  %v2754_v13 = vld [vmem:[%s2670_s15 + $0x1c0] sm:$0xff]  ;;  %v2757_v14 = vld [vmem:[%s2670_s15 + $0x1c8] sm:$0xff] }
  0x5a   : > { %558 = vmatpush.msra.mxu2 %v409_v54  ;;  %599 = vmatpush.msra.mxu3 %v410_v55  ;;  %v2762_v15 = vld [vmem:[%s2670_s15 + $0x1d8] sm:$0xff]  ;;  %v2765_v16 = vld [vmem:[%s2670_s15 + $0x1d0] sm:$0xff]  ;;  %v2770_v17 = vld [vmem:[%s2670_s15 + $0x1a0] sm:$0xff] }
  0x5b   : > { %477 = vmatpush.msra.mxu0 %v403_v56  ;;  %518 = vmatpush.msra.mxu1 %v404_v57  ;;  %v2773_v18 = vld [vmem:[%s2670_s15 + $0x1a8] sm:$0xff]  ;;  %v2778_v19 = vld [vmem:[%s2670_s15 + $0x1b8] sm:$0xff]  ;;  %v2781_v20 = vld [vmem:[%s2670_s15 + $0x1b0] sm:$0xff] }
  0x5c   : > { %559 = vmatpush.msra.mxu2 %v405_v58  ;;  %600 = vmatpush.msra.mxu3 %v406_v59  ;;  %v384_v21 = vld [vmem:[%s2660_s24 + $0x8] sm:$0xff]  ;;  %v2790_v22 = vld [vmem:[%s2670_s15 + $0x180] sm:$0xff]  ;;  %v2797_v24 = vld [vmem:[%s2670_s15 + $0x198] sm:$0xff] }
  0x5d   : > { %478 = vmatpush.msra.mxu0 %v399_v60  ;;  %519 = vmatpush.msra.mxu1 %v400_v61  ;;  %v2793_v23 = vld [vmem:[%s2670_s15 + $0x188] sm:$0xff]  ;;  %v2800_v25 = vld [vmem:[%s2670_s15 + $0x190] sm:$0xff]  ;;  %v2803_v26 = vld [vmem:[%s2670_s15 + $0x160] sm:$0xff] }
  0x5e   : > { %560 = vmatpush.msra.mxu2 %v401_v62  ;;  %601 = vmatpush.msra.mxu3 %v402_v63  ;;  %v2806_v27 = vld [vmem:[%s2670_s15 + $0x168] sm:$0xff]  ;;  %v2811_v28 = vld [vmem:[%s2670_s15 + $0x178] sm:$0xff]  ;;  %v2814_v29 = vld [vmem:[%s2670_s15 + $0x170] sm:$0xff] }
  0x5f   : > { %479 = vmatpush.msra.mxu0 %v395_v0  ;;  %520 = vmatpush.msra.mxu1 %v396_v1  ;;  %v2819_v30 = vld [vmem:[%s2670_s15 + $0x140] sm:$0xff]  ;;  %v2822_v31 = vld [vmem:[%s2670_s15 + $0x148] sm:$0xff]  ;;  %v2827_v32 = vld [vmem:[%s2670_s15 + $0x158] sm:$0xff] }
  0x60   : > { %561 = vmatpush.msra.mxu2 %v397_v2  ;;  %602 = vmatpush.msra.mxu3 %v398_v3  ;;  %v2830_v33 = vld [vmem:[%s2670_s15 + $0x150] sm:$0xff]  ;;  %v2839_v35 = vld [vmem:[%s2670_s15 + $0x120] sm:$0xff]  ;;  %v2842_v36 = vld [vmem:[%s2670_s15 + $0x128] sm:$0xff] }
  0x61   : > { %480 = vmatpush.msra.mxu0 %v391_v4  ;;  %521 = vmatpush.msra.mxu1 %v392_v5  ;;  %v385_v34 = vld [vmem:[%s2660_s24 + $0x10] sm:$0xff]  ;;  %v2846_v37 = vld [vmem:[%s2670_s15 + $0x138] sm:$0xff]  ;;  %v2852_v39 = vld [vmem:[%s2670_s15 + $0x100] sm:$0xff] }
  0x62   : > { %562 = vmatpush.msra.mxu2 %v393_v6  ;;  %603 = vmatpush.msra.mxu3 %v394_v7  ;;  %v2849_v38 = vld [vmem:[%s2670_s15 + $0x130] sm:$0xff]  ;;  %v2855_v40 = vld [vmem:[%s2670_s15 + $0x108] sm:$0xff]  ;;  %v2860_v41 = vld [vmem:[%s2670_s15 + $0x118] sm:$0xff] }
  0x63   : > { %481 = vmatmul.f32.vlgmr.msra.gmra.mxu0 %v383_v8  ;;  %522 = vmatmul.f32.vlgmr.msra.gmra.mxu1 %v383_v8  ;;  %v2863_v42 = vld [vmem:[%s2670_s15 + $0x110] sm:$0xff]  ;;  %v2868_v43 = vld [vmem:[%s2670_s15 + $0xe0] sm:$0xff]  ;;  %v2871_v44 = vld [vmem:[%s2670_s15 + $0xe8] sm:$0xff] }
  0x64   : > { %563 = vmatmul.f32.vlgmr.msra.gmra.mxu2 %v383_v8  ;;  %604 = vmatmul.f32.vlgmr.msra.gmra.mxu3 %v383_v8  ;;  %v2876_v45 = vld [vmem:[%s2670_s15 + $0xf8] sm:$0xff]  ;;  %v2879_v46 = vld [vmem:[%s2670_s15 + $0xf0] sm:$0xff]  ;;  %v2888_v48 = vld [vmem:[%s2670_s15 + $0xc0] sm:$0xff] }
  0x65   : > { %734 = vmatpush.msrb.mxu0 %v2742_v9  ;;  %754 = vmatpush.msrb.mxu1 %v2745_v10  ;;  %v386_v47 = vld [vmem:[%s2660_s24 + $0x18] sm:$0xff]  ;;  %v2891_v49 = vld [vmem:[%s2670_s15 + $0xc8] sm:$0xff]  ;;  %v2898_v51 = vld [vmem:[%s2670_s15 + $0xd0] sm:$0xff] }
  0x66   : > { %794 = vmatpush.msrb.mxu3 %v2748_v11  ;;  %774 = vmatpush.msrb.mxu2 %v2751_v12  ;;  %v2895_v50 = vld [vmem:[%s2670_s15 + $0xd8] sm:$0xff]  ;;  %v2901_v52 = vld [vmem:[%s2670_s15 + $0xa0] sm:$0xff]  ;;  %v2904_v53 = vld [vmem:[%s2670_s15 + $0xa8] sm:$0xff] }
  0x67   : > { %735 = vmatpush.msrb.mxu0 %v2754_v13  ;;  %755 = vmatpush.msrb.mxu1 %v2757_v14  ;;  %v2909_v54 = vld [vmem:[%s2670_s15 + $0xb8] sm:$0xff]  ;;  %v2912_v55 = vld [vmem:[%s2670_s15 + $0xb0] sm:$0xff]  ;;  %v2917_v56 = vld [vmem:[%s2670_s15 + $0x80] sm:$0xff] }
  0x68   : > { %795 = vmatpush.msrb.mxu3 %v2762_v15  ;;  %775 = vmatpush.msrb.mxu2 %v2765_v16  ;;  %v2920_v57 = vld [vmem:[%s2670_s15 + $0x88] sm:$0xff]  ;;  %v2925_v58 = vld [vmem:[%s2670_s15 + $0x98] sm:$0xff]  ;;  %v2928_v59 = vld [vmem:[%s2670_s15 + $0x90] sm:$0xff] }
  0x69   : > { %736 = vmatpush.msrb.mxu0 %v2770_v17  ;;  %756 = vmatpush.msrb.mxu1 %v2773_v18  ;;  %v387_v60 = vld [vmem:[%s2660_s24 + $0x20] sm:$0xff]  ;;  %v2940_v62 = vld [vmem:[%s2670_s15 + $0x68] sm:$0xff]  ;;  %v2944_v63 = vld [vmem:[%s2670_s15 + $0x78] sm:$0xff] }
  0x6a   : > { %796 = vmatpush.msrb.mxu3 %v2778_v19  ;;  %776 = vmatpush.msrb.mxu2 %v2781_v20  ;;  %v2937_v61 = vld [vmem:[%s2670_s15 + $0x60] sm:$0xff]  ;;  %v2947_v0 = vld [vmem:[%s2670_s15 + $0x70] sm:$0xff]  ;;  %v2953_v2 = vld [vmem:[%s2670_s15 + $0x48] sm:$0xff] }
  0x6b   : > { %484 = vmatmul.f32.gmra.mxu0 %v384_v21  ;;  %525 = vmatmul.f32.gmra.mxu1 %v384_v21  ;;  %v2950_v1 = vld [vmem:[%s2670_s15 + $0x40] sm:$0xff]  ;;  %v2958_v3 = vld [vmem:[%s2670_s15 + $0x58] sm:$0xff]  ;;  %v2961_v4 = vld [vmem:[%s2670_s15 + $0x50] sm:$0xff] }
  0x6c   : > { %566 = vmatmul.f32.gmra.mxu2 %v384_v21  ;;  %607 = vmatmul.f32.gmra.mxu3 %v384_v21  ;;  %3875 = vst [vmem:[#allocation14_spill] sm:$0xff] %v2958_v3  ;;  %v2966_v5 = vld [vmem:[%s2670_s15 + $0x20] sm:$0xff]  ;;  %v2969_v6 = vld [vmem:[%s2670_s15 + $0x28] sm:$0xff]  ;;  %v2974_v7 = vld [vmem:[%s2670_s15 + $0x38] sm:$0xff] }
  0x6d   : > { %737 = vmatpush.msrb.mxu0 %v2790_v22  ;;  %757 = vmatpush.msrb.mxu1 %v2793_v23  ;;  %3876 = vst [vmem:[#allocation15_spill] sm:$0xff] %v2974_v7  ;;  %v2977_v8 = vld [vmem:[%s2670_s15 + $0x30] sm:$0xff]  ;;  %v388_v21 = vld [vmem:[%s2660_s24 + $0x28] sm:$0xff] }
  0x6e   : > { %797 = vmatpush.msrb.mxu3 %v2797_v24  ;;  %777 = vmatpush.msrb.mxu2 %v2800_v25 }
  0x6f   : > { %738 = vmatpush.msrb.mxu0 %v2803_v26  ;;  %758 = vmatpush.msrb.mxu1 %v2806_v27 }
  0x70   : > { %798 = vmatpush.msrb.mxu3 %v2811_v28  ;;  %778 = vmatpush.msrb.mxu2 %v2814_v29 }
  0x71   : > { %739 = vmatpush.msrb.mxu0 %v2819_v30  ;;  %759 = vmatpush.msrb.mxu1 %v2822_v31 }
  0x72   : > { %799 = vmatpush.msrb.mxu3 %v2827_v32  ;;  %779 = vmatpush.msrb.mxu2 %v2830_v33 }
  0x73   : > { %487 = vmatmul.f32.gmra.mxu0 %v385_v34  ;;  %528 = vmatmul.f32.gmra.mxu1 %v385_v34 }
  0x74   : > { %569 = vmatmul.f32.gmra.mxu2 %v385_v34  ;;  %610 = vmatmul.f32.gmra.mxu3 %v385_v34  ;;  %v2986_v34 = vld [vmem:[%s2670_s15] sm:$0xff] }
  0x75   : > { %740 = vmatpush.msrb.mxu0 %v2839_v35  ;;  %760 = vmatpush.msrb.mxu1 %v2842_v36 }
  0x76   : > { %800 = vmatpush.msrb.mxu3 %v2846_v37  ;;  %780 = vmatpush.msrb.mxu2 %v2849_v38 }
  0x77   : > { %741 = vmatpush.msrb.mxu0 %v2852_v39  ;;  %761 = vmatpush.msrb.mxu1 %v2855_v40 }
  0x78   : > { %801 = vmatpush.msrb.mxu3 %v2860_v41  ;;  %781 = vmatpush.msrb.mxu2 %v2863_v42 }
  0x79   : > { %742 = vmatpush.msrb.mxu0 %v2868_v43  ;;  %762 = vmatpush.msrb.mxu1 %v2871_v44 }
  0x7a   : > { %802 = vmatpush.msrb.mxu3 %v2876_v45  ;;  %782 = vmatpush.msrb.mxu2 %v2879_v46 }
  0x7b   : > { %490 = vmatmul.f32.gmra.mxu0 %v386_v47  ;;  %531 = vmatmul.f32.gmra.mxu1 %v386_v47 }
  0x7c   : > { %572 = vmatmul.f32.gmra.mxu2 %v386_v47  ;;  %613 = vmatmul.f32.gmra.mxu3 %v386_v47  ;;  %v2989_v47 = vld [vmem:[%s2670_s15 + $0x8] sm:$0xff] }
  0x7d   : > { %743 = vmatpush.msrb.mxu0 %v2888_v48  ;;  %763 = vmatpush.msrb.mxu1 %v2891_v49 }
  0x7e   : > { %803 = vmatpush.msrb.mxu3 %v2895_v50  ;;  %783 = vmatpush.msrb.mxu2 %v2898_v51 }
  0x7f   : > { %744 = vmatpush.msrb.mxu0 %v2901_v52  ;;  %764 = vmatpush.msrb.mxu1 %v2904_v53 }
  0x80   : > { %804 = vmatpush.msrb.mxu3 %v2909_v54  ;;  %784 = vmatpush.msrb.mxu2 %v2912_v55 }
  0x81   : > { %745 = vmatpush.msrb.mxu0 %v2917_v56  ;;  %765 = vmatpush.msrb.mxu1 %v2920_v57 }
  0x82   : > { %805 = vmatpush.msrb.mxu3 %v2925_v58  ;;  %785 = vmatpush.msrb.mxu2 %v2928_v59 }
  0x83   : > { %493 = vmatmul.f32.gmra.mxu0 %v387_v60  ;;  %534 = vmatmul.f32.gmra.mxu1 %v387_v60 }
  0x84   : > { %575 = vmatmul.f32.gmra.mxu2 %v387_v60  ;;  %616 = vmatmul.f32.gmra.mxu3 %v387_v60  ;;  %v2993_v60 = vld [vmem:[%s2670_s15 + $0x18] sm:$0xff] }
  0x85   : > { %746 = vmatpush.msrb.mxu0 %v2937_v61  ;;  %766 = vmatpush.msrb.mxu1 %v2940_v62 }
  0x86   : > { %806 = vmatpush.msrb.mxu3 %v2944_v63  ;;  %786 = vmatpush.msrb.mxu2 %v2947_v0 }
  0x87   : > { %747 = vmatpush.msrb.mxu0 %v2950_v1  ;;  %767 = vmatpush.msrb.mxu1 %v2953_v2 }
  0x88   : > { %807 = vmatpush.msrb.mxu3 %v2958_v3  ;;  %787 = vmatpush.msrb.mxu2 %v2961_v4  ;;  %v2996_v3 = vld [vmem:[%s2670_s15 + $0x10] sm:$0xff] }
  0x89   : > { %748 = vmatpush.msrb.mxu0 %v2966_v5  ;;  %768 = vmatpush.msrb.mxu1 %v2969_v6 }
  0x8a   : > { %808 = vmatpush.msrb.mxu3 %v2974_v7  ;;  %788 = vmatpush.msrb.mxu2 %v2977_v8  ;;  %v389_v7 = vld [vmem:[%s2660_s24 + $0x30] sm:$0xff] }
  0x8b   : > { %496 = vmatmul.f32.gmra.mxu0 %v388_v21  ;;  %537 = vmatmul.f32.gmra.mxu1 %v388_v21 }
  0x8c   : > { %578 = vmatmul.f32.gmra.mxu2 %v388_v21  ;;  %619 = vmatmul.f32.gmra.mxu3 %v388_v21  ;;  %v390_v21 = vld [vmem:[%s2660_s24 + $0x38] sm:$0xff] }
  0x8d   : > { %749 = vmatpush.msrb.mxu0 %v2986_v34  ;;  %769 = vmatpush.msrb.mxu1 %v2989_v47 }
  0x8e   : > { %809 = vmatpush.msrb.mxu3 %v2993_v60  ;;  %789 = vmatpush.msrb.mxu2 %v2996_v3 }
  0x8f   : > { %908 = vmatpush.msra.mxu0 %v2742_v9  ;;  %928 = vmatpush.msra.mxu1 %v2745_v10 }
  0x90   : > { %948 = vmatpush.msra.mxu2 %v2751_v12  ;;  %968 = vmatpush.msra.mxu3 %v2748_v11 }
  0x91   : > { %909 = vmatpush.msra.mxu0 %v2754_v13  ;;  %929 = vmatpush.msra.mxu1 %v2757_v14 }
  0x92   : > { %949 = vmatpush.msra.mxu2 %v2765_v16  ;;  %969 = vmatpush.msra.mxu3 %v2762_v15 }
  0x93   : > { %499 = vmatmul.f32.gmra.mxu0 %v389_v7  ;;  %540 = vmatmul.f32.gmra.mxu1 %v389_v7 }
  0x94   : > { %581 = vmatmul.f32.gmra.mxu2 %v389_v7  ;;  %622 = vmatmul.f32.gmra.mxu3 %v389_v7  ;;  %v2551_v7 = vmov 0.0  }
  0x95   : > { %910 = vmatpush.msra.mxu0 %v2770_v17  ;;  %930 = vmatpush.msra.mxu1 %v2773_v18 }
  0x96   : > { %950 = vmatpush.msra.mxu2 %v2781_v20  ;;  %970 = vmatpush.msra.mxu3 %v2778_v19 }
  0x97   : > { %911 = vmatpush.msra.mxu0 %v2790_v22  ;;  %931 = vmatpush.msra.mxu1 %v2793_v23 }
  0x98   : > { %951 = vmatpush.msra.mxu2 %v2800_v25  ;;  %971 = vmatpush.msra.mxu3 %v2797_v24 }
  0x99   : > { %912 = vmatpush.msra.mxu0 %v2803_v26  ;;  %932 = vmatpush.msra.mxu1 %v2806_v27 }
  0x9a   : > { %952 = vmatpush.msra.mxu2 %v2814_v29  ;;  %972 = vmatpush.msra.mxu3 %v2811_v28 }
  0x9b   : > { %502 = vmatmul.f32.gmra.mxu0 %v390_v21  ;;  %543 = vmatmul.f32.gmra.mxu1 %v390_v21 }
  0x9c   : > { %584 = vmatmul.f32.gmra.mxu2 %v390_v21  ;;  %625 = vmatmul.f32.gmra.mxu3 %v390_v21  ;;  %v3877_v21 = vld [vmem:[#allocation14_spill] sm:$0xff] }
  0x9d   : > { %913 = vmatpush.msra.mxu0 %v2819_v30  ;;  %933 = vmatpush.msra.mxu1 %v2822_v31 }
  0x9e   : > { %953 = vmatpush.msra.mxu2 %v2830_v33  ;;  %973 = vmatpush.msra.mxu3 %v2827_v32 }
  0x9f   : > { %914 = vmatpush.msra.mxu0 %v2839_v35  ;;  %934 = vmatpush.msra.mxu1 %v2842_v36 }
  0xa0   : > { %954 = vmatpush.msra.mxu2 %v2849_v38  ;;  %974 = vmatpush.msra.mxu3 %v2846_v37 }
  0xa1   : > { %915 = vmatpush.msra.mxu0 %v2852_v39  ;;  %935 = vmatpush.msra.mxu1 %v2855_v40 }
  0xa2   : > { %955 = vmatpush.msra.mxu2 %v2863_v42  ;;  %975 = vmatpush.msra.mxu3 %v2860_v41 }
  0xa3   : > { %750 = vmatmul.f32.vlgmr.msrb.gmra.mxu0 %v2551_v7  ;;  %770 = vmatmul.f32.vlgmr.msrb.gmra.mxu1 %v2551_v7 }
  0xa4   : > { %790 = vmatmul.f32.vlgmr.msrb.gmra.mxu2 %v2551_v7  ;;  %810 = vmatmul.f32.vlgmr.msrb.gmra.mxu3 %v2551_v7  ;;  %v3878_v7 = vld [vmem:[#allocation15_spill] sm:$0xff] }
  0xa5   : > { %916 = vmatpush.msra.mxu0 %v2868_v43  ;;  %936 = vmatpush.msra.mxu1 %v2871_v44 }
  0xa6   : > { %956 = vmatpush.msra.mxu2 %v2879_v46  ;;  %976 = vmatpush.msra.mxu3 %v2876_v45 }
  0xa7   : > { %917 = vmatpush.msra.mxu0 %v2888_v48  ;;  %937 = vmatpush.msra.mxu1 %v2891_v49 }
  0xa8   : > { %957 = vmatpush.msra.mxu2 %v2898_v51  ;;  %977 = vmatpush.msra.mxu3 %v2895_v50 }
  0xa9   : > { %918 = vmatpush.msra.mxu0 %v2901_v52  ;;  %938 = vmatpush.msra.mxu1 %v2904_v53 }
  0xaa   : > { %958 = vmatpush.msra.mxu2 %v2912_v55  ;;  %978 = vmatpush.msra.mxu3 %v2909_v54 }
  0xab   : > { %919 = vmatpush.msra.mxu0 %v2917_v56  ;;  %939 = vmatpush.msra.mxu1 %v2920_v57 }
  0xac   : > { %959 = vmatpush.msra.mxu2 %v2928_v59  ;;  %979 = vmatpush.msra.mxu3 %v2925_v58 }
  0xad   : > { %920 = vmatpush.msra.mxu0 %v2937_v61  ;;  %940 = vmatpush.msra.mxu1 %v2940_v62 }
  0xae   : > { %960 = vmatpush.msra.mxu2 %v2947_v0  ;;  %980 = vmatpush.msra.mxu3 %v2944_v63 }
  0xaf   : > { %921 = vmatpush.msra.mxu0 %v2950_v1  ;;  %941 = vmatpush.msra.mxu1 %v2953_v2 }
  0xb0   : > { %961 = vmatpush.msra.mxu2 %v2961_v4  ;;  %981 = vmatpush.msra.mxu3 %v3877_v21 }
  0xb1   : > { %922 = vmatpush.msra.mxu0 %v2966_v5  ;;  %942 = vmatpush.msra.mxu1 %v2969_v6 }
  0xb2   : > { %962 = vmatpush.msra.mxu2 %v2977_v8  ;;  %982 = vmatpush.msra.mxu3 %v3878_v7 }
  0xb3   : > { %923 = vmatpush.msra.mxu0 %v2986_v34  ;;  %943 = vmatpush.msra.mxu1 %v2989_v47 }
  0xb4   : > { %963 = vmatpush.msra.mxu2 %v2996_v3  ;;  %983 = vmatpush.msra.mxu3 %v2993_v60 }
  0xb5   : > { %1083 = vmatpush.msrb.mxu0 %v2742_v9  ;;  %1103 = vmatpush.msrb.mxu1 %v2745_v10 }
  0xb6   : > { %1123 = vmatpush.msrb.mxu2 %v2751_v12  ;;  %1143 = vmatpush.msrb.mxu3 %v2748_v11  ;;  %v455_v11 = vld [vmem:[%s375_s29] sm:$0xf] }
  0xb7   : > { %1084 = vmatpush.msrb.mxu0 %v2754_v13  ;;  %1104 = vmatpush.msrb.mxu1 %v2757_v14  ;;  %v457_v12 = vperm.slane %v455_v11, 0  ;;  %v458_v13 = vperm.slane %v455_v11, 1 }
  0xb8   : > { %1124 = vmatpush.msrb.mxu2 %v2765_v16  ;;  %1144 = vmatpush.msrb.mxu3 %v2762_v15 }
  0xb9   : > { %1085 = vmatpush.msrb.mxu0 %v2770_v17  ;;  %1105 = vmatpush.msrb.mxu1 %v2773_v18 }
  0xba   : > { %1125 = vmatpush.msrb.mxu2 %v2781_v20  ;;  %1145 = vmatpush.msrb.mxu3 %v2778_v19  ;;  %v3145_v20 = vperm.slane %v455_v11, 2 }
  0xbb   : > { %1086 = vmatpush.msrb.mxu0 %v2790_v22  ;;  %1106 = vmatpush.msrb.mxu1 %v2793_v23  ;;  %v3147_v22 = vperm.slane %v455_v11, 3 }
  0xbc   : > { %1126 = vmatpush.msrb.mxu2 %v2800_v25  ;;  %1146 = vmatpush.msrb.mxu3 %v2797_v24 }
  0xbd   : > { %1087 = vmatpush.msrb.mxu0 %v2803_v26  ;;  %1107 = vmatpush.msrb.mxu1 %v2806_v27 }
  0xbe   : > { %1127 = vmatpush.msrb.mxu2 %v2814_v29  ;;  %1147 = vmatpush.msrb.mxu3 %v2811_v28 }
  0xbf   : > { %1088 = vmatpush.msrb.mxu0 %v2819_v30  ;;  %1108 = vmatpush.msrb.mxu1 %v2822_v31 }
  0xc0   : > { %1128 = vmatpush.msrb.mxu2 %v2830_v33  ;;  %1148 = vmatpush.msrb.mxu3 %v2827_v32 }
  0xc1   : > { %1089 = vmatpush.msrb.mxu0 %v2839_v35  ;;  %1109 = vmatpush.msrb.mxu1 %v2842_v36 }
  0xc2   : > { %1129 = vmatpush.msrb.mxu2 %v2849_v38  ;;  %1149 = vmatpush.msrb.mxu3 %v2846_v37 }
  0xc3   : > { %1090 = vmatpush.msrb.mxu0 %v2852_v39  ;;  %1110 = vmatpush.msrb.mxu1 %v2855_v40 }
  0xc4   : > { %1130 = vmatpush.msrb.mxu2 %v2863_v42  ;;  %1150 = vmatpush.msrb.mxu3 %v2860_v41 }
  0xc5   : > { %1091 = vmatpush.msrb.mxu0 %v2868_v43  ;;  %1111 = vmatpush.msrb.mxu1 %v2871_v44 }
  0xc6   : > { %1131 = vmatpush.msrb.mxu2 %v2879_v46  ;;  %1151 = vmatpush.msrb.mxu3 %v2876_v45 }
  0xc7   : > { %1092 = vmatpush.msrb.mxu0 %v2888_v48  ;;  %1112 = vmatpush.msrb.mxu1 %v2891_v49 }
  0xc8   : > { %1132 = vmatpush.msrb.mxu2 %v2898_v51  ;;  %1152 = vmatpush.msrb.mxu3 %v2895_v50 }
  0xc9   : > { %1093 = vmatpush.msrb.mxu0 %v2901_v52  ;;  %1113 = vmatpush.msrb.mxu1 %v2904_v53 }
  0xca   : > { %1133 = vmatpush.msrb.mxu2 %v2912_v55  ;;  %1153 = vmatpush.msrb.mxu3 %v2909_v54 }
  0xcb   : > { %1094 = vmatpush.msrb.mxu0 %v2917_v56  ;;  %1114 = vmatpush.msrb.mxu1 %v2920_v57 }
  0xcc   : > { %1134 = vmatpush.msrb.mxu2 %v2928_v59  ;;  %1154 = vmatpush.msrb.mxu3 %v2925_v58 }
  0xcd   : > { %1095 = vmatpush.msrb.mxu0 %v2937_v61  ;;  %1115 = vmatpush.msrb.mxu1 %v2940_v62 }
  0xce   : > { %1135 = vmatpush.msrb.mxu2 %v2947_v0  ;;  %1155 = vmatpush.msrb.mxu3 %v2944_v63 }
  0xcf   : > { %1096 = vmatpush.msrb.mxu0 %v2950_v1  ;;  %1116 = vmatpush.msrb.mxu1 %v2953_v2 }
  0xd0   : > { %1136 = vmatpush.msrb.mxu2 %v2961_v4  ;;  %1156 = vmatpush.msrb.mxu3 %v3877_v21 }
  0xd1   : > { %1097 = vmatpush.msrb.mxu0 %v2966_v5  ;;  %1117 = vmatpush.msrb.mxu1 %v2969_v6 }
  0xd2   : > { %1137 = vmatpush.msrb.mxu2 %v2977_v8  ;;  %1157 = vmatpush.msrb.mxu3 %v3878_v7 }
  0xd3   : > { %1098 = vmatpush.msrb.mxu0 %v2986_v34  ;;  %1118 = vmatpush.msrb.mxu1 %v2989_v47 }
  0xd4   : > { %1138 = vmatpush.msrb.mxu2 %v2996_v3  ;;  %1158 = vmatpush.msrb.mxu3 %v2993_v60 }
  0xe0   : > { %v482_v9 = vpop.f32.mrf.mxu0  ;;  %v523_v10 = vpop.f32.mrf.mxu1 }
  0xe1   : > { %v483_v60 = vadd.f32 %v482_v9, %v457_v12  ;;  %v524_v21 = vadd.f32 %v523_v10, %v458_v13 }
  0xe7   : > { %v3137_v14 = vpop.f32.mrf.mxu2  ;;  %v3139_v15 = vpop.f32.mrf.mxu3 }
  0xe8   : > { %v485_v16 = vpop.f32.mrf.mxu0  ;;  %v526_v17 = vpop.f32.mrf.mxu1  ;;  %v606_v9 = vadd.f32 %v3139_v15, %v3147_v22 }
  0xe9   : > { %v3141_v18 = vadd.f32 %v485_v16, %v457_v12  ;;  %v3143_v19 = vadd.f32 %v526_v17, %v458_v13 }
  0xef   : > { %v567_v23 = vpop.f32.mrf.mxu2  ;;  %v608_v24 = vpop.f32.mrf.mxu3 }
  0xf0   : > { %v3150_v25 = vadd.f32 %v567_v23, %v3145_v20  ;;  %v3153_v26 = vadd.f32 %v608_v24, %v3147_v22  ;;  %v488_v27 = vpop.f32.mrf.mxu0  ;;  %v529_v28 = vpop.f32.mrf.mxu1 }
  0xf1   : > { %v3155_v29 = vadd.f32 %v488_v27, %v457_v12  ;;  %v3157_v30 = vadd.f32 %v529_v28, %v458_v13 }
  0xf7   : > { %v570_v31 = vpop.f32.mrf.mxu2  ;;  %v611_v32 = vpop.f32.mrf.mxu3 }
  0xf8   : > { %v3160_v33 = vadd.f32 %v570_v31, %v3145_v20  ;;  %v3163_v35 = vadd.f32 %v611_v32, %v3147_v22  ;;  %v491_v36 = vpop.f32.mrf.mxu0  ;;  %v532_v37 = vpop.f32.mrf.mxu1 }
  0xf9   : > { %v3165_v38 = vadd.f32 %v491_v36, %v457_v12  ;;  %v3167_v39 = vadd.f32 %v532_v37, %v458_v13  ;;  %v565_v36 = vadd.f32 %v3137_v14, %v3145_v20 }
  0xfb   : > { %3879 = vst [vmem:[#allocation14_spill] sm:$0xff] %v3165_v38  ;;  %v3461_v38 = vld [vmem:[%s2670_s15 + $0x30] sm:$0xff] }
  0xfc   : > { %3880 = vst [vmem:[#allocation15_spill] sm:$0xff] %v3167_v39  ;;  %v3456_v39 = vld [vmem:[%s2670_s15 + $0x28] sm:$0xff] }
  0xfd   : > { %3913 = vst [vmem:[#allocation48_spill] sm:$0xff] %v3456_v39 }
  0xfe   : > { %3914 = vst [vmem:[#allocation49_spill] sm:$0xff] %v3461_v38 }
  0xff   : > { %v573_v40 = vpop.f32.mrf.mxu2  ;;  %v614_v41 = vpop.f32.mrf.mxu3 }
 0x100   : > { %v3170_v42 = vadd.f32 %v573_v40, %v3145_v20  ;;  %v3173_v43 = vadd.f32 %v614_v41, %v3147_v22  ;;  %v494_v44 = vpop.f32.mrf.mxu0  ;;  %v535_v45 = vpop.f32.mrf.mxu1 }
 0x101   : > { %v3175_v46 = vadd.f32 %v494_v44, %v457_v12  ;;  %v3177_v48 = vadd.f32 %v535_v45, %v458_v13 }
 0x102   : > { %3881 = vst [vmem:[#allocation16_spill] sm:$0xff] %v3170_v42  ;;  %v3453_v42 = vld [vmem:[%s2670_s15 + $0x20] sm:$0xff] }
 0x103   : > { %3882 = vst [vmem:[#allocation17_spill] sm:$0xff] %v3173_v43  ;;  %v3448_v43 = vld [vmem:[%s2670_s15 + $0x58] sm:$0xff] }
 0x104   : > { %3883 = vst [vmem:[#allocation18_spill] sm:$0xff] %v3175_v46  ;;  %v3445_v46 = vld [vmem:[%s2670_s15 + $0x50] sm:$0xff] }
 0x105   : > { %3884 = vst [vmem:[#allocation19_spill] sm:$0xff] %v3177_v48  ;;  %v3442_v48 = vld [vmem:[%s2670_s15 + $0x48] sm:$0xff] }
 0x106   : > { %3909 = vst [vmem:[#allocation44_spill] sm:$0xff] %v3442_v48 }
 0x107   : > { %v576_v49 = vpop.f32.mrf.mxu2  ;;  %v617_v50 = vpop.f32.mrf.mxu3  ;;  %3910 = vst [vmem:[#allocation45_spill] sm:$0xff] %v3445_v46 }
 0x108   : > { %v3180_v51 = vadd.f32 %v576_v49, %v3145_v20  ;;  %v3183_v52 = vadd.f32 %v617_v50, %v3147_v22  ;;  %v497_v53 = vpop.f32.mrf.mxu0  ;;  %v538_v54 = vpop.f32.mrf.mxu1  ;;  %3911 = vst [vmem:[#allocation46_spill] sm:$0xff] %v3448_v43 }
 0x109   : > { %v3185_v55 = vadd.f32 %v497_v53, %v457_v12  ;;  %v3187_v56 = vadd.f32 %v538_v54, %v458_v13  ;;  %3912 = vst [vmem:[#allocation47_spill] sm:$0xff] %v3453_v42 }
 0x10a   : > { %3885 = vst [vmem:[#allocation20_spill] sm:$0xff] %v3180_v51  ;;  %v3437_v51 = vld [vmem:[%s2670_s15 + $0x40] sm:$0xff] }
 0x10b   : > { %3886 = vst [vmem:[#allocation21_spill] sm:$0xff] %v3183_v52  ;;  %v3434_v52 = vld [vmem:[%s2670_s15 + $0x78] sm:$0xff] }
 0x10c   : > { %3887 = vst [vmem:[#allocation22_spill] sm:$0xff] %v3185_v55  ;;  %v3431_v55 = vld [vmem:[%s2670_s15 + $0x70] sm:$0xff] }
 0x10d   : > { %3888 = vst [vmem:[#allocation23_spill] sm:$0xff] %v3187_v56  ;;  %v3426_v56 = vld [vmem:[%s2670_s15 + $0x68] sm:$0xff] }
 0x10e   : > { %3905 = vst [vmem:[#allocation40_spill] sm:$0xff] %v3426_v56 }
 0x10f   : > { %v579_v57 = vpop.f32.mrf.mxu2  ;;  %v620_v58 = vpop.f32.mrf.mxu3  ;;  %3906 = vst [vmem:[#allocation41_spill] sm:$0xff] %v3431_v55 }
 0x110   : > { %v3190_v59 = vadd.f32 %v579_v57, %v3145_v20  ;;  %v3193_v61 = vadd.f32 %v620_v58, %v3147_v22  ;;  %v500_v62 = vpop.f32.mrf.mxu0  ;;  %v541_v63 = vpop.f32.mrf.mxu1  ;;  %3907 = vst [vmem:[#allocation42_spill] sm:$0xff] %v3434_v52 }
 0x111   : > { %v3195_v0 = vadd.f32 %v500_v62, %v457_v12  ;;  %v3197_v1 = vadd.f32 %v541_v63, %v458_v13  ;;  %3908 = vst [vmem:[#allocation43_spill] sm:$0xff] %v3437_v51 }
 0x112   : > { %3889 = vst [vmem:[#allocation24_spill] sm:$0xff] %v3190_v59  ;;  %v3423_v59 = vld [vmem:[%s2670_s15 + $0x60] sm:$0xff] }
 0x113   : > { %3890 = vst [vmem:[#allocation25_spill] sm:$0xff] %v3193_v61  ;;  %v3420_v61 = vld [vmem:[%s2670_s15 + $0x98] sm:$0xff] }
 0x114   : > { %3891 = vst [vmem:[#allocation26_spill] sm:$0xff] %v3195_v0  ;;  %v3415_v0 = vld [vmem:[%s2670_s15 + $0x90] sm:$0xff] }
 0x115   : > { %3892 = vst [vmem:[#allocation27_spill] sm:$0xff] %v3197_v1  ;;  %v3412_v1 = vld [vmem:[%s2670_s15 + $0x88] sm:$0xff] }
 0x116   : > { %3901 = vst [vmem:[#allocation36_spill] sm:$0xff] %v3412_v1 }
 0x117   : > { %v582_v2 = vpop.f32.mrf.mxu2  ;;  %v623_v3 = vpop.f32.mrf.mxu3  ;;  %3902 = vst [vmem:[#allocation37_spill] sm:$0xff] %v3415_v0 }
 0x118   : > { %v3200_v4 = vadd.f32 %v582_v2, %v3145_v20  ;;  %v3203_v5 = vadd.f32 %v623_v3, %v3147_v22  ;;  %v503_v6 = vpop.f32.mrf.mxu0  ;;  %v544_v8 = vpop.f32.mrf.mxu1  ;;  %v3225_v2 = vld [vmem:[%s2670_s15 + $0x1e0] sm:$0xff]  ;;  %v3228_v3 = vld [vmem:[%s2670_s15 + $0x1e8] sm:$0xff]  ;;  %3903 = vst [vmem:[#allocation38_spill] sm:$0xff] %v3420_v61 }
 0x119   : > { %v3205_v34 = vadd.f32 %v503_v6, %v457_v12  ;;  %v3207_v47 = vadd.f32 %v544_v8, %v458_v13  ;;  %3899 = vst [vmem:[#allocation34_spill] sm:$0xff] %v3225_v2  ;;  %v3231_v6 = vld [vmem:[%s2670_s15 + $0x1f0] sm:$0xff] }
 0x11a   : > { %3893 = vst [vmem:[#allocation28_spill] sm:$0xff] %v3200_v4  ;;  %v3409_v4 = vld [vmem:[%s2670_s15 + $0x80] sm:$0xff] }
 0x11b   : > { %3894 = vst [vmem:[#allocation29_spill] sm:$0xff] %v3203_v5  ;;  %v3404_v5 = vld [vmem:[%s2670_s15 + $0xb8] sm:$0xff] }
 0x11c   : > { %3895 = vst [vmem:[#allocation30_spill] sm:$0xff] %v3205_v34  ;;  %v3399_v34 = vld [vmem:[%s2670_s15 + $0xb0] sm:$0xff] }
 0x11d   : > { %3896 = vst [vmem:[#allocation31_spill] sm:$0xff] %v3207_v47  ;;  %v3396_v47 = vld [vmem:[%s2670_s15 + $0xa8] sm:$0xff] }
 0x11e   : > { %3900 = vst [vmem:[#allocation35_spill] sm:$0xff] %v3228_v3 }
 0x11f   : > { %v585_v7 = vpop.f32.mrf.mxu2  ;;  %v626_v11 = vpop.f32.mrf.mxu3  ;;  %3904 = vst [vmem:[#allocation39_spill] sm:$0xff] %v3423_v59 }
 0x120   : > { %v3210_v16 = vadd.f32 %v585_v7, %v3145_v20  ;;  %v3213_v17 = vadd.f32 %v626_v11, %v3147_v22  ;;  %v751_v23 = vpop.f32.mrf.mxu0  ;;  %v771_v24 = vpop.f32.mrf.mxu1 }
 0x121   : > { %v814_v27 = vadd.f32 %v751_v23, %v483_v60  ;;  %v815_v28 = vadd.f32 %v771_v24, %v524_v21  ;;  %v3236_v21 = vld [vmem:[%s2670_s15 + $0x1f8] sm:$0xff] }
 0x122   : > { %3897 = vst [vmem:[#allocation32_spill] sm:$0xff] %v3210_v16  ;;  %v3393_v16 = vld [vmem:[%s2670_s15 + $0xa0] sm:$0xff] }
 0x123   : > { %3898 = vst [vmem:[#allocation33_spill] sm:$0xff] %v3213_v17  ;;  %v818_v31 = vmul.f32 0.5, %v814_v27  ;;  %v819_v32 = vmul.f32 0.5, %v815_v28  ;;  %v3388_v17 = vld [vmem:[%s2670_s15 + $0xd8] sm:$0xff] }
 0x125   : > { %2357 = vtanh.f32 %v818_v31 }
 0x126   : > { %2359 = vtanh.f32 %v819_v32 }
 0x127   : > { %v791_v10 = vpop.f32.mrf.mxu2  ;;  %v811_v12 = vpop.f32.mrf.mxu3 }
 0x128   : > { %v816_v13 = vadd.f32 %v791_v10, %v565_v36  ;;  %v817_v37 = vadd.f32 %v811_v12, %v606_v9 }
 0x12a   : > { %v820_v40 = vmul.f32 0.5, %v816_v13  ;;  %2361 = vtanh.f32 %v817_v37 }
 0x12b   : > { %v2358_v41 = vpop.eup %2357 }
 0x12c   : > { %v2360_v44 = vpop.eup %2359  ;;  %v824_v45 = vmul.f32 0.5, %v2358_v41  ;;  %2363 = vtanh.f32 %v820_v40 }
 0x12d   : > { %v825_v49 = vmul.f32 0.5, %v2360_v44 }
 0x12e   : > { %v827_v50 = vadd.f32 0.5, %v824_v45 }
 0x12f   : > { %v828_v53 = vadd.f32 0.5, %v825_v49 }
 0x130   : > { %v2362_v54 = vpop.eup %2361 }
 0x131   : > { %v831_v14 = vmul.f32 0.0, %v828_v53  ;;  %v832_v15 = vmul.f32 %v2362_v54, %v827_v50  ;;  %v3249_v53 = vld [vmem:[%s2670_s15 + $0x1c0] sm:$0xff]  ;;  %v3252_v54 = vld [vmem:[%s2670_s15 + $0x1c8] sm:$0xff] }
 0x132   : > { %v2364_v20 = vpop.eup %2363 }
 0x133   : > { %v833_v22 = vadd.f32 %v832_v15, %v831_v14  ;;  %v826_v57 = vmul.f32 0.5, %v2364_v20  ;;  %v3255_v14 = vld [vmem:[%s2670_s15 + $0x1d0] sm:$0xff]  ;;  %v3260_v15 = vld [vmem:[%s2670_s15 + $0x1d8] sm:$0xff]  ;;  %v3265_v20 = vld [vmem:[%s2670_s15 + $0x1a0] sm:$0xff] }
 0x135   : > { %2365 = vtanh.f32 %v833_v22  ;;  %v829_v58 = vadd.f32 0.5, %v826_v57  ;;  %v3271_v57 = vld [vmem:[%s2670_s15 + $0x1b0] sm:$0xff] }
 0x13b   : > { %v2366_v62 = vpop.eup %2365 }
 0x13c   : > { %v835_v63 = vmul.f32 %v2366_v62, %v829_v58  ;;  %v3276_v58 = vld [vmem:[%s2670_s15 + $0x1b8] sm:$0xff]  ;;  %v3281_v62 = vld [vmem:[%s2670_s15 + $0x180] sm:$0xff] }
 0x13e   : > { %836 = vst [vmem:[%s3221_s30] sm:$0xff] %v835_v63  ;;  %924 = vmatmul.f32.vlgmr.msra.gmra.mxu0 %v835_v63  ;;  %944 = vmatmul.f32.vlgmr.msra.gmra.mxu1 %v835_v63 }
 0x13f   : > { %964 = vmatmul.f32.vlgmr.msra.gmra.mxu2 %v835_v63  ;;  %984 = vmatmul.f32.vlgmr.msra.gmra.mxu3 %v835_v63  ;;  %v3284_v63 = vld [vmem:[%s2670_s15 + $0x188] sm:$0xff] }
 0x140   : > { %1258 = vmatpush.msra.mxu0 %v3225_v2  ;;  %1278 = vmatpush.msra.mxu1 %v3228_v3 }
 0x141   : > { %1298 = vmatpush.msra.mxu2 %v3231_v6  ;;  %1318 = vmatpush.msra.mxu3 %v3236_v21 }
 0x142   : > { %1259 = vmatpush.msra.mxu0 %v3249_v53  ;;  %1279 = vmatpush.msra.mxu1 %v3252_v54 }
 0x143   : > { %1299 = vmatpush.msra.mxu2 %v3255_v14  ;;  %1319 = vmatpush.msra.mxu3 %v3260_v15 }
 0x144   : > { %1260 = vmatpush.msra.mxu0 %v3265_v20 }
 0x145   : > { %1300 = vmatpush.msra.mxu2 %v3271_v57  ;;  %1320 = vmatpush.msra.mxu3 %v3276_v58 }
 0x146   : > { %1261 = vmatpush.msra.mxu0 %v3281_v62 }
 0x1bb   : > { %v925_v8 = vpop.f32.mrf.mxu0  ;;  %v945_v60 = vpop.f32.mrf.mxu1 }
 0x1bc   : > { %v988_v7 = vadd.f32 %v925_v8, %v3141_v18  ;;  %v989_v11 = vadd.f32 %v945_v60, %v3143_v19  ;;  %v3287_v8 = vld [vmem:[%s2670_s15 + $0x190] sm:$0xff]  ;;  %v3292_v60 = vld [vmem:[%s2670_s15 + $0x198] sm:$0xff] }
 0x1bd   : > { %1301 = vmatpush.msra.mxu2 %v3287_v8  ;;  %1321 = vmatpush.msra.mxu3 %v3292_v60 }
 0x1be   : > { %v992_v23 = vmul.f32 0.5, %v988_v7  ;;  %v993_v24 = vmul.f32 0.5, %v989_v11  ;;  %v3297_v7 = vld [vmem:[%s2670_s15 + $0x160] sm:$0xff]  ;;  %v3300_v11 = vld [vmem:[%s2670_s15 + $0x168] sm:$0xff] }
 0x1bf   : > { %1262 = vmatpush.msra.mxu0 %v3297_v7 }
 0x1c0   : > { %2367 = vtanh.f32 %v992_v23  ;;  %v3303_v23 = vld [vmem:[%s2670_s15 + $0x170] sm:$0xff] }
 0x1c1   : > { %2369 = vtanh.f32 %v993_v24  ;;  %v3308_v24 = vld [vmem:[%s2670_s15 + $0x178] sm:$0xff]  ;;  %1302 = vmatpush.msra.mxu2 %v3303_v23 }
 0x1c2   : > { %v965_v27 = vpop.f32.mrf.mxu2  ;;  %v985_v28 = vpop.f32.mrf.mxu3  ;;  %1322 = vmatpush.msra.mxu3 %v3308_v24 }
 0x1c3   : > { %v990_v31 = vadd.f32 %v965_v27, %v3150_v25  ;;  %v991_v32 = vadd.f32 %v985_v28, %v3153_v26  ;;  %v3313_v27 = vld [vmem:[%s2670_s15 + $0x140] sm:$0xff]  ;;  %v3316_v28 = vld [vmem:[%s2670_s15 + $0x148] sm:$0xff] }
 0x1c4   : > { %1263 = vmatpush.msra.mxu0 %v3313_v27 }
 0x1c5   : > { %v994_v36 = vmul.f32 0.5, %v990_v31  ;;  %2371 = vtanh.f32 %v991_v32  ;;  %v3319_v31 = vld [vmem:[%s2670_s15 + $0x150] sm:$0xff]  ;;  %v3324_v32 = vld [vmem:[%s2670_s15 + $0x158] sm:$0xff] }
 0x1c6   : > { %v2368_v9 = vpop.eup %2367  ;;  %1303 = vmatpush.msra.mxu2 %v3319_v31  ;;  %1323 = vmatpush.msra.mxu3 %v3324_v32 }
 0x1c7   : > { %v2370_v18 = vpop.eup %2369  ;;  %v998_v19 = vmul.f32 0.5, %v2368_v9  ;;  %2373 = vtanh.f32 %v994_v36  ;;  %v3329_v36 = vld [vmem:[%s2670_s15 + $0x120] sm:$0xff]  ;;  %v3332_v9 = vld [vmem:[%s2670_s15 + $0x128] sm:$0xff] }
 0x1c8   : > { %v999_v10 = vmul.f32 0.5, %v2370_v18  ;;  %v3335_v18 = vld [vmem:[%s2670_s15 + $0x130] sm:$0xff]  ;;  %1264 = vmatpush.msra.mxu0 %v3329_v36 }
 0x1c9   : > { %v1001_v12 = vadd.f32 0.5, %v998_v19  ;;  %v3340_v19 = vld [vmem:[%s2670_s15 + $0x138] sm:$0xff]  ;;  %1304 = vmatpush.msra.mxu2 %v3335_v18 }
 0x1ca   : > { %v1002_v13 = vadd.f32 0.5, %v999_v10  ;;  %1324 = vmatpush.msra.mxu3 %v3340_v19  ;;  %v3345_v10 = vld [vmem:[%s2670_s15 + $0x100] sm:$0xff] }
 0x1cb   : > { %v2372_v37 = vpop.eup %2371  ;;  %1265 = vmatpush.msra.mxu0 %v3345_v10 }
 0x1cc   : > { %v1005_v40 = vmul.f32 %v1002_v13, %v833_v22  ;;  %v1006_v41 = vmul.f32 %v2372_v37, %v1001_v12  ;;  %v3268_v22 = vld [vmem:[%s2670_s15 + $0x1a8] sm:$0xff]  ;;  %v3351_v13 = vld [vmem:[%s2670_s15 + $0x110] sm:$0xff]  ;;  %v3356_v37 = vld [vmem:[%s2670_s15 + $0x118] sm:$0xff] }
 0x1cd   : > { %v2374_v44 = vpop.eup %2373  ;;  %1280 = vmatpush.msra.mxu1 %v3268_v22  ;;  %v3348_v12 = vld [vmem:[%s2670_s15 + $0x108] sm:$0xff]  ;;  %1305 = vmatpush.msra.mxu2 %v3351_v13 }
 0x1ce   : > { %v3244_v25 = vadd.f32 %v1006_v41, %v1005_v40  ;;  %v1000_v26 = vmul.f32 0.5, %v2374_v44  ;;  %1325 = vmatpush.msra.mxu3 %v3356_v37  ;;  %v3361_v40 = vld [vmem:[%s2670_s15 + $0xe0] sm:$0xff]  ;;  %v3364_v41 = vld [vmem:[%s2670_s15 + $0xe8] sm:$0xff]  ;;  %v3367_v44 = vld [vmem:[%s2670_s15 + $0xf0] sm:$0xff] }
 0x1cf   : > { %1281 = vmatpush.msra.mxu1 %v3284_v63  ;;  %1266 = vmatpush.msra.mxu0 %v3361_v40 }
 0x1d0   : > { %2375 = vtanh.f32 %v3244_v25  ;;  %v1003_v45 = vadd.f32 0.5, %v1000_v26  ;;  %v3372_v26 = vld [vmem:[%s2670_s15 + $0xf8] sm:$0xff]  ;;  %1306 = vmatpush.msra.mxu2 %v3367_v44 }
 0x1d1   : > { %1282 = vmatpush.msra.mxu1 %v3300_v11  ;;  %1326 = vmatpush.msra.mxu3 %v3372_v26 }
 0x1d3   : > { %1283 = vmatpush.msra.mxu1 %v3316_v28  ;;  %1327 = vmatpush.msra.mxu3 %v3388_v17 }
 0x1d5   : > { %1284 = vmatpush.msra.mxu1 %v3332_v9  ;;  %1328 = vmatpush.msra.mxu3 %v3404_v5 }
 0x1d6   : > { %v2376_v49 = vpop.eup %2375 }
 0x1d7   : > { %v1009_v50 = vmul.f32 %v2376_v49, %v1003_v45  ;;  %1285 = vmatpush.msra.mxu1 %v3348_v12  ;;  %v3377_v45 = vld [vmem:[%s2670_s15 + $0xc0] sm:$0xff]  ;;  %v3380_v49 = vld [vmem:[%s2670_s15 + $0xc8] sm:$0xff]  ;;  %1329 = vmatpush.msra.mxu3 %v3420_v61 }
 0x1d8   : > { %1267 = vmatpush.msra.mxu0 %v3377_v45 }
 0x1d9   : > { %2289 = vst [vmem:[%s3221_s30 + $0x8] sm:$0xff] %v1009_v50  ;;  %1099 = vmatmul.f32.vlgmr.msrb.gmra.mxu0 %v1009_v50  ;;  %1119 = vmatmul.f32.vlgmr.msrb.gmra.mxu1 %v1009_v50 }
 0x1da   : > { %1139 = vmatmul.f32.vlgmr.msrb.gmra.mxu2 %v1009_v50  ;;  %1159 = vmatmul.f32.vlgmr.msrb.gmra.mxu3 %v1009_v50  ;;  %v3383_v50 = vld [vmem:[%s2670_s15 + $0xd0] sm:$0xff] }
 0x1db   : > { %1286 = vmatpush.msra.mxu1 %v3364_v41  ;;  %1307 = vmatpush.msra.mxu2 %v3383_v50 }
 0x1dc   : > { %1268 = vmatpush.msra.mxu0 %v3393_v16  ;;  %1330 = vmatpush.msra.mxu3 %v3434_v52  ;;  %v3477_v52 = vld [vmem:[%s2670_s15 + $0x10] sm:$0xff] }
 0x1dd   : > { %1287 = vmatpush.msra.mxu1 %v3380_v49  ;;  %1308 = vmatpush.msra.mxu2 %v3399_v34  ;;  %3918 = vst [vmem:[#allocation53_spill] sm:$0xff] %v3477_v52 }
 0x1de   : > { %1269 = vmatpush.msra.mxu0 %v3409_v4  ;;  %1331 = vmatpush.msra.mxu3 %v3448_v43 }
 0x1df   : > { %1288 = vmatpush.msra.mxu1 %v3396_v47  ;;  %1309 = vmatpush.msra.mxu2 %v3415_v0 }
 0x1e0   : > { %1270 = vmatpush.msra.mxu0 %v3423_v59  ;;  %v3469_v59 = vld [vmem:[%s2670_s15] sm:$0xff] }
 0x1e1   : > { %1289 = vmatpush.msra.mxu1 %v3412_v1  ;;  %1310 = vmatpush.msra.mxu2 %v3431_v55  ;;  %3916 = vst [vmem:[#allocation51_spill] sm:$0xff] %v3469_v59  ;;  %v3472_v55 = vld [vmem:[%s2670_s15 + $0x8] sm:$0xff] }
 0x1e2   : > { %1271 = vmatpush.msra.mxu0 %v3437_v51  ;;  %3917 = vst [vmem:[#allocation52_spill] sm:$0xff] %v3472_v55  ;;  %v3480_v51 = vld [vmem:[%s2670_s15 + $0x18] sm:$0xff] }
 0x1e3   : > { %1290 = vmatpush.msra.mxu1 %v3426_v56  ;;  %v3464_v56 = vld [vmem:[%s2670_s15 + $0x38] sm:$0xff]  ;;  %1311 = vmatpush.msra.mxu2 %v3445_v46  ;;  %3919 = vst [vmem:[#allocation54_spill] sm:$0xff] %v3480_v51 }
 0x1e4   : > { %3915 = vst [vmem:[#allocation50_spill] sm:$0xff] %v3464_v56  ;;  %1272 = vmatpush.msra.mxu0 %v3453_v42  ;;  %1332 = vmatpush.msra.mxu3 %v3464_v56 }
 0x1e5   : > { %1291 = vmatpush.msra.mxu1 %v3442_v48  ;;  %1312 = vmatpush.msra.mxu2 %v3461_v38 }
 0x1e6   : > { %1273 = vmatpush.msra.mxu0 %v3469_v59  ;;  %1333 = vmatpush.msra.mxu3 %v3480_v51 }
 0x1e7   : > { %1292 = vmatpush.msra.mxu1 %v3456_v39  ;;  %1313 = vmatpush.msra.mxu2 %v3477_v52 }
 0x1e8   : > { %1433 = vmatpush.msrb.mxu0 %v3225_v2  ;;  %1493 = vmatpush.msrb.mxu3 %v3236_v21 }
 0x1e9   : > { %1293 = vmatpush.msra.mxu1 %v3472_v55  ;;  %1473 = vmatpush.msrb.mxu2 %v3231_v6 }
 0x1ea   : > { %1434 = vmatpush.msrb.mxu0 %v3249_v53  ;;  %1494 = vmatpush.msrb.mxu3 %v3260_v15 }
 0x1eb   : > { %1453 = vmatpush.msrb.mxu1 %v3228_v3  ;;  %1474 = vmatpush.msrb.mxu2 %v3255_v14 }
 0x1ec   : > { %1435 = vmatpush.msrb.mxu0 %v3265_v20  ;;  %1495 = vmatpush.msrb.mxu3 %v3276_v58 }
 0x1ed   : > { %1454 = vmatpush.msrb.mxu1 %v3252_v54  ;;  %1475 = vmatpush.msrb.mxu2 %v3271_v57 }
 0x1ee   : > { %1436 = vmatpush.msrb.mxu0 %v3281_v62  ;;  %1496 = vmatpush.msrb.mxu3 %v3292_v60 }
 0x1ef   : > { %1455 = vmatpush.msrb.mxu1 %v3268_v22  ;;  %1476 = vmatpush.msrb.mxu2 %v3287_v8 }
 0x1f0   : > { %1437 = vmatpush.msrb.mxu0 %v3297_v7  ;;  %1497 = vmatpush.msrb.mxu3 %v3308_v24 }
 0x1f1   : > { %1456 = vmatpush.msrb.mxu1 %v3284_v63  ;;  %1477 = vmatpush.msrb.mxu2 %v3303_v23 }
 0x1f2   : > { %1438 = vmatpush.msrb.mxu0 %v3313_v27  ;;  %1498 = vmatpush.msrb.mxu3 %v3324_v32 }
 0x1f3   : > { %1457 = vmatpush.msrb.mxu1 %v3300_v11  ;;  %1478 = vmatpush.msrb.mxu2 %v3319_v31 }
 0x1f4   : > { %1439 = vmatpush.msrb.mxu0 %v3329_v36  ;;  %1499 = vmatpush.msrb.mxu3 %v3340_v19 }
 0x1f5   : > { %1458 = vmatpush.msrb.mxu1 %v3316_v28  ;;  %1479 = vmatpush.msrb.mxu2 %v3335_v18 }
 0x1f6   : > { %1440 = vmatpush.msrb.mxu0 %v3345_v10  ;;  %1500 = vmatpush.msrb.mxu3 %v3356_v37 }
 0x1f7   : > { %1459 = vmatpush.msrb.mxu1 %v3332_v9  ;;  %1480 = vmatpush.msrb.mxu2 %v3351_v13 }
 0x1f8   : > { %1441 = vmatpush.msrb.mxu0 %v3361_v40  ;;  %1501 = vmatpush.msrb.mxu3 %v3372_v26 }
 0x1f9   : > { %1460 = vmatpush.msrb.mxu1 %v3348_v12  ;;  %1481 = vmatpush.msrb.mxu2 %v3367_v44 }
 0x1fa   : > { %1442 = vmatpush.msrb.mxu0 %v3377_v45  ;;  %1502 = vmatpush.msrb.mxu3 %v3388_v17 }
 0x1fb   : > { %1461 = vmatpush.msrb.mxu1 %v3364_v41  ;;  %1482 = vmatpush.msrb.mxu2 %v3383_v50 }
 0x1fc   : > { %1443 = vmatpush.msrb.mxu0 %v3393_v16  ;;  %1503 = vmatpush.msrb.mxu3 %v3404_v5 }
 0x1fd   : > { %1462 = vmatpush.msrb.mxu1 %v3380_v49  ;;  %1483 = vmatpush.msrb.mxu2 %v3399_v34 }
 0x1fe   : > { %1444 = vmatpush.msrb.mxu0 %v3409_v4  ;;  %1504 = vmatpush.msrb.mxu3 %v3420_v61 }
 0x1ff   : > { %1463 = vmatpush.msrb.mxu1 %v3396_v47  ;;  %1484 = vmatpush.msrb.mxu2 %v3415_v0 }
 0x201   : > { %1464 = vmatpush.msrb.mxu1 %v3412_v1 }
 0x256   : > { %v1100_v39 = vpop.f32.mrf.mxu0  ;;  %v1120_v42 = vpop.f32.mrf.mxu1 }
 0x257   : > { %v1163_v56 = vadd.f32 %v1100_v39, %v3155_v29  ;;  %v1164_v59 = vadd.f32 %v1120_v42, %v3157_v30 }
 0x259   : > { %v1167_v2 = vmul.f32 0.5, %v1163_v56  ;;  %v1168_v3 = vmul.f32 0.5, %v1164_v59 }
 0x25b   : > { %2377 = vtanh.f32 %v1167_v2 }
 0x25c   : > { %2379 = vtanh.f32 %v1168_v3 }
 0x25d   : > { %v1140_v29 = vpop.f32.mrf.mxu2  ;;  %v1160_v30 = vpop.f32.mrf.mxu3 }
 0x25e   : > { %v1165_v39 = vadd.f32 %v1140_v29, %v3160_v33  ;;  %v1166_v42 = vadd.f32 %v1160_v30, %v3163_v35 }
 0x260   : > { %v1169_v56 = vmul.f32 0.5, %v1165_v39  ;;  %2381 = vtanh.f32 %v1166_v42 }
 0x261   : > { %v2378_v59 = vpop.eup %2377 }
 0x262   : > { %v2380_v33 = vpop.eup %2379  ;;  %v1173_v35 = vmul.f32 0.5, %v2378_v59  ;;  %2383 = vtanh.f32 %v1169_v56 }
 0x263   : > { %v1174_v2 = vmul.f32 0.5, %v2380_v33  ;;  %v3921_v33 = vld [vmem:[#allocation39_spill] sm:$0xff] }
 0x264   : > { %v1176_v3 = vadd.f32 0.5, %v1173_v35  ;;  %1445 = vmatpush.msrb.mxu0 %v3921_v33  ;;  %v3922_v35 = vld [vmem:[#allocation40_spill] sm:$0xff] }
 0x265   : > { %v1177_v29 = vadd.f32 0.5, %v1174_v2  ;;  %1465 = vmatpush.msrb.mxu1 %v3922_v35  ;;  %v3923_v2 = vld [vmem:[#allocation41_spill] sm:$0xff] }
 0x266   : > { %v2382_v30 = vpop.eup %2381  ;;  %1485 = vmatpush.msrb.mxu2 %v3923_v2  ;;  %v3928_v2 = vld [vmem:[#allocation50_spill] sm:$0xff] }
 0x267   : > { %v1180_v39 = vmul.f32 %v1177_v29, %v3244_v25  ;;  %v1181_v42 = vmul.f32 %v2382_v30, %v1176_v3  ;;  %v3924_v3 = vld [vmem:[#allocation42_spill] sm:$0xff]  ;;  %v3925_v29 = vld [vmem:[#allocation43_spill] sm:$0xff]  ;;  %1466 = vmatpush.msrb.mxu1 %v3442_v48 }
 0x268   : > { %v2384_v56 = vpop.eup %2383  ;;  %1505 = vmatpush.msrb.mxu3 %v3924_v3  ;;  %1446 = vmatpush.msrb.mxu0 %v3925_v29  ;;  %v3929_v3 = vld [vmem:[#allocation51_spill] sm:$0xff] }
 0x269   : > { %v3533_v59 = vadd.f32 %v1181_v42, %v1180_v39  ;;  %v1175_v25 = vmul.f32 0.5, %v2384_v56  ;;  %1486 = vmatpush.msrb.mxu2 %v3445_v46  ;;  %v3926_v42 = vld [vmem:[#allocation47_spill] sm:$0xff]  ;;  %v3927_v56 = vld [vmem:[#allocation48_spill] sm:$0xff] }
 0x26a   : > { %1506 = vmatpush.msrb.mxu3 %v3448_v43  ;;  %1447 = vmatpush.msrb.mxu0 %v3926_v42 }
 0x26b   : > { %3920 = vst [vmem:[#allocation55_spill] sm:$0xff] %v3533_v59  ;;  %2385 = vtanh.f32 %v3533_v59  ;;  %v1178_v30 = vadd.f32 0.5, %v1175_v25  ;;  %1467 = vmatpush.msrb.mxu1 %v3927_v56  ;;  %1487 = vmatpush.msrb.mxu2 %v3461_v38  ;;  %v3930_v25 = vld [vmem:[#allocation34_spill] sm:$0xff] }
 0x26c   : > { %1507 = vmatpush.msrb.mxu3 %v3928_v2  ;;  %1448 = vmatpush.msrb.mxu0 %v3929_v3 }
 0x26d   : > { %1468 = vmatpush.msrb.mxu1 %v3472_v55  ;;  %1488 = vmatpush.msrb.mxu2 %v3477_v52 }
 0x26e   : > { %1508 = vmatpush.msrb.mxu3 %v3480_v51 }
 0x271   : > { %v2386_v39 = vpop.eup %2385 }
 0x272   : > { %v1184_v59 = vmul.f32 %v2386_v39, %v1178_v30  ;;  %v3931_v30 = vld [vmem:[#allocation35_spill] sm:$0xff]  ;;  %v3933_v39 = vld [vmem:[#allocation42_spill] sm:$0xff] }
 0x274   : > { %2290 = vst [vmem:[%s3221_s30 + $0x10] sm:$0xff] %v1184_v59  ;;  %1274 = vmatmul.f32.vlgmr.msra.gmra.mxu0 %v1184_v59  ;;  %1294 = vmatmul.f32.vlgmr.msra.gmra.mxu1 %v1184_v59 }
 0x275   : > { %1314 = vmatmul.f32.vlgmr.msra.gmra.mxu2 %v1184_v59  ;;  %1334 = vmatmul.f32.vlgmr.msra.gmra.mxu3 %v1184_v59  ;;  %v3932_v59 = vld [vmem:[#allocation41_spill] sm:$0xff] }
 0x276   : > { %1608 = vmatpush.msra.mxu0 %v3930_v25  ;;  %1628 = vmatpush.msra.mxu1 %v3931_v30 }
 0x277   : > { %1648 = vmatpush.msra.mxu2 %v3231_v6  ;;  %1668 = vmatpush.msra.mxu3 %v3236_v21 }
 0x278   : > { %1609 = vmatpush.msra.mxu0 %v3249_v53  ;;  %1629 = vmatpush.msra.mxu1 %v3252_v54 }
 0x279   : > { %1649 = vmatpush.msra.mxu2 %v3255_v14  ;;  %1669 = vmatpush.msra.mxu3 %v3260_v15 }
 0x27a   : > { %1610 = vmatpush.msra.mxu0 %v3265_v20  ;;  %1630 = vmatpush.msra.mxu1 %v3268_v22 }
 0x27b   : > { %1650 = vmatpush.msra.mxu2 %v3271_v57  ;;  %1670 = vmatpush.msra.mxu3 %v3276_v58 }
 0x27c   : > { %1611 = vmatpush.msra.mxu0 %v3281_v62  ;;  %1631 = vmatpush.msra.mxu1 %v3284_v63 }
 0x27d   : > { %1651 = vmatpush.msra.mxu2 %v3287_v8  ;;  %1671 = vmatpush.msra.mxu3 %v3292_v60 }
 0x27e   : > { %1612 = vmatpush.msra.mxu0 %v3297_v7  ;;  %1632 = vmatpush.msra.mxu1 %v3300_v11 }
 0x27f   : > { %1652 = vmatpush.msra.mxu2 %v3303_v23  ;;  %1672 = vmatpush.msra.mxu3 %v3308_v24 }
 0x280   : > { %1613 = vmatpush.msra.mxu0 %v3313_v27  ;;  %1633 = vmatpush.msra.mxu1 %v3316_v28 }
 0x281   : > { %1653 = vmatpush.msra.mxu2 %v3319_v31  ;;  %1673 = vmatpush.msra.mxu3 %v3324_v32 }
 0x282   : > { %1614 = vmatpush.msra.mxu0 %v3329_v36  ;;  %1634 = vmatpush.msra.mxu1 %v3332_v9 }
 0x283   : > { %1654 = vmatpush.msra.mxu2 %v3335_v18  ;;  %1674 = vmatpush.msra.mxu3 %v3340_v19 }
 0x284   : > { %1615 = vmatpush.msra.mxu0 %v3345_v10  ;;  %1635 = vmatpush.msra.mxu1 %v3348_v12 }
 0x285   : > { %1655 = vmatpush.msra.mxu2 %v3351_v13  ;;  %1675 = vmatpush.msra.mxu3 %v3356_v37 }
 0x286   : > { %1616 = vmatpush.msra.mxu0 %v3361_v40  ;;  %1636 = vmatpush.msra.mxu1 %v3364_v41 }
 0x287   : > { %1656 = vmatpush.msra.mxu2 %v3367_v44  ;;  %1676 = vmatpush.msra.mxu3 %v3372_v26 }
 0x288   : > { %1617 = vmatpush.msra.mxu0 %v3377_v45  ;;  %1637 = vmatpush.msra.mxu1 %v3380_v49 }
 0x289   : > { %1657 = vmatpush.msra.mxu2 %v3383_v50  ;;  %1677 = vmatpush.msra.mxu3 %v3388_v17 }
 0x28a   : > { %1618 = vmatpush.msra.mxu0 %v3393_v16  ;;  %1638 = vmatpush.msra.mxu1 %v3396_v47 }
 0x28b   : > { %1658 = vmatpush.msra.mxu2 %v3399_v34  ;;  %1678 = vmatpush.msra.mxu3 %v3404_v5 }
 0x28c   : > { %1619 = vmatpush.msra.mxu0 %v3409_v4  ;;  %1639 = vmatpush.msra.mxu1 %v3412_v1 }
 0x28d   : > { %1659 = vmatpush.msra.mxu2 %v3415_v0  ;;  %1679 = vmatpush.msra.mxu3 %v3420_v61 }
 0x28e   : > { %1620 = vmatpush.msra.mxu0 %v3921_v33  ;;  %1640 = vmatpush.msra.mxu1 %v3922_v35  ;;  %v3936_v35 = vld [vmem:[#allocation16_spill] sm:$0xff]  ;;  %v3937_v33 = vld [vmem:[#allocation17_spill] sm:$0xff] }
 0x28f   : > { %1660 = vmatpush.msra.mxu2 %v3932_v59  ;;  %1680 = vmatpush.msra.mxu3 %v3933_v39  ;;  %v3935_v39 = vld [vmem:[#allocation15_spill] sm:$0xff] }
 0x290   : > { %1621 = vmatpush.msra.mxu0 %v3925_v29  ;;  %1641 = vmatpush.msra.mxu1 %v3442_v48  ;;  %v3934_v29 = vld [vmem:[#allocation14_spill] sm:$0xff] }
 0x291   : > { %1661 = vmatpush.msra.mxu2 %v3445_v46  ;;  %1681 = vmatpush.msra.mxu3 %v3448_v43 }
 0x292   : > { %1622 = vmatpush.msra.mxu0 %v3926_v42  ;;  %1642 = vmatpush.msra.mxu1 %v3927_v56 }
 0x293   : > { %1662 = vmatpush.msra.mxu2 %v3461_v38  ;;  %1682 = vmatpush.msra.mxu3 %v3928_v2 }
 0x294   : > { %1623 = vmatpush.msra.mxu0 %v3929_v3  ;;  %1643 = vmatpush.msra.mxu1 %v3472_v55 }
 0x295   : > { %1663 = vmatpush.msra.mxu2 %v3477_v52  ;;  %1683 = vmatpush.msra.mxu3 %v3480_v51 }
 0x2f1   : > { %v1275_v48 = vpop.f32.mrf.mxu0  ;;  %v1295_v46 = vpop.f32.mrf.mxu1 }
 0x2f2   : > { %v1338_v43 = vadd.f32 %v1275_v48, %v3934_v29  ;;  %v1339_v42 = vadd.f32 %v1295_v46, %v3935_v39  ;;  %v3938_v29 = vld [vmem:[#allocation55_spill] sm:$0xff] }
 0x2f4   : > { %v1342_v59 = vmul.f32 0.5, %v1338_v43  ;;  %v1343_v56 = vmul.f32 0.5, %v1339_v42 }
 0x2f6   : > { %2387 = vtanh.f32 %v1342_v59 }
 0x2f7   : > { %2389 = vtanh.f32 %v1343_v56 }
 0x2f8   : > { %v1315_v38 = vpop.f32.mrf.mxu2  ;;  %v1335_v2 = vpop.f32.mrf.mxu3 }
 0x2f9   : > { %v1340_v3 = vadd.f32 %v1315_v38, %v3936_v35  ;;  %v1341_v55 = vadd.f32 %v1335_v2, %v3937_v33 }
 0x2fb   : > { %v1344_v61 = vmul.f32 0.5, %v1340_v3  ;;  %2391 = vtanh.f32 %v1341_v55  ;;  %v1954_v3 = vld [vmem:[%s2670_s15 + $0x1e0] sm:$0xff] }
 0x2fc   : > { %v2388_v52 = vpop.eup %2387 }
 0x2fd   : > { %v2390_v51 = vpop.eup %2389  ;;  %v1348_v0 = vmul.f32 0.5, %v2388_v52  ;;  %2393 = vtanh.f32 %v1344_v61  ;;  %v3940_v52 = vld [vmem:[#allocation37_spill] sm:$0xff]  ;;  %v3941_v61 = vld [vmem:[#allocation38_spill] sm:$0xff] }
 0x2fe   : > { %v1349_v1 = vmul.f32 0.5, %v2390_v51  ;;  %v3939_v51 = vld [vmem:[#allocation36_spill] sm:$0xff] }
 0x2ff   : > { %v1351_v48 = vadd.f32 0.5, %v1348_v0  ;;  %v3942_v0 = vld [vmem:[#allocation39_spill] sm:$0xff] }
 0x300   : > { %v1352_v46 = vadd.f32 0.5, %v1349_v1  ;;  %v3943_v1 = vld [vmem:[#allocation40_spill] sm:$0xff] }
 0x301   : > { %v2392_v43 = vpop.eup %2391 }
 0x302   : > { %v1355_v42 = vmul.f32 %v1352_v46, %v3938_v29  ;;  %v1356_v56 = vmul.f32 %v2392_v43, %v1351_v48  ;;  %v1957_v43 = vld [vmem:[%s2670_s15 + $0x1f8] sm:$0xff]  ;;  %v3962_v29 = vld [vmem:[#allocation22_spill] sm:$0xff] }
 0x303   : > { %v2394_v59 = vpop.eup %2393 }
 0x304   : > { %v3630_v39 = vadd.f32 %v1356_v56, %v1355_v42  ;;  %v1350_v38 = vmul.f32 0.5, %v2394_v59  ;;  %v3963_v56 = vld [vmem:[#allocation23_spill] sm:$0xff] }
 0x306   : > { %2395 = vtanh.f32 %v3630_v39  ;;  %v1353_v33 = vadd.f32 0.5, %v1350_v38 }
 0x30c   : > { %v2396_v55 = vpop.eup %2395 }
 0x30d   : > { %v1359_v35 = vmul.f32 %v2396_v55, %v1353_v33 }
 0x30f   : > { %2291 = vst [vmem:[%s3221_s30 + $0x18] sm:$0xff] %v1359_v35  ;;  %1449 = vmatmul.f32.vlgmr.msrb.gmra.mxu0 %v1359_v35  ;;  %1469 = vmatmul.f32.vlgmr.msrb.gmra.mxu1 %v1359_v35 }
 0x310   : > { %1489 = vmatmul.f32.vlgmr.msrb.gmra.mxu2 %v1359_v35  ;;  %1509 = vmatmul.f32.vlgmr.msrb.gmra.mxu3 %v1359_v35  ;;  %v3964_v35 = vld [vmem:[#allocation24_spill] sm:$0xff] }
 0x311   : > { %1783 = vmatpush.msrb.mxu0 %v3930_v25  ;;  %1803 = vmatpush.msrb.mxu1 %v3931_v30  ;;  %v1955_v25 = vld [vmem:[%s2670_s15 + $0x1e8] sm:$0xff]  ;;  %v1956_v30 = vld [vmem:[%s2670_s15 + $0x1f0] sm:$0xff] }
 0x312   : > { %1823 = vmatpush.msrb.mxu2 %v3231_v6  ;;  %1843 = vmatpush.msrb.mxu3 %v3236_v21  ;;  %v3950_v6 = vld [vmem:[#allocation47_spill] sm:$0xff]  ;;  %v3951_v21 = vld [vmem:[#allocation48_spill] sm:$0xff] }
 0x313   : > { %1784 = vmatpush.msrb.mxu0 %v3249_v53  ;;  %1804 = vmatpush.msrb.mxu1 %v3252_v54  ;;  %v3952_v53 = vld [vmem:[#allocation49_spill] sm:$0xff]  ;;  %v3953_v54 = vld [vmem:[#allocation50_spill] sm:$0xff] }
 0x314   : > { %1824 = vmatpush.msrb.mxu2 %v3255_v14  ;;  %1844 = vmatpush.msrb.mxu3 %v3260_v15  ;;  %v3954_v14 = vld [vmem:[#allocation51_spill] sm:$0xff]  ;;  %v3955_v15 = vld [vmem:[#allocation52_spill] sm:$0xff] }
 0x315   : > { %1785 = vmatpush.msrb.mxu0 %v3265_v20  ;;  %1805 = vmatpush.msrb.mxu1 %v3268_v22  ;;  %v3956_v20 = vld [vmem:[#allocation53_spill] sm:$0xff]  ;;  %v3957_v22 = vld [vmem:[#allocation54_spill] sm:$0xff] }
 0x316   : > { %1825 = vmatpush.msrb.mxu2 %v3271_v57  ;;  %1845 = vmatpush.msrb.mxu3 %v3276_v58 }
 0x317   : > { %1786 = vmatpush.msrb.mxu0 %v3281_v62  ;;  %1806 = vmatpush.msrb.mxu1 %v3284_v63  ;;  %v3958_v62 = vld [vmem:[#allocation18_spill] sm:$0xff] }
 0x318   : > { %1826 = vmatpush.msrb.mxu2 %v3287_v8  ;;  %1846 = vmatpush.msrb.mxu3 %v3292_v60  ;;  %v3959_v8 = vld [vmem:[#allocation19_spill] sm:$0xff] }
 0x319   : > { %1787 = vmatpush.msrb.mxu0 %v3297_v7  ;;  %1807 = vmatpush.msrb.mxu1 %v3300_v11 }
 0x31a   : > { %1827 = vmatpush.msrb.mxu2 %v3303_v23  ;;  %1847 = vmatpush.msrb.mxu3 %v3308_v24 }
 0x31b   : > { %1788 = vmatpush.msrb.mxu0 %v3313_v27  ;;  %1808 = vmatpush.msrb.mxu1 %v3316_v28  ;;  %v3960_v27 = vld [vmem:[#allocation20_spill] sm:$0xff] }
 0x31c   : > { %1828 = vmatpush.msrb.mxu2 %v3319_v31  ;;  %1848 = vmatpush.msrb.mxu3 %v3324_v32  ;;  %v3961_v31 = vld [vmem:[#allocation21_spill] sm:$0xff] }
 0x31d   : > { %1789 = vmatpush.msrb.mxu0 %v3329_v36  ;;  %1809 = vmatpush.msrb.mxu1 %v3332_v9 }
 0x31e   : > { %1829 = vmatpush.msrb.mxu2 %v3335_v18  ;;  %1849 = vmatpush.msrb.mxu3 %v3340_v19 }
 0x31f   : > { %1790 = vmatpush.msrb.mxu0 %v3345_v10  ;;  %1810 = vmatpush.msrb.mxu1 %v3348_v12 }
 0x320   : > { %1830 = vmatpush.msrb.mxu2 %v3351_v13  ;;  %1850 = vmatpush.msrb.mxu3 %v3356_v37 }
 0x321   : > { %1791 = vmatpush.msrb.mxu0 %v3361_v40  ;;  %1811 = vmatpush.msrb.mxu1 %v3364_v41 }
 0x322   : > { %1831 = vmatpush.msrb.mxu2 %v3367_v44  ;;  %1851 = vmatpush.msrb.mxu3 %v3372_v26 }
 0x323   : > { %1792 = vmatpush.msrb.mxu0 %v3377_v45  ;;  %1812 = vmatpush.msrb.mxu1 %v3380_v49 }
 0x324   : > { %1832 = vmatpush.msrb.mxu2 %v3383_v50  ;;  %1852 = vmatpush.msrb.mxu3 %v3388_v17  ;;  %v3944_v17 = vld [vmem:[#allocation41_spill] sm:$0xff] }
 0x325   : > { %1793 = vmatpush.msrb.mxu0 %v3393_v16  ;;  %1813 = vmatpush.msrb.mxu1 %v3396_v47  ;;  %v3945_v16 = vld [vmem:[#allocation42_spill] sm:$0xff]  ;;  %v3946_v47 = vld [vmem:[#allocation43_spill] sm:$0xff] }
 0x326   : > { %1833 = vmatpush.msrb.mxu2 %v3399_v34  ;;  %1853 = vmatpush.msrb.mxu3 %v3404_v5  ;;  %v3947_v34 = vld [vmem:[#allocation44_spill] sm:$0xff]  ;;  %v3948_v5 = vld [vmem:[#allocation45_spill] sm:$0xff] }
 0x327   : > { %1794 = vmatpush.msrb.mxu0 %v3409_v4  ;;  %1814 = vmatpush.msrb.mxu1 %v3939_v51  ;;  %v3949_v4 = vld [vmem:[#allocation46_spill] sm:$0xff] }
 0x328   : > { %1834 = vmatpush.msrb.mxu2 %v3940_v52  ;;  %1854 = vmatpush.msrb.mxu3 %v3941_v61  ;;  %v3965_v52 = vld [vmem:[#allocation25_spill] sm:$0xff] }
 0x329   : > { %1795 = vmatpush.msrb.mxu0 %v3942_v0  ;;  %1815 = vmatpush.msrb.mxu1 %v3943_v1 }
 0x32a   : > { %1835 = vmatpush.msrb.mxu2 %v3944_v17  ;;  %1855 = vmatpush.msrb.mxu3 %v3945_v16 }
 0x32b   : > { %1796 = vmatpush.msrb.mxu0 %v3946_v47  ;;  %1816 = vmatpush.msrb.mxu1 %v3947_v34 }
 0x32c   : > { %1836 = vmatpush.msrb.mxu2 %v3948_v5  ;;  %1856 = vmatpush.msrb.mxu3 %v3949_v4 }
 0x32d   : > { %1797 = vmatpush.msrb.mxu0 %v3950_v6  ;;  %1817 = vmatpush.msrb.mxu1 %v3951_v21 }
 0x32e   : > { %1837 = vmatpush.msrb.mxu2 %v3952_v53  ;;  %1857 = vmatpush.msrb.mxu3 %v3953_v54 }
 0x32f   : > { %1798 = vmatpush.msrb.mxu0 %v3954_v14  ;;  %1818 = vmatpush.msrb.mxu1 %v3955_v15 }
 0x330   : > { %1838 = vmatpush.msrb.mxu2 %v3956_v20  ;;  %1858 = vmatpush.msrb.mxu3 %v3957_v22 }
 0x38c   : > { %v1450_v57 = vpop.f32.mrf.mxu0  ;;  %v1470_v58 = vpop.f32.mrf.mxu1 }
 0x38d   : > { %v1513_v63 = vadd.f32 %v1450_v57, %v3958_v62  ;;  %v1514_v60 = vadd.f32 %v1470_v58, %v3959_v8  ;;  %v1950_v57 = vld [vmem:[%s2670_s15 + $0x1c0] sm:$0xff]  ;;  %v1951_v58 = vld [vmem:[%s2670_s15 + $0x1c8] sm:$0xff]  ;;  %v1952_v62 = vld [vmem:[%s2670_s15 + $0x1d0] sm:$0xff] }
 0x38e   : > { %v1946_v8 = vld [vmem:[%s2670_s15 + $0x1a0] sm:$0xff] }
 0x38f   : > { %v1517_v7 = vmul.f32 0.5, %v1513_v63  ;;  %v1518_v11 = vmul.f32 0.5, %v1514_v60  ;;  %v1953_v63 = vld [vmem:[%s2670_s15 + $0x1d8] sm:$0xff]  ;;  %v1947_v60 = vld [vmem:[%s2670_s15 + $0x1a8] sm:$0xff] }
 0x391   : > { %2397 = vtanh.f32 %v1517_v7  ;;  %v1948_v7 = vld [vmem:[%s2670_s15 + $0x1b0] sm:$0xff] }
 0x392   : > { %2399 = vtanh.f32 %v1518_v11  ;;  %v1949_v11 = vld [vmem:[%s2670_s15 + $0x1b8] sm:$0xff] }
 0x393   : > { %v1490_v23 = vpop.f32.mrf.mxu2  ;;  %v1510_v24 = vpop.f32.mrf.mxu3 }
 0x394   : > { %v1515_v28 = vadd.f32 %v1490_v23, %v3960_v27  ;;  %v1516_v32 = vadd.f32 %v1510_v24, %v3961_v31  ;;  %v1942_v23 = vld [vmem:[%s2670_s15 + $0x180] sm:$0xff]  ;;  %v1943_v24 = vld [vmem:[%s2670_s15 + $0x188] sm:$0xff]  ;;  %v1944_v27 = vld [vmem:[%s2670_s15 + $0x190] sm:$0xff] }
 0x395   : > { %v1938_v31 = vld [vmem:[%s2670_s15 + $0x160] sm:$0xff] }
 0x396   : > { %v1519_v36 = vmul.f32 0.5, %v1515_v28  ;;  %2401 = vtanh.f32 %v1516_v32  ;;  %v1945_v28 = vld [vmem:[%s2670_s15 + $0x198] sm:$0xff]  ;;  %v1939_v32 = vld [vmem:[%s2670_s15 + $0x168] sm:$0xff] }
 0x397   : > { %v2398_v9 = vpop.eup %2397 }
 0x398   : > { %v2400_v18 = vpop.eup %2399  ;;  %v1523_v19 = vmul.f32 0.5, %v2398_v9  ;;  %2403 = vtanh.f32 %v1519_v36  ;;  %v1940_v36 = vld [vmem:[%s2670_s15 + $0x170] sm:$0xff]  ;;  %v1941_v9 = vld [vmem:[%s2670_s15 + $0x178] sm:$0xff] }
 0x399   : > { %v1524_v10 = vmul.f32 0.5, %v2400_v18  ;;  %v1934_v18 = vld [vmem:[%s2670_s15 + $0x140] sm:$0xff] }
 0x39a   : > { %v1526_v12 = vadd.f32 0.5, %v1523_v19  ;;  %v1935_v19 = vld [vmem:[%s2670_s15 + $0x148] sm:$0xff] }
 0x39b   : > { %v1527_v13 = vadd.f32 0.5, %v1524_v10  ;;  %v1936_v10 = vld [vmem:[%s2670_s15 + $0x150] sm:$0xff] }
 0x39c   : > { %v2402_v37 = vpop.eup %2401 }
 0x39d   : > { %v1530_v40 = vmul.f32 %v1527_v13, %v3630_v39  ;;  %v1531_v41 = vmul.f32 %v2402_v37, %v1526_v12  ;;  %v1937_v12 = vld [vmem:[%s2670_s15 + $0x158] sm:$0xff]  ;;  %v1930_v13 = vld [vmem:[%s2670_s15 + $0x120] sm:$0xff]  ;;  %v1931_v37 = vld [vmem:[%s2670_s15 + $0x128] sm:$0xff] }
 0x39e   : > { %v2404_v44 = vpop.eup %2403 }
 0x39f   : > { %v1532_v26 = vadd.f32 %v1531_v41, %v1530_v40  ;;  %v1525_v45 = vmul.f32 0.5, %v2404_v44  ;;  %v1932_v40 = vld [vmem:[%s2670_s15 + $0x130] sm:$0xff]  ;;  %v1933_v41 = vld [vmem:[%s2670_s15 + $0x138] sm:$0xff]  ;;  %v1926_v44 = vld [vmem:[%s2670_s15 + $0x100] sm:$0xff] }
 0x3a1   : > { %2405 = vtanh.f32 %v1532_v26  ;;  %v1528_v49 = vadd.f32 0.5, %v1525_v45  ;;  %v1928_v45 = vld [vmem:[%s2670_s15 + $0x110] sm:$0xff] }
 0x3a7   : > { %v2406_v50 = vpop.eup %2405 }
 0x3a8   : > { %v1534_v2 = vmul.f32 %v2406_v50, %v1528_v49  ;;  %v1929_v49 = vld [vmem:[%s2670_s15 + $0x118] sm:$0xff]  ;;  %v1922_v50 = vld [vmem:[%s2670_s15 + $0xe0] sm:$0xff] }
 0x3aa   : > { %2292 = vst [vmem:[%s3221_s30 + $0x20] sm:$0xff] %v1534_v2  ;;  %1624 = vmatmul.f32.vlgmr.msra.gmra.mxu0 %v1534_v2  ;;  %1644 = vmatmul.f32.vlgmr.msra.gmra.mxu1 %v1534_v2 }
 0x3ab   : > { %1664 = vmatmul.f32.vlgmr.msra.gmra.mxu2 %v1534_v2  ;;  %1684 = vmatmul.f32.vlgmr.msra.gmra.mxu3 %v1534_v2  ;;  %v1923_v2 = vld [vmem:[%s2670_s15 + $0xe8] sm:$0xff] }
 0x3ac   : > { %1958 = vmatpush.msra.mxu0 %v1954_v3  ;;  %1978 = vmatpush.msra.mxu1 %v1955_v25  ;;  %v1924_v3 = vld [vmem:[%s2670_s15 + $0xf0] sm:$0xff]  ;;  %v1925_v25 = vld [vmem:[%s2670_s15 + $0xf8] sm:$0xff] }
 0x3ad   : > { %1998 = vmatpush.msra.mxu2 %v1956_v30  ;;  %2018 = vmatpush.msra.mxu3 %v1957_v43  ;;  %v1918_v30 = vld [vmem:[%s2670_s15 + $0xc0] sm:$0xff]  ;;  %v1921_v43 = vld [vmem:[%s2670_s15 + $0xd8] sm:$0xff] }
 0x3ae   : > { %1959 = vmatpush.msra.mxu0 %v1950_v57  ;;  %1979 = vmatpush.msra.mxu1 %v1951_v58  ;;  %v3967_v58 = vld [vmem:[#allocation27_spill] sm:$0xff] }
 0x3af   : > { %1999 = vmatpush.msra.mxu2 %v1952_v62  ;;  %2019 = vmatpush.msra.mxu3 %v1953_v63 }
 0x3b0   : > { %1960 = vmatpush.msra.mxu0 %v1946_v8  ;;  %1980 = vmatpush.msra.mxu1 %v1947_v60 }
 0x3b1   : > { %2000 = vmatpush.msra.mxu2 %v1948_v7  ;;  %2020 = vmatpush.msra.mxu3 %v1949_v11  ;;  %v3968_v11 = vld [vmem:[#allocation28_spill] sm:$0xff] }
 0x3b2   : > { %1961 = vmatpush.msra.mxu0 %v1942_v23  ;;  %1981 = vmatpush.msra.mxu1 %v1943_v24  ;;  %v3969_v24 = vld [vmem:[#allocation29_spill] sm:$0xff] }
 0x3b3   : > { %2001 = vmatpush.msra.mxu2 %v1944_v27  ;;  %2021 = vmatpush.msra.mxu3 %v1945_v28 }
 0x3b4   : > { %1962 = vmatpush.msra.mxu0 %v1938_v31  ;;  %1982 = vmatpush.msra.mxu1 %v1939_v32 }
 0x3b5   : > { %2002 = vmatpush.msra.mxu2 %v1940_v36  ;;  %2022 = vmatpush.msra.mxu3 %v1941_v9 }
 0x3b6   : > { %1963 = vmatpush.msra.mxu0 %v1934_v18  ;;  %1983 = vmatpush.msra.mxu1 %v1935_v19 }
 0x3b7   : > { %2003 = vmatpush.msra.mxu2 %v1936_v10  ;;  %2023 = vmatpush.msra.mxu3 %v1937_v12 }
 0x3b8   : > { %1964 = vmatpush.msra.mxu0 %v1930_v13  ;;  %1984 = vmatpush.msra.mxu1 %v1931_v37 }
 0x3b9   : > { %2004 = vmatpush.msra.mxu2 %v1932_v40  ;;  %2024 = vmatpush.msra.mxu3 %v1933_v41 }
 0x3ba   : > { %1965 = vmatpush.msra.mxu0 %v1926_v44 }
 0x3bb   : > { %2005 = vmatpush.msra.mxu2 %v1928_v45  ;;  %2025 = vmatpush.msra.mxu3 %v1929_v49 }
 0x3bc   : > { %1966 = vmatpush.msra.mxu0 %v1922_v50 }
 0x3bd   : > { %2006 = vmatpush.msra.mxu2 %v1924_v3  ;;  %2026 = vmatpush.msra.mxu3 %v1925_v25  ;;  %v3971_v25 = vld [vmem:[#allocation31_spill] sm:$0xff] }
 0x3be   : > { %1967 = vmatpush.msra.mxu0 %v1918_v30 }
 0x3bf   : > { %2027 = vmatpush.msra.mxu3 %v1921_v43 }
 0x427   : > { %v1625_v48 = vpop.f32.mrf.mxu0  ;;  %v1645_v46 = vpop.f32.mrf.mxu1 }
 0x428   : > { %v1688_v42 = vadd.f32 %v1625_v48, %v3962_v29  ;;  %v1689_v59 = vadd.f32 %v1645_v46, %v3963_v56  ;;  %v1919_v48 = vld [vmem:[%s2670_s15 + $0xc8] sm:$0xff]  ;;  %v1920_v46 = vld [vmem:[%s2670_s15 + $0xd0] sm:$0xff]  ;;  %v1914_v29 = vld [vmem:[%s2670_s15 + $0xa0] sm:$0xff] }
 0x429   : > { %2007 = vmatpush.msra.mxu2 %v1920_v46  ;;  %v1916_v56 = vld [vmem:[%s2670_s15 + $0xb0] sm:$0xff]  ;;  %1968 = vmatpush.msra.mxu0 %v1914_v29 }
 0x42a   : > { %v1692_v39 = vmul.f32 0.5, %v1688_v42  ;;  %v1693_v38 = vmul.f32 0.5, %v1689_v59  ;;  %v1915_v42 = vld [vmem:[%s2670_s15 + $0xa8] sm:$0xff]  ;;  %v1917_v59 = vld [vmem:[%s2670_s15 + $0xb8] sm:$0xff]  ;;  %v3972_v29 = vld [vmem:[#allocation32_spill] sm:$0xff] }
 0x42b   : > { %2008 = vmatpush.msra.mxu2 %v1916_v56  ;;  %2028 = vmatpush.msra.mxu3 %v1917_v59  ;;  %v3973_v56 = vld [vmem:[#allocation33_spill] sm:$0xff] }
 0x42c   : > { %2407 = vtanh.f32 %v1692_v39  ;;  %v1910_v39 = vld [vmem:[%s2670_s15 + $0x80] sm:$0xff] }
 0x42d   : > { %2409 = vtanh.f32 %v1693_v38  ;;  %v1911_v38 = vld [vmem:[%s2670_s15 + $0x88] sm:$0xff]  ;;  %1969 = vmatpush.msra.mxu0 %v1910_v39 }
 0x42e   : > { %v1665_v33 = vpop.f32.mrf.mxu2  ;;  %v1685_v55 = vpop.f32.mrf.mxu3 }
 0x42f   : > { %v1690_v51 = vadd.f32 %v1665_v33, %v3964_v35  ;;  %v1691_v61 = vadd.f32 %v1685_v55, %v3965_v52  ;;  %v1912_v33 = vld [vmem:[%s2670_s15 + $0x90] sm:$0xff]  ;;  %v1913_v55 = vld [vmem:[%s2670_s15 + $0x98] sm:$0xff]  ;;  %v1906_v35 = vld [vmem:[%s2670_s15 + $0x60] sm:$0xff] }
 0x430   : > { %2009 = vmatpush.msra.mxu2 %v1912_v33  ;;  %2029 = vmatpush.msra.mxu3 %v1913_v55  ;;  %v1908_v52 = vld [vmem:[%s2670_s15 + $0x70] sm:$0xff] }
 0x431   : > { %v1694_v0 = vmul.f32 0.5, %v1690_v51  ;;  %2411 = vtanh.f32 %v1691_v61  ;;  %v1907_v51 = vld [vmem:[%s2670_s15 + $0x68] sm:$0xff]  ;;  %v1909_v61 = vld [vmem:[%s2670_s15 + $0x78] sm:$0xff]  ;;  %1970 = vmatpush.msra.mxu0 %v1906_v35 }
 0x432   : > { %v2408_v1 = vpop.eup %2407  ;;  %2010 = vmatpush.msra.mxu2 %v1908_v52  ;;  %2030 = vmatpush.msra.mxu3 %v1909_v61 }
 0x433   : > { %v2410_v17 = vpop.eup %2409  ;;  %v1698_v16 = vmul.f32 0.5, %v2408_v1  ;;  %2413 = vtanh.f32 %v1694_v0  ;;  %v1902_v0 = vld [vmem:[%s2670_s15 + $0x40] sm:$0xff]  ;;  %v1903_v1 = vld [vmem:[%s2670_s15 + $0x48] sm:$0xff] }
 0x434   : > { %v1699_v47 = vmul.f32 0.5, %v2410_v17  ;;  %v1904_v17 = vld [vmem:[%s2670_s15 + $0x50] sm:$0xff]  ;;  %1971 = vmatpush.msra.mxu0 %v1902_v0 }
 0x435   : > { %v1701_v34 = vadd.f32 0.5, %v1698_v16  ;;  %v1905_v16 = vld [vmem:[%s2670_s15 + $0x58] sm:$0xff]  ;;  %2011 = vmatpush.msra.mxu2 %v1904_v17 }
 0x436   : > { %v1702_v5 = vadd.f32 0.5, %v1699_v47  ;;  %v1898_v47 = vld [vmem:[%s2670_s15 + $0x20] sm:$0xff]  ;;  %2031 = vmatpush.msra.mxu3 %v1905_v16 }
 0x437   : > { %v2412_v4 = vpop.eup %2411  ;;  %1972 = vmatpush.msra.mxu0 %v1898_v47 }
 0x438   : > { %v1705_v6 = vmul.f32 %v1702_v5, %v1532_v26  ;;  %v1706_v21 = vmul.f32 %v2412_v4, %v1701_v34  ;;  %v1927_v26 = vld [vmem:[%s2670_s15 + $0x108] sm:$0xff]  ;;  %v1900_v5 = vld [vmem:[%s2670_s15 + $0x30] sm:$0xff]  ;;  %v1901_v4 = vld [vmem:[%s2670_s15 + $0x38] sm:$0xff] }
 0x439   : > { %v2414_v53 = vpop.eup %2413  ;;  %1985 = vmatpush.msra.mxu1 %v1927_v26  ;;  %v1899_v34 = vld [vmem:[%s2670_s15 + $0x28] sm:$0xff]  ;;  %2012 = vmatpush.msra.mxu2 %v1900_v5 }
 0x43a   : > { %v3712_v54 = vadd.f32 %v1706_v21, %v1705_v6  ;;  %v1700_v14 = vmul.f32 0.5, %v2414_v53  ;;  %v1894_v6 = vld [vmem:[%s2670_s15] sm:$0xff]  ;;  %v1895_v21 = vld [vmem:[%s2670_s15 + $0x8] sm:$0xff]  ;;  %v1896_v53 = vld [vmem:[%s2670_s15 + $0x10] sm:$0xff]  ;;  %2032 = vmatpush.msra.mxu3 %v1901_v4 }
 0x43b   : > { %1986 = vmatpush.msra.mxu1 %v1923_v2  ;;  %1973 = vmatpush.msra.mxu0 %v1894_v6  ;;  %v3970_v2 = vld [vmem:[#allocation30_spill] sm:$0xff] }
 0x43c   : > { %2415 = vtanh.f32 %v3712_v54  ;;  %v1703_v15 = vadd.f32 0.5, %v1700_v14  ;;  %v1897_v14 = vld [vmem:[%s2670_s15 + $0x18] sm:$0xff]  ;;  %2013 = vmatpush.msra.mxu2 %v1896_v53  ;;  %v2118_v6 = vld [vmem:[%s3221_s30] sm:$0xff] (%p2627_p9)  ;;  %v2122_v53 = vld [vmem:[%s3221_s30 + $0x10] sm:$0xff] (%p2627_p9) }
 0x43d   : > { %1987 = vmatpush.msra.mxu1 %v1919_v48  ;;  %2033 = vmatpush.msra.mxu3 %v1897_v14  ;;  %2119 = vst [vmem:[%s2075_s8] sm:$0xff] (%p2627_p9), %v2118_v6  ;;  %v2124_v14 = vld [vmem:[%s3221_s30 + $0x18] sm:$0xff] (%p2627_p9) }
 0x43e   : > { %2123 = vst [vmem:[%s2075_s8 + $0x20] sm:$0xff] (%p2627_p9), %v2122_v53 }
 0x43f   : > { %1988 = vmatpush.msra.mxu1 %v1915_v42  ;;  %2125 = vst [vmem:[%s2075_s8 + $0x30] sm:$0xff] (%p2627_p9), %v2124_v14 }
 0x441   : > { %1989 = vmatpush.msra.mxu1 %v1911_v38 }
 0x442   : > { %v2416_v20 = vpop.eup %2415 }
 0x443   : > { %v1709_v22 = vmul.f32 %v2416_v20, %v1703_v15  ;;  %1990 = vmatpush.msra.mxu1 %v1907_v51 }
 0x445   : > { %2293 = vst [vmem:[%s3221_s30 + $0x28] sm:$0xff] %v1709_v22  ;;  %1799 = vmatmul.f32.vlgmr.msrb.gmra.mxu0 %v1709_v22  ;;  %1819 = vmatmul.f32.vlgmr.msrb.gmra.mxu1 %v1709_v22 }
 0x446   : > { %1839 = vmatmul.f32.vlgmr.msrb.gmra.mxu2 %v1709_v22  ;;  %1859 = vmatmul.f32.vlgmr.msrb.gmra.mxu3 %v1709_v22  ;;  %v3966_v22 = vld [vmem:[#allocation26_spill] sm:$0xff] }
 0x447   : > { %1991 = vmatpush.msra.mxu1 %v1903_v1 }
 0x449   : > { %1992 = vmatpush.msra.mxu1 %v1899_v34 }
 0x44b   : > { %1993 = vmatpush.msra.mxu1 %v1895_v21  ;;  %v2120_v21 = vld [vmem:[%s3221_s30 + $0x8] sm:$0xff] (%p2627_p9) }
 0x44c   : > { %2121 = vst [vmem:[%s2075_s8 + $0x10] sm:$0xff] (%p2627_p9), %v2120_v21 }
 0x4c2   : > { %v1800_v15 = vpop.f32.mrf.mxu0  ;;  %v1820_v20 = vpop.f32.mrf.mxu1 }
 0x4c3   : > { %v1863_v57 = vadd.f32 %v1800_v15, %v3966_v22  ;;  %v1864_v62 = vadd.f32 %v1820_v20, %v3967_v58  ;;  %v2126_v15 = vld [vmem:[%s3221_s30 + $0x20] sm:$0xff] (%p2627_p9)  ;;  %v2128_v20 = vld [vmem:[%s3221_s30 + $0x28] sm:$0xff] (%p2627_p9) }
 0x4c4   : > { %2127 = vst [vmem:[%s2075_s8 + $0x40] sm:$0xff] (%p2627_p9), %v2126_v15 }
 0x4c5   : > { %v1867_v63 = vmul.f32 0.5, %v1863_v57  ;;  %v1868_v8 = vmul.f32 0.5, %v1864_v62  ;;  %2129 = vst [vmem:[%s2075_s8 + $0x50] sm:$0xff] (%p2627_p9), %v2128_v20 }
 0x4c7   : > { %2417 = vtanh.f32 %v1867_v63 }
 0x4c8   : > { %2419 = vtanh.f32 %v1868_v8 }
 0x4c9   : > { %v1840_v60 = vpop.f32.mrf.mxu2  ;;  %v1860_v7 = vpop.f32.mrf.mxu3 }
 0x4ca   : > { %v1865_v23 = vadd.f32 %v1840_v60, %v3968_v11  ;;  %v1866_v27 = vadd.f32 %v1860_v7, %v3969_v24 }
 0x4cc   : > { %v1869_v28 = vmul.f32 0.5, %v1865_v23  ;;  %2421 = vtanh.f32 %v1866_v27 }
 0x4cd   : > { %v2418_v31 = vpop.eup %2417 }
 0x4ce   : > { %v2420_v32 = vpop.eup %2419  ;;  %v1873_v36 = vmul.f32 0.5, %v2418_v31  ;;  %2423 = vtanh.f32 %v1869_v28 }
 0x4cf   : > { %v1874_v9 = vmul.f32 0.5, %v2420_v32 }
 0x4d0   : > { %v1876_v18 = vadd.f32 0.5, %v1873_v36 }
 0x4d1   : > { %v1877_v19 = vadd.f32 0.5, %v1874_v9 }
 0x4d2   : > { %v2422_v10 = vpop.eup %2421 }
 0x4d3   : > { %v1880_v12 = vmul.f32 %v1877_v19, %v3712_v54  ;;  %v1881_v13 = vmul.f32 %v2422_v10, %v1876_v18 }
 0x4d4   : > { %v2424_v37 = vpop.eup %2423 }
 0x4d5   : > { %v1882_v40 = vadd.f32 %v1881_v13, %v1880_v12  ;;  %v1875_v41 = vmul.f32 0.5, %v2424_v37 }
 0x4d7   : > { %2425 = vtanh.f32 %v1882_v40  ;;  %v1878_v44 = vadd.f32 0.5, %v1875_v41 }
 0x4dd   : > { %v2426_v26 = vpop.eup %2425 }
 0x4de   : > { %v1884_v45 = vmul.f32 %v2426_v26, %v1878_v44 }
 0x4e0   : > { %2294 = vst [vmem:[%s3221_s30 + $0x30] sm:$0xff] %v1884_v45  ;;  %1974 = vmatmul.f32.vlgmr.msra.gmra.mxu0 %v1884_v45  ;;  %1994 = vmatmul.f32.vlgmr.msra.gmra.mxu1 %v1884_v45 }
 0x4e1   : > { %2014 = vmatmul.f32.vlgmr.msra.gmra.mxu2 %v1884_v45  ;;  %2034 = vmatmul.f32.vlgmr.msra.gmra.mxu3 %v1884_v45 }
 0x4e7   : > { %v2130_v22 = vld [vmem:[%s3221_s30 + $0x30] sm:$0xff] (%p2627_p9) }
 0x4e8   : > { %2131 = vst [vmem:[%s2075_s8 + $0x60] sm:$0xff] (%p2627_p9), %v2130_v22 }
 0x55d   : > { %v1975_v49 = vpop.f32.mrf.mxu0  ;;  %v1995_v50 = vpop.f32.mrf.mxu1 }
 0x55e   : > { %v2038_v3 = vadd.f32 %v1975_v49, %v3970_v2  ;;  %v2039_v30 = vadd.f32 %v1995_v50, %v3971_v25 }
 0x560   : > { %v2042_v54 = vmul.f32 0.5, %v2038_v3  ;;  %v2043_v48 = vmul.f32 0.5, %v2039_v30 }
 0x562   : > { %2427 = vtanh.f32 %v2042_v54 }
 0x563   : > { %2429 = vtanh.f32 %v2043_v48 }
 0x564   : > { %v2015_v46 = vpop.f32.mrf.mxu2  ;;  %v2035_v43 = vpop.f32.mrf.mxu3 }
 0x565   : > { %v2040_v42 = vadd.f32 %v2015_v46, %v3972_v29  ;;  %v2041_v59 = vadd.f32 %v2035_v43, %v3973_v56 }
 0x567   : > { %v2044_v39 = vmul.f32 0.5, %v2040_v42  ;;  %2431 = vtanh.f32 %v2041_v59 }
 0x568   : > { %v2428_v38 = vpop.eup %2427 }
 0x569   : > { %v2430_v33 = vpop.eup %2429  ;;  %v2048_v55 = vmul.f32 0.5, %v2428_v38  ;;  %2433 = vtanh.f32 %v2044_v39 }
 0x56a   : > { %v2049_v35 = vmul.f32 0.5, %v2430_v33 }
 0x56b   : > { %v2051_v51 = vadd.f32 0.5, %v2048_v55 }
 0x56c   : > { %v2052_v52 = vadd.f32 0.5, %v2049_v35 }
 0x56d   : > { %v2432_v61 = vpop.eup %2431 }
 0x56e   : > { %v2055_v0 = vmul.f32 %v2052_v52, %v1882_v40  ;;  %v2056_v1 = vmul.f32 %v2432_v61, %v2051_v51 }
 0x56f   : > { %v2434_v17 = vpop.eup %2433 }
 0x570   : > { %v2057_v16 = vadd.f32 %v2056_v1, %v2055_v0  ;;  %v2050_v47 = vmul.f32 0.5, %v2434_v17 }
 0x572   : > { %2435 = vtanh.f32 %v2057_v16  ;;  %v2053_v34 = vadd.f32 0.5, %v2050_v47 }
 0x577   : > { %2070 = sbr.rel (!%p2627_p9) target bundleno = 1412 (0x584), region = 90 }
 0x578   : > { %v2436_v5 = vpop.eup %2435 }
 0x579   : > { %v2059_v4 = vmul.f32 %v2436_v5, %v2053_v34 }
 0x57b   : > { %2295 = vst [vmem:[%s3221_s30 + $0x38] sm:$0xff] %v2059_v4 }
 0x582   : > { %v2132_v57 = vld [vmem:[%s3221_s30 + $0x38] sm:$0xff] }
 0x583   : > { %2133 = vst [vmem:[%s2075_s8 + $0x70] sm:$0xff] %v2132_v57 }
 0x584 PF: > { %s20_s20 = sadd.s32 1, %s2547_s20   ;;  %s3974_s28 = sld [smem:[#allocation13_spill]] }
 0x585   : > { %p17_p1 = scmp.ge.s32.totalorder %s20_s20, 4   ;;  %s3975_s15 = smov %s2531_s16 }
 0x586   : > { %s3976_s16 = smov %s2535_s17  ;;  %s3977_s17 = smov %s2625_s27 }
 0x587   : > { %s3978_s18 = smov %s2543_s19  ;;  %19 = sbr.rel (!%p17_p1) target bundleno = 8 (0x8), region = 195 }
 0x58a   : > { %s3979_s19 = smov %s3974_s28 }
 0x58c   :  { %2149 = vsyncpa [#allocation7], 1 }
 0x58d   :  { %2151 = vsyncpa [#allocation7 + $0x1], 1 }
 0x58e   :  { %2152 = vsyncpa [#allocation9], 1 }
 0x58f   :  { %2154 = vsyncpa [#allocation9 + $0x1], 1 }

// kernel: _lambda_.6
= control target key start
LH: loop header
LB: loop body
LE: loop exit
PB: predicated region body
PF: predicated region fallthrough
CT: control target
= control target key end

     0   :  { %s2419_s15 = smov 0   ;;  %s2421_s16 = smov 0   ;;  %s3632_s0 = inlined_call_operand.vmem [shape: f32[64,256], index: 0, kind: input, shape index: {}]   ;;  %s3633_s1 = inlined_call_operand.vmem [shape: f32[2,128,512], index: 1, kind: input, shape index: {}]   ;;  %s3634_s2 = inlined_call_operand.vmem [shape: f32[2,128,512], index: 2, kind: input, shape index: {}]   ;;  %s3635_s3 = inlined_call_operand.vmem [shape: f32[2,1,512], index: 3, kind: input, shape index: {}]   ;;  %s3636_s4 = inlined_call_operand.vmem [shape: f32[64,256], index: 4, kind: output, shape index: {}]  }
   0x1   :  { %s2423_s17 = smov 0   ;;  %s2425_s18 = smov 0  }
   0x2   :  { %s2427_s19 = smov 0  }
   0x3 LB: > { %s26_s20 = sadd.s32 1, %s2387_s18  ;;  %s2205_s21 = sadd.s32 4294967295, %s2391_s19   ;;  %s2391_s19 = sphi %s2427_s19, %s14_s19   ;;  %s2387_s18 = sphi %s2425_s18, %s3784_s18   ;;  %s2383_s17 = sphi %s2423_s17, %s3783_s17   ;;  %s2379_s16 = sphi %s2421_s16, %s3782_s16   ;;  %s2375_s15 = sphi %s2419_s15, %s3781_s15  }
   0x4   : > { %p28_p0 = scmp.ge.s32.totalorder %s26_s20, 2  ;;  %p42_p1 = scmp.ne.s32.totalorder %s2379_s16, %s2375_s15 }
   0x5   : > { %p43_p2 = scmp.eq.s32.totalorder %s2391_s19, 0  ;;  %p152_p4 = scmp.eq.s32.totalorder %s2205_s21, 1 }
   0x6   : > { %s3786_s20 = smov (%p28_p0, %s26_s20), 0  ;;  %s35_s23 = sadd.s32 1, %s2379_s16 }
   0x7   : > { %p44_p3 = por %p43_p2, %p42_p1  ;;  %s31_s22 = ssub.s32 %s2387_s18, %s3786_s20 }
   0x8   : > { %p33_p5 = scmp.eq.s32.totalorder %s31_s22, 0  ;;  %p2454_p6 = por %p152_p4, %p42_p1 }
   0x9   : > { %p2208_p7 = scmp.ge.s32.totalorder %s2391_s19, 2 }
   0xa   : > { %s2459_s25 = scalar_select %p33_p5, %s2379_s16, %s35_s23  }
   0xb   : > { %174 = sbr.rel (%p2208_p7) target bundleno = 28 (0x1c), region = 16 }
  0x10   : > { %177 = sbr.rel (!%p44_p3) target bundleno = 28 (0x1c), region = 20  ;;  %s179_s26 = sand.u32 (%p44_p3), 1, %s2379_s16  }
  0x11   : > { %s2210_s27 = sshll.u32 (%p44_p3), %s2387_s18, 3  ;;  %s2209_s28 = sshll.u32 (%p44_p3), %s179_s26, 6 }
  0x12   : > { %s186_s5 = scalar_lea.vmem (%p44_p3), %s3632_s0, %s2210_s27  ;;  %s181_s6 = scalar_lea.vmem (%p44_p3), [#allocation5], %s2209_s28 }
  0x13   : > { %v229_v0 = vld [vmem:[%s186_s5] sm:$0xff] (%p44_p3)  ;;  %v231_v1 = vld [vmem:[%s186_s5 + $0x10] sm:$0xff] (%p44_p3) }
  0x14   : > { %v233_v2 = vld [vmem:[%s186_s5 + $0x20] sm:$0xff] (%p44_p3)  ;;  %230 = vst [vmem:[%s181_s6] sm:$0xff] (%p44_p3), %v229_v0  ;;  %v235_v3 = vld [vmem:[%s186_s5 + $0x30] sm:$0xff] (%p44_p3) }
  0x15   : > { %232 = vst [vmem:[%s181_s6 + $0x8] sm:$0xff] %v231_v1  ;;  %v237_v4 = vld [vmem:[%s186_s5 + $0x40] sm:$0xff]  ;;  %v239_v5 = vld [vmem:[%s186_s5 + $0x50] sm:$0xff] }
  0x16   : > { %234 = vst [vmem:[%s181_s6 + $0x10] sm:$0xff] %v233_v2  ;;  %v241_v6 = vld [vmem:[%s186_s5 + $0x60] sm:$0xff]  ;;  %v243_v7 = vld [vmem:[%s186_s5 + $0x70] sm:$0xff] }
  0x17   : > { %236 = vst [vmem:[%s181_s6 + $0x18] sm:$0xff] %v235_v3 }
  0x18   : > { %238 = vst [vmem:[%s181_s6 + $0x20] sm:$0xff] %v237_v4 }
  0x19   : > { %240 = vst [vmem:[%s181_s6 + $0x28] sm:$0xff] %v239_v5 }
  0x1a   : > { %242 = vst [vmem:[%s181_s6 + $0x30] sm:$0xff] %v241_v6 }
  0x1b   : > { %244 = vst [vmem:[%s181_s6 + $0x38] sm:$0xff] %v243_v7 }
  0x1c PF: > { %p2211_p8 = scmp.ge.s32.totalorder %s2391_s19, 1  ;;  %p272_p9 = scmp.lt.s32.totalorder %s2391_s19, 3 }
  0x1e   : > { %p273_p10 = pnand %p2211_p8, %p272_p9 }
  0x20   : > { %276 = sbr.rel (%p273_p10) target bundleno = 1389 (0x56d), region = 70 }
  0x25   : > { %p318_p11 = scmp.lt.s32.totalorder %s2383_s17, 1  ;;  %s279_s12 = sand.u32 1, %s2375_s15  }
  0x26   : > { %s2536_s13 = sshll.u32 %s279_s12, 6  ;;  %s2227_s30 = sshll.u32 (%p2454_p6), %s2383_s17, 3 }
  0x27   : > { %s2471_s7 = scalar_select %p318_p11, %s2383_s17, 1 }
  0x28   : > { %s2556_s22 = scalar_lea.vmem [#allocation5], %s2536_s13  ;;  %s3037_s29 = scalar_lea.vmem [#allocation6], %s2536_s13 }
  0x29   : > { %s2230_s8 = sshll.u32 %s2471_s7, 9  ;;  %s2218_s23 = sshll.u32 %s2471_s7, 2 }
  0x2a   : > { %s2479_s11 = scalar_lea.vmem %s3633_s1, %s2230_s8  ;;  %s2551_s21 = scalar_lea.vmem %s3634_s2, %s2230_s8 }
  0x2b   : > { %v407_v8 = vld [vmem:[%s2479_s11 + $0x1e0] sm:$0xff]  ;;  %v408_v9 = vld [vmem:[%s2479_s11 + $0x1e8] sm:$0xff]  ;;  %v409_v10 = vld [vmem:[%s2479_s11 + $0x1f0] sm:$0xff]  ;;  %s331_s28 = scalar_lea.vmem %s3635_s3, %s2218_s23  ;;  %s2031_s7 = scalar_lea.vmem (%p2454_p6), %s3636_s4, %s2227_s30 }
  0x2c   : > { %421 = vmatpush.msra.mxu0 %v407_v8  ;;  %462 = vmatpush.msra.mxu1 %v408_v9  ;;  %v410_v11 = vld [vmem:[%s2479_s11 + $0x1f8] sm:$0xff]  ;;  %v403_v12 = vld [vmem:[%s2479_s11 + $0x1c0] sm:$0xff]  ;;  %v404_v13 = vld [vmem:[%s2479_s11 + $0x1c8] sm:$0xff] }
  0x2d   : > { %503 = vmatpush.msra.mxu2 %v409_v10  ;;  %544 = vmatpush.msra.mxu3 %v410_v11  ;;  %v405_v14 = vld [vmem:[%s2479_s11 + $0x1d0] sm:$0xff]  ;;  %v406_v15 = vld [vmem:[%s2479_s11 + $0x1d8] sm:$0xff]  ;;  %v399_v16 = vld [vmem:[%s2479_s11 + $0x1a0] sm:$0xff] }
  0x2e   : > { %422 = vmatpush.msra.mxu0 %v403_v12  ;;  %463 = vmatpush.msra.mxu1 %v404_v13  ;;  %v400_v17 = vld [vmem:[%s2479_s11 + $0x1a8] sm:$0xff]  ;;  %v401_v18 = vld [vmem:[%s2479_s11 + $0x1b0] sm:$0xff]  ;;  %v402_v19 = vld [vmem:[%s2479_s11 + $0x1b8] sm:$0xff] }
  0x2f   : > { %504 = vmatpush.msra.mxu2 %v405_v14  ;;  %545 = vmatpush.msra.mxu3 %v406_v15  ;;  %v395_v20 = vld [vmem:[%s2479_s11 + $0x180] sm:$0xff]  ;;  %v396_v21 = vld [vmem:[%s2479_s11 + $0x188] sm:$0xff]  ;;  %v397_v22 = vld [vmem:[%s2479_s11 + $0x190] sm:$0xff] }
  0x30   : > { %423 = vmatpush.msra.mxu0 %v399_v16  ;;  %464 = vmatpush.msra.mxu1 %v400_v17  ;;  %v398_v23 = vld [vmem:[%s2479_s11 + $0x198] sm:$0xff]  ;;  %v391_v24 = vld [vmem:[%s2479_s11 + $0x160] sm:$0xff]  ;;  %v392_v25 = vld [vmem:[%s2479_s11 + $0x168] sm:$0xff] }
  0x31   : > { %505 = vmatpush.msra.mxu2 %v401_v18  ;;  %546 = vmatpush.msra.mxu3 %v402_v19  ;;  %v393_v26 = vld [vmem:[%s2479_s11 + $0x170] sm:$0xff]  ;;  %v394_v27 = vld [vmem:[%s2479_s11 + $0x178] sm:$0xff]  ;;  %v387_v28 = vld [vmem:[%s2479_s11 + $0x140] sm:$0xff] }
  0x32   : > { %424 = vmatpush.msra.mxu0 %v395_v20  ;;  %465 = vmatpush.msra.mxu1 %v396_v21  ;;  %v388_v29 = vld [vmem:[%s2479_s11 + $0x148] sm:$0xff]  ;;  %v389_v30 = vld [vmem:[%s2479_s11 + $0x150] sm:$0xff]  ;;  %v390_v31 = vld [vmem:[%s2479_s11 + $0x158] sm:$0xff] }
  0x33   : > { %506 = vmatpush.msra.mxu2 %v397_v22  ;;  %547 = vmatpush.msra.mxu3 %v398_v23  ;;  %v383_v32 = vld [vmem:[%s2479_s11 + $0x120] sm:$0xff]  ;;  %v384_v33 = vld [vmem:[%s2479_s11 + $0x128] sm:$0xff]  ;;  %v385_v34 = vld [vmem:[%s2479_s11 + $0x130] sm:$0xff] }
  0x34   : > { %425 = vmatpush.msra.mxu0 %v391_v24  ;;  %466 = vmatpush.msra.mxu1 %v392_v25  ;;  %v386_v35 = vld [vmem:[%s2479_s11 + $0x138] sm:$0xff]  ;;  %v379_v36 = vld [vmem:[%s2479_s11 + $0x100] sm:$0xff]  ;;  %v380_v37 = vld [vmem:[%s2479_s11 + $0x108] sm:$0xff] }
  0x35   : > { %507 = vmatpush.msra.mxu2 %v393_v26  ;;  %548 = vmatpush.msra.mxu3 %v394_v27  ;;  %v381_v38 = vld [vmem:[%s2479_s11 + $0x110] sm:$0xff]  ;;  %v382_v39 = vld [vmem:[%s2479_s11 + $0x118] sm:$0xff]  ;;  %v375_v40 = vld [vmem:[%s2479_s11 + $0xe0] sm:$0xff] }
  0x36   : > { %426 = vmatpush.msra.mxu0 %v387_v28  ;;  %467 = vmatpush.msra.mxu1 %v388_v29  ;;  %v376_v41 = vld [vmem:[%s2479_s11 + $0xe8] sm:$0xff]  ;;  %v377_v42 = vld [vmem:[%s2479_s11 + $0xf0] sm:$0xff]  ;;  %v378_v43 = vld [vmem:[%s2479_s11 + $0xf8] sm:$0xff] }
  0x37   : > { %508 = vmatpush.msra.mxu2 %v389_v30  ;;  %549 = vmatpush.msra.mxu3 %v390_v31  ;;  %v371_v44 = vld [vmem:[%s2479_s11 + $0xc0] sm:$0xff]  ;;  %v372_v45 = vld [vmem:[%s2479_s11 + $0xc8] sm:$0xff]  ;;  %v373_v46 = vld [vmem:[%s2479_s11 + $0xd0] sm:$0xff] }
  0x38   : > { %427 = vmatpush.msra.mxu0 %v383_v32  ;;  %468 = vmatpush.msra.mxu1 %v384_v33  ;;  %v374_v47 = vld [vmem:[%s2479_s11 + $0xd8] sm:$0xff]  ;;  %v367_v48 = vld [vmem:[%s2479_s11 + $0xa0] sm:$0xff]  ;;  %v368_v49 = vld [vmem:[%s2479_s11 + $0xa8] sm:$0xff] }
  0x39   : > { %509 = vmatpush.msra.mxu2 %v385_v34  ;;  %550 = vmatpush.msra.mxu3 %v386_v35  ;;  %v369_v50 = vld [vmem:[%s2479_s11 + $0xb0] sm:$0xff]  ;;  %v370_v51 = vld [vmem:[%s2479_s11 + $0xb8] sm:$0xff]  ;;  %v363_v52 = vld [vmem:[%s2479_s11 + $0x80] sm:$0xff] }
  0x3a   : > { %428 = vmatpush.msra.mxu0 %v379_v36  ;;  %469 = vmatpush.msra.mxu1 %v380_v37  ;;  %v364_v53 = vld [vmem:[%s2479_s11 + $0x88] sm:$0xff]  ;;  %v365_v54 = vld [vmem:[%s2479_s11 + $0x90] sm:$0xff]  ;;  %v366_v55 = vld [vmem:[%s2479_s11 + $0x98] sm:$0xff] }
  0x3b   : > { %510 = vmatpush.msra.mxu2 %v381_v38  ;;  %551 = vmatpush.msra.mxu3 %v382_v39  ;;  %v359_v56 = vld [vmem:[%s2479_s11 + $0x60] sm:$0xff]  ;;  %v360_v57 = vld [vmem:[%s2479_s11 + $0x68] sm:$0xff]  ;;  %v361_v58 = vld [vmem:[%s2479_s11 + $0x70] sm:$0xff] }
  0x3c   : > { %429 = vmatpush.msra.mxu0 %v375_v40  ;;  %470 = vmatpush.msra.mxu1 %v376_v41  ;;  %v362_v59 = vld [vmem:[%s2479_s11 + $0x78] sm:$0xff]  ;;  %v355_v60 = vld [vmem:[%s2479_s11 + $0x40] sm:$0xff]  ;;  %v356_v61 = vld [vmem:[%s2479_s11 + $0x48] sm:$0xff] }
  0x3d   : > { %511 = vmatpush.msra.mxu2 %v377_v42  ;;  %552 = vmatpush.msra.mxu3 %v378_v43  ;;  %v357_v62 = vld [vmem:[%s2479_s11 + $0x50] sm:$0xff]  ;;  %v358_v63 = vld [vmem:[%s2479_s11 + $0x58] sm:$0xff]  ;;  %v351_v0 = vld [vmem:[%s2479_s11 + $0x20] sm:$0xff] }
  0x3e   : > { %430 = vmatpush.msra.mxu0 %v371_v44  ;;  %471 = vmatpush.msra.mxu1 %v372_v45  ;;  %v352_v1 = vld [vmem:[%s2479_s11 + $0x28] sm:$0xff]  ;;  %v353_v2 = vld [vmem:[%s2479_s11 + $0x30] sm:$0xff]  ;;  %v354_v3 = vld [vmem:[%s2479_s11 + $0x38] sm:$0xff] }
  0x3f   : > { %512 = vmatpush.msra.mxu2 %v373_v46  ;;  %553 = vmatpush.msra.mxu3 %v374_v47  ;;  %v347_v4 = vld [vmem:[%s2479_s11] sm:$0xff]  ;;  %v348_v5 = vld [vmem:[%s2479_s11 + $0x8] sm:$0xff]  ;;  %v349_v6 = vld [vmem:[%s2479_s11 + $0x10] sm:$0xff] }
  0x40   : > { %431 = vmatpush.msra.mxu0 %v367_v48  ;;  %472 = vmatpush.msra.mxu1 %v368_v49  ;;  %v350_v7 = vld [vmem:[%s2479_s11 + $0x18] sm:$0xff]  ;;  %v339_v8 = vld [vmem:[%s2556_s22] sm:$0xff]  ;;  %v2563_v10 = vld [vmem:[%s2551_s21 + $0x1e8] sm:$0xff] }
  0x41   : > { %513 = vmatpush.msra.mxu2 %v369_v50  ;;  %554 = vmatpush.msra.mxu3 %v370_v51  ;;  %v2560_v9 = vld [vmem:[%s2551_s21 + $0x1e0] sm:$0xff]  ;;  %v2566_v11 = vld [vmem:[%s2551_s21 + $0x1f8] sm:$0xff]  ;;  %v2569_v12 = vld [vmem:[%s2551_s21 + $0x1f0] sm:$0xff] }
  0x42   : > { %432 = vmatpush.msra.mxu0 %v363_v52  ;;  %473 = vmatpush.msra.mxu1 %v364_v53  ;;  %v2572_v13 = vld [vmem:[%s2551_s21 + $0x1c0] sm:$0xff]  ;;  %v2575_v14 = vld [vmem:[%s2551_s21 + $0x1c8] sm:$0xff]  ;;  %v2580_v15 = vld [vmem:[%s2551_s21 + $0x1d8] sm:$0xff] }
  0x43   : > { %514 = vmatpush.msra.mxu2 %v365_v54  ;;  %555 = vmatpush.msra.mxu3 %v366_v55  ;;  %v2583_v16 = vld [vmem:[%s2551_s21 + $0x1d0] sm:$0xff]  ;;  %v2588_v17 = vld [vmem:[%s2551_s21 + $0x1a0] sm:$0xff]  ;;  %v2591_v18 = vld [vmem:[%s2551_s21 + $0x1a8] sm:$0xff] }
  0x44   : > { %433 = vmatpush.msra.mxu0 %v359_v56  ;;  %474 = vmatpush.msra.mxu1 %v360_v57  ;;  %v2596_v19 = vld [vmem:[%s2551_s21 + $0x1b8] sm:$0xff]  ;;  %v2599_v20 = vld [vmem:[%s2551_s21 + $0x1b0] sm:$0xff]  ;;  %v340_v21 = vld [vmem:[%s2556_s22 + $0x8] sm:$0xff] }
  0x45   : > { %515 = vmatpush.msra.mxu2 %v361_v58  ;;  %556 = vmatpush.msra.mxu3 %v362_v59  ;;  %v2608_v22 = vld [vmem:[%s2551_s21 + $0x180] sm:$0xff]  ;;  %v2611_v23 = vld [vmem:[%s2551_s21 + $0x188] sm:$0xff]  ;;  %v2615_v24 = vld [vmem:[%s2551_s21 + $0x198] sm:$0xff] }
  0x46   : > { %434 = vmatpush.msra.mxu0 %v355_v60  ;;  %475 = vmatpush.msra.mxu1 %v356_v61  ;;  %v2618_v25 = vld [vmem:[%s2551_s21 + $0x190] sm:$0xff]  ;;  %v2621_v26 = vld [vmem:[%s2551_s21 + $0x160] sm:$0xff]  ;;  %v2624_v27 = vld [vmem:[%s2551_s21 + $0x168] sm:$0xff] }
  0x47   : > { %516 = vmatpush.msra.mxu2 %v357_v62  ;;  %557 = vmatpush.msra.mxu3 %v358_v63  ;;  %v2629_v28 = vld [vmem:[%s2551_s21 + $0x178] sm:$0xff]  ;;  %v2632_v29 = vld [vmem:[%s2551_s21 + $0x170] sm:$0xff]  ;;  %v2637_v30 = vld [vmem:[%s2551_s21 + $0x140] sm:$0xff] }
  0x48   : > { %435 = vmatpush.msra.mxu0 %v351_v0  ;;  %476 = vmatpush.msra.mxu1 %v352_v1  ;;  %v2640_v31 = vld [vmem:[%s2551_s21 + $0x148] sm:$0xff]  ;;  %v2645_v32 = vld [vmem:[%s2551_s21 + $0x158] sm:$0xff]  ;;  %v2648_v33 = vld [vmem:[%s2551_s21 + $0x150] sm:$0xff] }
  0x49   : > { %517 = vmatpush.msra.mxu2 %v353_v2  ;;  %558 = vmatpush.msra.mxu3 %v354_v3  ;;  %v341_v34 = vld [vmem:[%s2556_s22 + $0x10] sm:$0xff]  ;;  %v2657_v35 = vld [vmem:[%s2551_s21 + $0x120] sm:$0xff]  ;;  %v2660_v36 = vld [vmem:[%s2551_s21 + $0x128] sm:$0xff] }
  0x4a   : > { %436 = vmatpush.msra.mxu0 %v347_v4  ;;  %477 = vmatpush.msra.mxu1 %v348_v5  ;;  %v2664_v37 = vld [vmem:[%s2551_s21 + $0x138] sm:$0xff]  ;;  %v2667_v38 = vld [vmem:[%s2551_s21 + $0x130] sm:$0xff]  ;;  %v2670_v39 = vld [vmem:[%s2551_s21 + $0x100] sm:$0xff] }
  0x4b   : > { %518 = vmatpush.msra.mxu2 %v349_v6  ;;  %559 = vmatpush.msra.mxu3 %v350_v7  ;;  %v2673_v40 = vld [vmem:[%s2551_s21 + $0x108] sm:$0xff]  ;;  %v2678_v41 = vld [vmem:[%s2551_s21 + $0x118] sm:$0xff]  ;;  %v2681_v42 = vld [vmem:[%s2551_s21 + $0x110] sm:$0xff] }
  0x4c   : > { %437 = vmatmul.f32.vlgmr.msra.gmra.mxu0 %v339_v8  ;;  %478 = vmatmul.f32.vlgmr.msra.gmra.mxu1 %v339_v8  ;;  %v2686_v43 = vld [vmem:[%s2551_s21 + $0xe0] sm:$0xff]  ;;  %v2689_v44 = vld [vmem:[%s2551_s21 + $0xe8] sm:$0xff]  ;;  %v2694_v45 = vld [vmem:[%s2551_s21 + $0xf8] sm:$0xff] }
  0x4d   : > { %519 = vmatmul.f32.vlgmr.msra.gmra.mxu2 %v339_v8  ;;  %560 = vmatmul.f32.vlgmr.msra.gmra.mxu3 %v339_v8  ;;  %v2697_v46 = vld [vmem:[%s2551_s21 + $0xf0] sm:$0xff]  ;;  %v342_v47 = vld [vmem:[%s2556_s22 + $0x18] sm:$0xff]  ;;  %v2706_v48 = vld [vmem:[%s2551_s21 + $0xc0] sm:$0xff] }
  0x4e   : > { %690 = vmatpush.msrb.mxu0 %v2560_v9  ;;  %710 = vmatpush.msrb.mxu1 %v2563_v10  ;;  %v2709_v49 = vld [vmem:[%s2551_s21 + $0xc8] sm:$0xff]  ;;  %v2713_v50 = vld [vmem:[%s2551_s21 + $0xd8] sm:$0xff]  ;;  %v2716_v51 = vld [vmem:[%s2551_s21 + $0xd0] sm:$0xff] }
  0x4f   : > { %750 = vmatpush.msrb.mxu3 %v2566_v11  ;;  %730 = vmatpush.msrb.mxu2 %v2569_v12  ;;  %v2719_v52 = vld [vmem:[%s2551_s21 + $0xa0] sm:$0xff]  ;;  %v2722_v53 = vld [vmem:[%s2551_s21 + $0xa8] sm:$0xff]  ;;  %v2727_v54 = vld [vmem:[%s2551_s21 + $0xb8] sm:$0xff] }
  0x50   : > { %691 = vmatpush.msrb.mxu0 %v2572_v13  ;;  %711 = vmatpush.msrb.mxu1 %v2575_v14  ;;  %v2730_v55 = vld [vmem:[%s2551_s21 + $0xb0] sm:$0xff]  ;;  %v2735_v56 = vld [vmem:[%s2551_s21 + $0x80] sm:$0xff]  ;;  %v2738_v57 = vld [vmem:[%s2551_s21 + $0x88] sm:$0xff] }
  0x51   : > { %751 = vmatpush.msrb.mxu3 %v2580_v15  ;;  %731 = vmatpush.msrb.mxu2 %v2583_v16  ;;  %v2743_v58 = vld [vmem:[%s2551_s21 + $0x98] sm:$0xff]  ;;  %v2746_v59 = vld [vmem:[%s2551_s21 + $0x90] sm:$0xff]  ;;  %v343_v60 = vld [vmem:[%s2556_s22 + $0x20] sm:$0xff] }
  0x52   : > { %692 = vmatpush.msrb.mxu0 %v2588_v17  ;;  %712 = vmatpush.msrb.mxu1 %v2591_v18  ;;  %v2755_v61 = vld [vmem:[%s2551_s21 + $0x60] sm:$0xff]  ;;  %v2758_v62 = vld [vmem:[%s2551_s21 + $0x68] sm:$0xff]  ;;  %v2762_v63 = vld [vmem:[%s2551_s21 + $0x78] sm:$0xff] }
  0x53   : > { %752 = vmatpush.msrb.mxu3 %v2596_v19  ;;  %732 = vmatpush.msrb.mxu2 %v2599_v20  ;;  %v2765_v0 = vld [vmem:[%s2551_s21 + $0x70] sm:$0xff]  ;;  %v2768_v1 = vld [vmem:[%s2551_s21 + $0x40] sm:$0xff]  ;;  %v2771_v2 = vld [vmem:[%s2551_s21 + $0x48] sm:$0xff] }
  0x54   : > { %440 = vmatmul.f32.gmra.mxu0 %v340_v21  ;;  %481 = vmatmul.f32.gmra.mxu1 %v340_v21  ;;  %v2776_v3 = vld [vmem:[%s2551_s21 + $0x58] sm:$0xff]  ;;  %v2779_v4 = vld [vmem:[%s2551_s21 + $0x50] sm:$0xff]  ;;  %v2784_v5 = vld [vmem:[%s2551_s21 + $0x20] sm:$0xff] }
  0x55   : > { %522 = vmatmul.f32.gmra.mxu2 %v340_v21  ;;  %563 = vmatmul.f32.gmra.mxu3 %v340_v21  ;;  %3682 = vst [vmem:[#allocation7_spill] sm:$0xff] %v2776_v3  ;;  %v2787_v6 = vld [vmem:[%s2551_s21 + $0x28] sm:$0xff]  ;;  %v2792_v7 = vld [vmem:[%s2551_s21 + $0x38] sm:$0xff]  ;;  %v2795_v8 = vld [vmem:[%s2551_s21 + $0x30] sm:$0xff] }
  0x56   : > { %693 = vmatpush.msrb.mxu0 %v2608_v22  ;;  %713 = vmatpush.msrb.mxu1 %v2611_v23  ;;  %3683 = vst [vmem:[#allocation8_spill] sm:$0xff] %v2792_v7  ;;  %v344_v21 = vld [vmem:[%s2556_s22 + $0x28] sm:$0xff] }
  0x57   : > { %753 = vmatpush.msrb.mxu3 %v2615_v24  ;;  %733 = vmatpush.msrb.mxu2 %v2618_v25 }
  0x58   : > { %694 = vmatpush.msrb.mxu0 %v2621_v26  ;;  %714 = vmatpush.msrb.mxu1 %v2624_v27 }
  0x59   : > { %754 = vmatpush.msrb.mxu3 %v2629_v28  ;;  %734 = vmatpush.msrb.mxu2 %v2632_v29 }
  0x5a   : > { %695 = vmatpush.msrb.mxu0 %v2637_v30  ;;  %715 = vmatpush.msrb.mxu1 %v2640_v31 }
  0x5b   : > { %755 = vmatpush.msrb.mxu3 %v2645_v32  ;;  %735 = vmatpush.msrb.mxu2 %v2648_v33 }
  0x5c   : > { %443 = vmatmul.f32.gmra.mxu0 %v341_v34  ;;  %484 = vmatmul.f32.gmra.mxu1 %v341_v34 }
  0x5d   : > { %525 = vmatmul.f32.gmra.mxu2 %v341_v34  ;;  %566 = vmatmul.f32.gmra.mxu3 %v341_v34  ;;  %v2804_v34 = vld [vmem:[%s2551_s21] sm:$0xff] }
  0x5e   : > { %696 = vmatpush.msrb.mxu0 %v2657_v35  ;;  %716 = vmatpush.msrb.mxu1 %v2660_v36 }
  0x5f   : > { %756 = vmatpush.msrb.mxu3 %v2664_v37  ;;  %736 = vmatpush.msrb.mxu2 %v2667_v38 }
  0x60   : > { %697 = vmatpush.msrb.mxu0 %v2670_v39  ;;  %717 = vmatpush.msrb.mxu1 %v2673_v40 }
  0x61   : > { %757 = vmatpush.msrb.mxu3 %v2678_v41  ;;  %737 = vmatpush.msrb.mxu2 %v2681_v42 }
  0x62   : > { %698 = vmatpush.msrb.mxu0 %v2686_v43  ;;  %718 = vmatpush.msrb.mxu1 %v2689_v44 }
  0x63   : > { %758 = vmatpush.msrb.mxu3 %v2694_v45  ;;  %738 = vmatpush.msrb.mxu2 %v2697_v46 }
  0x64   : > { %446 = vmatmul.f32.gmra.mxu0 %v342_v47  ;;  %487 = vmatmul.f32.gmra.mxu1 %v342_v47 }
  0x65   : > { %528 = vmatmul.f32.gmra.mxu2 %v342_v47  ;;  %569 = vmatmul.f32.gmra.mxu3 %v342_v47  ;;  %v2807_v47 = vld [vmem:[%s2551_s21 + $0x8] sm:$0xff] }
  0x66   : > { %699 = vmatpush.msrb.mxu0 %v2706_v48  ;;  %719 = vmatpush.msrb.mxu1 %v2709_v49 }
  0x67   : > { %759 = vmatpush.msrb.mxu3 %v2713_v50  ;;  %739 = vmatpush.msrb.mxu2 %v2716_v51 }
  0x68   : > { %700 = vmatpush.msrb.mxu0 %v2719_v52  ;;  %720 = vmatpush.msrb.mxu1 %v2722_v53 }
  0x69   : > { %760 = vmatpush.msrb.mxu3 %v2727_v54  ;;  %740 = vmatpush.msrb.mxu2 %v2730_v55 }
  0x6a   : > { %701 = vmatpush.msrb.mxu0 %v2735_v56  ;;  %721 = vmatpush.msrb.mxu1 %v2738_v57 }
  0x6b   : > { %761 = vmatpush.msrb.mxu3 %v2743_v58  ;;  %741 = vmatpush.msrb.mxu2 %v2746_v59 }
  0x6c   : > { %449 = vmatmul.f32.gmra.mxu0 %v343_v60  ;;  %490 = vmatmul.f32.gmra.mxu1 %v343_v60 }
  0x6d   : > { %531 = vmatmul.f32.gmra.mxu2 %v343_v60  ;;  %572 = vmatmul.f32.gmra.mxu3 %v343_v60  ;;  %v2811_v60 = vld [vmem:[%s2551_s21 + $0x18] sm:$0xff] }
  0x6e   : > { %702 = vmatpush.msrb.mxu0 %v2755_v61  ;;  %722 = vmatpush.msrb.mxu1 %v2758_v62 }
  0x6f   : > { %762 = vmatpush.msrb.mxu3 %v2762_v63  ;;  %742 = vmatpush.msrb.mxu2 %v2765_v0 }
  0x70   : > { %703 = vmatpush.msrb.mxu0 %v2768_v1  ;;  %723 = vmatpush.msrb.mxu1 %v2771_v2 }
  0x71   : > { %763 = vmatpush.msrb.mxu3 %v2776_v3  ;;  %743 = vmatpush.msrb.mxu2 %v2779_v4  ;;  %v2814_v3 = vld [vmem:[%s2551_s21 + $0x10] sm:$0xff] }
  0x72   : > { %704 = vmatpush.msrb.mxu0 %v2784_v5  ;;  %724 = vmatpush.msrb.mxu1 %v2787_v6 }
  0x73   : > { %764 = vmatpush.msrb.mxu3 %v2792_v7  ;;  %744 = vmatpush.msrb.mxu2 %v2795_v8  ;;  %v345_v7 = vld [vmem:[%s2556_s22 + $0x30] sm:$0xff] }
  0x74   : > { %452 = vmatmul.f32.gmra.mxu0 %v344_v21  ;;  %493 = vmatmul.f32.gmra.mxu1 %v344_v21 }
  0x75   : > { %534 = vmatmul.f32.gmra.mxu2 %v344_v21  ;;  %575 = vmatmul.f32.gmra.mxu3 %v344_v21  ;;  %v346_v21 = vld [vmem:[%s2556_s22 + $0x38] sm:$0xff] }
  0x76   : > { %705 = vmatpush.msrb.mxu0 %v2804_v34  ;;  %725 = vmatpush.msrb.mxu1 %v2807_v47 }
  0x77   : > { %765 = vmatpush.msrb.mxu3 %v2811_v60  ;;  %745 = vmatpush.msrb.mxu2 %v2814_v3 }
  0x78   : > { %864 = vmatpush.msra.mxu0 %v2560_v9  ;;  %884 = vmatpush.msra.mxu1 %v2563_v10 }
  0x79   : > { %904 = vmatpush.msra.mxu2 %v2569_v12  ;;  %924 = vmatpush.msra.mxu3 %v2566_v11 }
  0x7a   : > { %865 = vmatpush.msra.mxu0 %v2572_v13  ;;  %885 = vmatpush.msra.mxu1 %v2575_v14 }
  0x7b   : > { %905 = vmatpush.msra.mxu2 %v2583_v16  ;;  %925 = vmatpush.msra.mxu3 %v2580_v15 }
  0x7c   : > { %455 = vmatmul.f32.gmra.mxu0 %v345_v7  ;;  %496 = vmatmul.f32.gmra.mxu1 %v345_v7 }
  0x7d   : > { %537 = vmatmul.f32.gmra.mxu2 %v345_v7  ;;  %578 = vmatmul.f32.gmra.mxu3 %v345_v7  ;;  %v2393_v7 = vmov 0.0  }
  0x7e   : > { %866 = vmatpush.msra.mxu0 %v2588_v17  ;;  %886 = vmatpush.msra.mxu1 %v2591_v18 }
  0x7f   : > { %906 = vmatpush.msra.mxu2 %v2599_v20  ;;  %926 = vmatpush.msra.mxu3 %v2596_v19 }
  0x80   : > { %867 = vmatpush.msra.mxu0 %v2608_v22  ;;  %887 = vmatpush.msra.mxu1 %v2611_v23 }
  0x81   : > { %907 = vmatpush.msra.mxu2 %v2618_v25  ;;  %927 = vmatpush.msra.mxu3 %v2615_v24 }
  0x82   : > { %868 = vmatpush.msra.mxu0 %v2621_v26  ;;  %888 = vmatpush.msra.mxu1 %v2624_v27 }
  0x83   : > { %908 = vmatpush.msra.mxu2 %v2632_v29  ;;  %928 = vmatpush.msra.mxu3 %v2629_v28 }
  0x84   : > { %458 = vmatmul.f32.gmra.mxu0 %v346_v21  ;;  %499 = vmatmul.f32.gmra.mxu1 %v346_v21 }
  0x85   : > { %540 = vmatmul.f32.gmra.mxu2 %v346_v21  ;;  %581 = vmatmul.f32.gmra.mxu3 %v346_v21  ;;  %v3684_v21 = vld [vmem:[#allocation7_spill] sm:$0xff] }
  0x86   : > { %869 = vmatpush.msra.mxu0 %v2637_v30  ;;  %889 = vmatpush.msra.mxu1 %v2640_v31 }
  0x87   : > { %909 = vmatpush.msra.mxu2 %v2648_v33  ;;  %929 = vmatpush.msra.mxu3 %v2645_v32 }
  0x88   : > { %870 = vmatpush.msra.mxu0 %v2657_v35  ;;  %890 = vmatpush.msra.mxu1 %v2660_v36 }
  0x89   : > { %910 = vmatpush.msra.mxu2 %v2667_v38  ;;  %930 = vmatpush.msra.mxu3 %v2664_v37 }
  0x8a   : > { %871 = vmatpush.msra.mxu0 %v2670_v39  ;;  %891 = vmatpush.msra.mxu1 %v2673_v40 }
  0x8b   : > { %911 = vmatpush.msra.mxu2 %v2681_v42  ;;  %931 = vmatpush.msra.mxu3 %v2678_v41 }
  0x8c   : > { %706 = vmatmul.f32.vlgmr.msrb.gmra.mxu0 %v2393_v7  ;;  %726 = vmatmul.f32.vlgmr.msrb.gmra.mxu1 %v2393_v7 }
  0x8d   : > { %746 = vmatmul.f32.vlgmr.msrb.gmra.mxu2 %v2393_v7  ;;  %766 = vmatmul.f32.vlgmr.msrb.gmra.mxu3 %v2393_v7  ;;  %v3685_v7 = vld [vmem:[#allocation8_spill] sm:$0xff] }
  0x8e   : > { %872 = vmatpush.msra.mxu0 %v2686_v43  ;;  %892 = vmatpush.msra.mxu1 %v2689_v44 }
  0x8f   : > { %912 = vmatpush.msra.mxu2 %v2697_v46  ;;  %932 = vmatpush.msra.mxu3 %v2694_v45 }
  0x90   : > { %873 = vmatpush.msra.mxu0 %v2706_v48  ;;  %893 = vmatpush.msra.mxu1 %v2709_v49 }
  0x91   : > { %913 = vmatpush.msra.mxu2 %v2716_v51  ;;  %933 = vmatpush.msra.mxu3 %v2713_v50 }
  0x92   : > { %874 = vmatpush.msra.mxu0 %v2719_v52  ;;  %894 = vmatpush.msra.mxu1 %v2722_v53 }
  0x93   : > { %914 = vmatpush.msra.mxu2 %v2730_v55  ;;  %934 = vmatpush.msra.mxu3 %v2727_v54 }
  0x94   : > { %875 = vmatpush.msra.mxu0 %v2735_v56  ;;  %895 = vmatpush.msra.mxu1 %v2738_v57 }
  0x95   : > { %915 = vmatpush.msra.mxu2 %v2746_v59  ;;  %935 = vmatpush.msra.mxu3 %v2743_v58 }
  0x96   : > { %876 = vmatpush.msra.mxu0 %v2755_v61  ;;  %896 = vmatpush.msra.mxu1 %v2758_v62 }
  0x97   : > { %916 = vmatpush.msra.mxu2 %v2765_v0  ;;  %936 = vmatpush.msra.mxu3 %v2762_v63 }
  0x98   : > { %877 = vmatpush.msra.mxu0 %v2768_v1  ;;  %897 = vmatpush.msra.mxu1 %v2771_v2 }
  0x99   : > { %917 = vmatpush.msra.mxu2 %v2779_v4  ;;  %937 = vmatpush.msra.mxu3 %v3684_v21 }
  0x9a   : > { %878 = vmatpush.msra.mxu0 %v2784_v5  ;;  %898 = vmatpush.msra.mxu1 %v2787_v6 }
  0x9b   : > { %918 = vmatpush.msra.mxu2 %v2795_v8  ;;  %938 = vmatpush.msra.mxu3 %v3685_v7 }
  0x9c   : > { %879 = vmatpush.msra.mxu0 %v2804_v34  ;;  %899 = vmatpush.msra.mxu1 %v2807_v47 }
  0x9d   : > { %919 = vmatpush.msra.mxu2 %v2814_v3  ;;  %939 = vmatpush.msra.mxu3 %v2811_v60 }
  0x9e   : > { %1039 = vmatpush.msrb.mxu0 %v2560_v9  ;;  %1059 = vmatpush.msrb.mxu1 %v2563_v10 }
  0x9f   : > { %1079 = vmatpush.msrb.mxu2 %v2569_v12  ;;  %1099 = vmatpush.msrb.mxu3 %v2566_v11  ;;  %v411_v11 = vld [vmem:[%s331_s28] sm:$0xf] }
  0xa0   : > { %1040 = vmatpush.msrb.mxu0 %v2572_v13  ;;  %1060 = vmatpush.msrb.mxu1 %v2575_v14  ;;  %v413_v12 = vperm.slane %v411_v11, 0  ;;  %v414_v13 = vperm.slane %v411_v11, 1 }
  0xa1   : > { %1080 = vmatpush.msrb.mxu2 %v2583_v16  ;;  %1100 = vmatpush.msrb.mxu3 %v2580_v15 }
  0xa2   : > { %1041 = vmatpush.msrb.mxu0 %v2588_v17  ;;  %1061 = vmatpush.msrb.mxu1 %v2591_v18 }
  0xa3   : > { %1081 = vmatpush.msrb.mxu2 %v2599_v20  ;;  %1101 = vmatpush.msrb.mxu3 %v2596_v19  ;;  %v2962_v20 = vperm.slane %v411_v11, 2 }
  0xa4   : > { %1042 = vmatpush.msrb.mxu0 %v2608_v22  ;;  %1062 = vmatpush.msrb.mxu1 %v2611_v23  ;;  %v2964_v22 = vperm.slane %v411_v11, 3 }
  0xa5   : > { %1082 = vmatpush.msrb.mxu2 %v2618_v25  ;;  %1102 = vmatpush.msrb.mxu3 %v2615_v24 }
  0xa6   : > { %1043 = vmatpush.msrb.mxu0 %v2621_v26  ;;  %1063 = vmatpush.msrb.mxu1 %v2624_v27 }
  0xa7   : > { %1083 = vmatpush.msrb.mxu2 %v2632_v29  ;;  %1103 = vmatpush.msrb.mxu3 %v2629_v28 }
  0xa8   : > { %1044 = vmatpush.msrb.mxu0 %v2637_v30  ;;  %1064 = vmatpush.msrb.mxu1 %v2640_v31 }
  0xa9   : > { %1084 = vmatpush.msrb.mxu2 %v2648_v33  ;;  %1104 = vmatpush.msrb.mxu3 %v2645_v32 }
  0xaa   : > { %1045 = vmatpush.msrb.mxu0 %v2657_v35  ;;  %1065 = vmatpush.msrb.mxu1 %v2660_v36 }
  0xab   : > { %1085 = vmatpush.msrb.mxu2 %v2667_v38  ;;  %1105 = vmatpush.msrb.mxu3 %v2664_v37 }
  0xac   : > { %1046 = vmatpush.msrb.mxu0 %v2670_v39  ;;  %1066 = vmatpush.msrb.mxu1 %v2673_v40 }
  0xad   : > { %1086 = vmatpush.msrb.mxu2 %v2681_v42  ;;  %1106 = vmatpush.msrb.mxu3 %v2678_v41 }
  0xae   : > { %1047 = vmatpush.msrb.mxu0 %v2686_v43  ;;  %1067 = vmatpush.msrb.mxu1 %v2689_v44 }
  0xaf   : > { %1087 = vmatpush.msrb.mxu2 %v2697_v46  ;;  %1107 = vmatpush.msrb.mxu3 %v2694_v45 }
  0xb0   : > { %1048 = vmatpush.msrb.mxu0 %v2706_v48  ;;  %1068 = vmatpush.msrb.mxu1 %v2709_v49 }
  0xb1   : > { %1088 = vmatpush.msrb.mxu2 %v2716_v51  ;;  %1108 = vmatpush.msrb.mxu3 %v2713_v50 }
  0xb2   : > { %1049 = vmatpush.msrb.mxu0 %v2719_v52  ;;  %1069 = vmatpush.msrb.mxu1 %v2722_v53 }
  0xb3   : > { %1089 = vmatpush.msrb.mxu2 %v2730_v55  ;;  %1109 = vmatpush.msrb.mxu3 %v2727_v54 }
  0xb4   : > { %1050 = vmatpush.msrb.mxu0 %v2735_v56  ;;  %1070 = vmatpush.msrb.mxu1 %v2738_v57 }
  0xb5   : > { %1090 = vmatpush.msrb.mxu2 %v2746_v59  ;;  %1110 = vmatpush.msrb.mxu3 %v2743_v58 }
  0xb6   : > { %1051 = vmatpush.msrb.mxu0 %v2755_v61  ;;  %1071 = vmatpush.msrb.mxu1 %v2758_v62 }
  0xb7   : > { %1091 = vmatpush.msrb.mxu2 %v2765_v0  ;;  %1111 = vmatpush.msrb.mxu3 %v2762_v63 }
  0xb8   : > { %1052 = vmatpush.msrb.mxu0 %v2768_v1  ;;  %1072 = vmatpush.msrb.mxu1 %v2771_v2 }
  0xb9   : > { %1092 = vmatpush.msrb.mxu2 %v2779_v4  ;;  %1112 = vmatpush.msrb.mxu3 %v3684_v21 }
  0xba   : > { %1053 = vmatpush.msrb.mxu0 %v2784_v5  ;;  %1073 = vmatpush.msrb.mxu1 %v2787_v6 }
  0xbb   : > { %1093 = vmatpush.msrb.mxu2 %v2795_v8  ;;  %1113 = vmatpush.msrb.mxu3 %v3685_v7 }
  0xbc   : > { %1054 = vmatpush.msrb.mxu0 %v2804_v34  ;;  %1074 = vmatpush.msrb.mxu1 %v2807_v47 }
  0xbd   : > { %1094 = vmatpush.msrb.mxu2 %v2814_v3  ;;  %1114 = vmatpush.msrb.mxu3 %v2811_v60 }
  0xc9   : > { %v438_v9 = vpop.f32.mrf.mxu0  ;;  %v479_v10 = vpop.f32.mrf.mxu1 }
  0xca   : > { %v439_v60 = vadd.f32 %v438_v9, %v413_v12  ;;  %v480_v21 = vadd.f32 %v479_v10, %v414_v13 }
  0xd0   : > { %v2954_v14 = vpop.f32.mrf.mxu2  ;;  %v2956_v15 = vpop.f32.mrf.mxu3 }
  0xd1   : > { %v441_v16 = vpop.f32.mrf.mxu0  ;;  %v482_v17 = vpop.f32.mrf.mxu1  ;;  %v562_v9 = vadd.f32 %v2956_v15, %v2964_v22 }
  0xd2   : > { %v2958_v18 = vadd.f32 %v441_v16, %v413_v12  ;;  %v2960_v19 = vadd.f32 %v482_v17, %v414_v13 }
  0xd8   : > { %v523_v23 = vpop.f32.mrf.mxu2  ;;  %v564_v24 = vpop.f32.mrf.mxu3 }
  0xd9   : > { %v2967_v25 = vadd.f32 %v523_v23, %v2962_v20  ;;  %v2970_v26 = vadd.f32 %v564_v24, %v2964_v22  ;;  %v444_v27 = vpop.f32.mrf.mxu0  ;;  %v485_v28 = vpop.f32.mrf.mxu1 }
  0xda   : > { %v2972_v29 = vadd.f32 %v444_v27, %v413_v12  ;;  %v2974_v30 = vadd.f32 %v485_v28, %v414_v13 }
  0xe0   : > { %v526_v31 = vpop.f32.mrf.mxu2  ;;  %v567_v32 = vpop.f32.mrf.mxu3 }
  0xe1   : > { %v2977_v33 = vadd.f32 %v526_v31, %v2962_v20  ;;  %v2980_v35 = vadd.f32 %v567_v32, %v2964_v22  ;;  %v447_v36 = vpop.f32.mrf.mxu0  ;;  %v488_v37 = vpop.f32.mrf.mxu1 }
  0xe2   : > { %v2982_v38 = vadd.f32 %v447_v36, %v413_v12  ;;  %v2984_v39 = vadd.f32 %v488_v37, %v414_v13  ;;  %v521_v36 = vadd.f32 %v2954_v14, %v2962_v20 }
  0xe4   : > { %3686 = vst [vmem:[#allocation7_spill] sm:$0xff] %v2982_v38  ;;  %v3277_v38 = vld [vmem:[%s2551_s21 + $0x30] sm:$0xff] }
  0xe5   : > { %3687 = vst [vmem:[#allocation8_spill] sm:$0xff] %v2984_v39  ;;  %v3272_v39 = vld [vmem:[%s2551_s21 + $0x28] sm:$0xff] }
  0xe6   : > { %3720 = vst [vmem:[#allocation41_spill] sm:$0xff] %v3272_v39 }
  0xe7   : > { %3721 = vst [vmem:[#allocation42_spill] sm:$0xff] %v3277_v38 }
  0xe8   : > { %v529_v40 = vpop.f32.mrf.mxu2  ;;  %v570_v41 = vpop.f32.mrf.mxu3 }
  0xe9   : > { %v2987_v42 = vadd.f32 %v529_v40, %v2962_v20  ;;  %v2990_v43 = vadd.f32 %v570_v41, %v2964_v22  ;;  %v450_v44 = vpop.f32.mrf.mxu0  ;;  %v491_v45 = vpop.f32.mrf.mxu1 }
  0xea   : > { %v2992_v46 = vadd.f32 %v450_v44, %v413_v12  ;;  %v2994_v48 = vadd.f32 %v491_v45, %v414_v13 }
  0xeb   : > { %3688 = vst [vmem:[#allocation9_spill] sm:$0xff] %v2987_v42  ;;  %v3269_v42 = vld [vmem:[%s2551_s21 + $0x20] sm:$0xff] }
  0xec   : > { %3689 = vst [vmem:[#allocation10_spill] sm:$0xff] %v2990_v43  ;;  %v3264_v43 = vld [vmem:[%s2551_s21 + $0x58] sm:$0xff] }
  0xed   : > { %3690 = vst [vmem:[#allocation11_spill] sm:$0xff] %v2992_v46  ;;  %v3261_v46 = vld [vmem:[%s2551_s21 + $0x50] sm:$0xff] }
  0xee   : > { %3691 = vst [vmem:[#allocation12_spill] sm:$0xff] %v2994_v48  ;;  %v3258_v48 = vld [vmem:[%s2551_s21 + $0x48] sm:$0xff] }
  0xef   : > { %3716 = vst [vmem:[#allocation37_spill] sm:$0xff] %v3258_v48 }
  0xf0   : > { %v532_v49 = vpop.f32.mrf.mxu2  ;;  %v573_v50 = vpop.f32.mrf.mxu3  ;;  %3717 = vst [vmem:[#allocation38_spill] sm:$0xff] %v3261_v46 }
  0xf1   : > { %v2997_v51 = vadd.f32 %v532_v49, %v2962_v20  ;;  %v3000_v52 = vadd.f32 %v573_v50, %v2964_v22  ;;  %v453_v53 = vpop.f32.mrf.mxu0  ;;  %v494_v54 = vpop.f32.mrf.mxu1  ;;  %3718 = vst [vmem:[#allocation39_spill] sm:$0xff] %v3264_v43 }
  0xf2   : > { %v3002_v55 = vadd.f32 %v453_v53, %v413_v12  ;;  %v3004_v56 = vadd.f32 %v494_v54, %v414_v13  ;;  %3719 = vst [vmem:[#allocation40_spill] sm:$0xff] %v3269_v42 }
  0xf3   : > { %3692 = vst [vmem:[#allocation13_spill] sm:$0xff] %v2997_v51  ;;  %v3253_v51 = vld [vmem:[%s2551_s21 + $0x40] sm:$0xff] }
  0xf4   : > { %3693 = vst [vmem:[#allocation14_spill] sm:$0xff] %v3000_v52  ;;  %v3250_v52 = vld [vmem:[%s2551_s21 + $0x78] sm:$0xff] }
  0xf5   : > { %3694 = vst [vmem:[#allocation15_spill] sm:$0xff] %v3002_v55  ;;  %v3247_v55 = vld [vmem:[%s2551_s21 + $0x70] sm:$0xff] }
  0xf6   : > { %3695 = vst [vmem:[#allocation16_spill] sm:$0xff] %v3004_v56  ;;  %v3242_v56 = vld [vmem:[%s2551_s21 + $0x68] sm:$0xff] }
  0xf7   : > { %3712 = vst [vmem:[#allocation33_spill] sm:$0xff] %v3242_v56 }
  0xf8   : > { %v535_v57 = vpop.f32.mrf.mxu2  ;;  %v576_v58 = vpop.f32.mrf.mxu3  ;;  %3713 = vst [vmem:[#allocation34_spill] sm:$0xff] %v3247_v55 }
  0xf9   : > { %v3007_v59 = vadd.f32 %v535_v57, %v2962_v20  ;;  %v3010_v61 = vadd.f32 %v576_v58, %v2964_v22  ;;  %v456_v62 = vpop.f32.mrf.mxu0  ;;  %v497_v63 = vpop.f32.mrf.mxu1  ;;  %3714 = vst [vmem:[#allocation35_spill] sm:$0xff] %v3250_v52 }
  0xfa   : > { %v3012_v0 = vadd.f32 %v456_v62, %v413_v12  ;;  %v3014_v1 = vadd.f32 %v497_v63, %v414_v13  ;;  %3715 = vst [vmem:[#allocation36_spill] sm:$0xff] %v3253_v51 }
  0xfb   : > { %3696 = vst [vmem:[#allocation17_spill] sm:$0xff] %v3007_v59  ;;  %v3239_v59 = vld [vmem:[%s2551_s21 + $0x60] sm:$0xff] }
  0xfc   : > { %3697 = vst [vmem:[#allocation18_spill] sm:$0xff] %v3010_v61  ;;  %v3236_v61 = vld [vmem:[%s2551_s21 + $0x98] sm:$0xff] }
  0xfd   : > { %3698 = vst [vmem:[#allocation19_spill] sm:$0xff] %v3012_v0  ;;  %v3231_v0 = vld [vmem:[%s2551_s21 + $0x90] sm:$0xff] }
  0xfe   : > { %3699 = vst [vmem:[#allocation20_spill] sm:$0xff] %v3014_v1  ;;  %v3228_v1 = vld [vmem:[%s2551_s21 + $0x88] sm:$0xff] }
  0xff   : > { %3708 = vst [vmem:[#allocation29_spill] sm:$0xff] %v3228_v1 }
 0x100   : > { %v538_v2 = vpop.f32.mrf.mxu2  ;;  %v579_v3 = vpop.f32.mrf.mxu3  ;;  %3709 = vst [vmem:[#allocation30_spill] sm:$0xff] %v3231_v0 }
 0x101   : > { %v3017_v4 = vadd.f32 %v538_v2, %v2962_v20  ;;  %v3020_v5 = vadd.f32 %v579_v3, %v2964_v22  ;;  %v459_v6 = vpop.f32.mrf.mxu0  ;;  %v500_v8 = vpop.f32.mrf.mxu1  ;;  %v3041_v2 = vld [vmem:[%s2551_s21 + $0x1e0] sm:$0xff]  ;;  %v3044_v3 = vld [vmem:[%s2551_s21 + $0x1e8] sm:$0xff]  ;;  %3710 = vst [vmem:[#allocation31_spill] sm:$0xff] %v3236_v61 }
 0x102   : > { %v3022_v34 = vadd.f32 %v459_v6, %v413_v12  ;;  %v3024_v47 = vadd.f32 %v500_v8, %v414_v13  ;;  %3706 = vst [vmem:[#allocation27_spill] sm:$0xff] %v3041_v2  ;;  %v3047_v6 = vld [vmem:[%s2551_s21 + $0x1f0] sm:$0xff] }
 0x103   : > { %3700 = vst [vmem:[#allocation21_spill] sm:$0xff] %v3017_v4  ;;  %v3225_v4 = vld [vmem:[%s2551_s21 + $0x80] sm:$0xff] }
 0x104   : > { %3701 = vst [vmem:[#allocation22_spill] sm:$0xff] %v3020_v5  ;;  %v3220_v5 = vld [vmem:[%s2551_s21 + $0xb8] sm:$0xff] }
 0x105   : > { %3702 = vst [vmem:[#allocation23_spill] sm:$0xff] %v3022_v34  ;;  %v3215_v34 = vld [vmem:[%s2551_s21 + $0xb0] sm:$0xff] }
 0x106   : > { %3703 = vst [vmem:[#allocation24_spill] sm:$0xff] %v3024_v47  ;;  %v3212_v47 = vld [vmem:[%s2551_s21 + $0xa8] sm:$0xff] }
 0x107   : > { %3707 = vst [vmem:[#allocation28_spill] sm:$0xff] %v3044_v3 }
 0x108   : > { %v541_v7 = vpop.f32.mrf.mxu2  ;;  %v582_v11 = vpop.f32.mrf.mxu3  ;;  %3711 = vst [vmem:[#allocation32_spill] sm:$0xff] %v3239_v59 }
 0x109   : > { %v3027_v16 = vadd.f32 %v541_v7, %v2962_v20  ;;  %v3030_v17 = vadd.f32 %v582_v11, %v2964_v22  ;;  %v707_v23 = vpop.f32.mrf.mxu0  ;;  %v727_v24 = vpop.f32.mrf.mxu1 }
 0x10a   : > { %v770_v27 = vadd.f32 %v707_v23, %v439_v60  ;;  %v771_v28 = vadd.f32 %v727_v24, %v480_v21  ;;  %v3052_v21 = vld [vmem:[%s2551_s21 + $0x1f8] sm:$0xff] }
 0x10b   : > { %3704 = vst [vmem:[#allocation25_spill] sm:$0xff] %v3027_v16  ;;  %v3209_v16 = vld [vmem:[%s2551_s21 + $0xa0] sm:$0xff] }
 0x10c   : > { %3705 = vst [vmem:[#allocation26_spill] sm:$0xff] %v3030_v17  ;;  %v774_v31 = vmul.f32 0.5, %v770_v27  ;;  %v775_v32 = vmul.f32 0.5, %v771_v28  ;;  %v3204_v17 = vld [vmem:[%s2551_s21 + $0xd8] sm:$0xff] }
 0x10e   : > { %2273 = vtanh.f32 %v774_v31 }
 0x10f   : > { %2275 = vtanh.f32 %v775_v32 }
 0x110   : > { %v747_v10 = vpop.f32.mrf.mxu2  ;;  %v767_v12 = vpop.f32.mrf.mxu3 }
 0x111   : > { %v772_v13 = vadd.f32 %v747_v10, %v521_v36  ;;  %v773_v37 = vadd.f32 %v767_v12, %v562_v9 }
 0x113   : > { %v776_v40 = vmul.f32 0.5, %v772_v13  ;;  %2277 = vtanh.f32 %v773_v37 }
 0x114   : > { %v2274_v41 = vpop.eup %2273 }
 0x115   : > { %v2276_v44 = vpop.eup %2275  ;;  %v780_v45 = vmul.f32 0.5, %v2274_v41  ;;  %2279 = vtanh.f32 %v776_v40 }
 0x116   : > { %v781_v49 = vmul.f32 0.5, %v2276_v44 }
 0x117   : > { %v783_v50 = vadd.f32 0.5, %v780_v45 }
 0x118   : > { %v784_v53 = vadd.f32 0.5, %v781_v49 }
 0x119   : > { %v2278_v54 = vpop.eup %2277 }
 0x11a   : > { %v787_v14 = vmul.f32 0.0, %v784_v53  ;;  %v788_v15 = vmul.f32 %v2278_v54, %v783_v50  ;;  %v3065_v53 = vld [vmem:[%s2551_s21 + $0x1c0] sm:$0xff]  ;;  %v3068_v54 = vld [vmem:[%s2551_s21 + $0x1c8] sm:$0xff] }
 0x11b   : > { %v2280_v20 = vpop.eup %2279 }
 0x11c   : > { %v789_v22 = vadd.f32 %v788_v15, %v787_v14  ;;  %v782_v57 = vmul.f32 0.5, %v2280_v20  ;;  %v3071_v14 = vld [vmem:[%s2551_s21 + $0x1d0] sm:$0xff]  ;;  %v3076_v15 = vld [vmem:[%s2551_s21 + $0x1d8] sm:$0xff]  ;;  %v3081_v20 = vld [vmem:[%s2551_s21 + $0x1a0] sm:$0xff] }
 0x11e   : > { %2281 = vtanh.f32 %v789_v22  ;;  %v785_v58 = vadd.f32 0.5, %v782_v57  ;;  %v3087_v57 = vld [vmem:[%s2551_s21 + $0x1b0] sm:$0xff] }
 0x124   : > { %v2282_v62 = vpop.eup %2281 }
 0x125   : > { %v791_v63 = vmul.f32 %v2282_v62, %v785_v58  ;;  %v3092_v58 = vld [vmem:[%s2551_s21 + $0x1b8] sm:$0xff]  ;;  %v3097_v62 = vld [vmem:[%s2551_s21 + $0x180] sm:$0xff] }
 0x127   : > { %792 = vst [vmem:[%s3037_s29] sm:$0xff] %v791_v63  ;;  %880 = vmatmul.f32.vlgmr.msra.gmra.mxu0 %v791_v63  ;;  %900 = vmatmul.f32.vlgmr.msra.gmra.mxu1 %v791_v63 }
 0x128   : > { %920 = vmatmul.f32.vlgmr.msra.gmra.mxu2 %v791_v63  ;;  %940 = vmatmul.f32.vlgmr.msra.gmra.mxu3 %v791_v63  ;;  %v3100_v63 = vld [vmem:[%s2551_s21 + $0x188] sm:$0xff] }
 0x129   : > { %1214 = vmatpush.msra.mxu0 %v3041_v2  ;;  %1234 = vmatpush.msra.mxu1 %v3044_v3 }
 0x12a   : > { %1254 = vmatpush.msra.mxu2 %v3047_v6  ;;  %1274 = vmatpush.msra.mxu3 %v3052_v21 }
 0x12b   : > { %1215 = vmatpush.msra.mxu0 %v3065_v53  ;;  %1235 = vmatpush.msra.mxu1 %v3068_v54 }
 0x12c   : > { %1255 = vmatpush.msra.mxu2 %v3071_v14  ;;  %1275 = vmatpush.msra.mxu3 %v3076_v15 }
 0x12d   : > { %1216 = vmatpush.msra.mxu0 %v3081_v20 }
 0x12e   : > { %1256 = vmatpush.msra.mxu2 %v3087_v57  ;;  %1276 = vmatpush.msra.mxu3 %v3092_v58 }
 0x12f   : > { %1217 = vmatpush.msra.mxu0 %v3097_v62 }
 0x1a4   : > { %v881_v8 = vpop.f32.mrf.mxu0  ;;  %v901_v60 = vpop.f32.mrf.mxu1 }
 0x1a5   : > { %v944_v7 = vadd.f32 %v881_v8, %v2958_v18  ;;  %v945_v11 = vadd.f32 %v901_v60, %v2960_v19  ;;  %v3103_v8 = vld [vmem:[%s2551_s21 + $0x190] sm:$0xff]  ;;  %v3108_v60 = vld [vmem:[%s2551_s21 + $0x198] sm:$0xff] }
 0x1a6   : > { %1257 = vmatpush.msra.mxu2 %v3103_v8  ;;  %1277 = vmatpush.msra.mxu3 %v3108_v60 }
 0x1a7   : > { %v948_v23 = vmul.f32 0.5, %v944_v7  ;;  %v949_v24 = vmul.f32 0.5, %v945_v11  ;;  %v3113_v7 = vld [vmem:[%s2551_s21 + $0x160] sm:$0xff]  ;;  %v3116_v11 = vld [vmem:[%s2551_s21 + $0x168] sm:$0xff] }
 0x1a8   : > { %1218 = vmatpush.msra.mxu0 %v3113_v7 }
 0x1a9   : > { %2283 = vtanh.f32 %v948_v23  ;;  %v3119_v23 = vld [vmem:[%s2551_s21 + $0x170] sm:$0xff] }
 0x1aa   : > { %2285 = vtanh.f32 %v949_v24  ;;  %v3124_v24 = vld [vmem:[%s2551_s21 + $0x178] sm:$0xff]  ;;  %1258 = vmatpush.msra.mxu2 %v3119_v23 }
 0x1ab   : > { %v921_v27 = vpop.f32.mrf.mxu2  ;;  %v941_v28 = vpop.f32.mrf.mxu3  ;;  %1278 = vmatpush.msra.mxu3 %v3124_v24 }
 0x1ac   : > { %v946_v31 = vadd.f32 %v921_v27, %v2967_v25  ;;  %v947_v32 = vadd.f32 %v941_v28, %v2970_v26  ;;  %v3129_v27 = vld [vmem:[%s2551_s21 + $0x140] sm:$0xff]  ;;  %v3132_v28 = vld [vmem:[%s2551_s21 + $0x148] sm:$0xff] }
 0x1ad   : > { %1219 = vmatpush.msra.mxu0 %v3129_v27 }
 0x1ae   : > { %v950_v36 = vmul.f32 0.5, %v946_v31  ;;  %2287 = vtanh.f32 %v947_v32  ;;  %v3135_v31 = vld [vmem:[%s2551_s21 + $0x150] sm:$0xff]  ;;  %v3140_v32 = vld [vmem:[%s2551_s21 + $0x158] sm:$0xff] }
 0x1af   : > { %v2284_v9 = vpop.eup %2283  ;;  %1259 = vmatpush.msra.mxu2 %v3135_v31  ;;  %1279 = vmatpush.msra.mxu3 %v3140_v32 }
 0x1b0   : > { %v2286_v18 = vpop.eup %2285  ;;  %v954_v19 = vmul.f32 0.5, %v2284_v9  ;;  %2289 = vtanh.f32 %v950_v36  ;;  %v3145_v36 = vld [vmem:[%s2551_s21 + $0x120] sm:$0xff]  ;;  %v3148_v9 = vld [vmem:[%s2551_s21 + $0x128] sm:$0xff] }
 0x1b1   : > { %v955_v10 = vmul.f32 0.5, %v2286_v18  ;;  %v3151_v18 = vld [vmem:[%s2551_s21 + $0x130] sm:$0xff]  ;;  %1220 = vmatpush.msra.mxu0 %v3145_v36 }
 0x1b2   : > { %v957_v12 = vadd.f32 0.5, %v954_v19  ;;  %v3156_v19 = vld [vmem:[%s2551_s21 + $0x138] sm:$0xff]  ;;  %1260 = vmatpush.msra.mxu2 %v3151_v18 }
 0x1b3   : > { %v958_v13 = vadd.f32 0.5, %v955_v10  ;;  %1280 = vmatpush.msra.mxu3 %v3156_v19  ;;  %v3161_v10 = vld [vmem:[%s2551_s21 + $0x100] sm:$0xff] }
 0x1b4   : > { %v2288_v37 = vpop.eup %2287  ;;  %1221 = vmatpush.msra.mxu0 %v3161_v10 }
 0x1b5   : > { %v961_v40 = vmul.f32 %v958_v13, %v789_v22  ;;  %v962_v41 = vmul.f32 %v2288_v37, %v957_v12  ;;  %v3084_v22 = vld [vmem:[%s2551_s21 + $0x1a8] sm:$0xff]  ;;  %v3167_v13 = vld [vmem:[%s2551_s21 + $0x110] sm:$0xff]  ;;  %v3172_v37 = vld [vmem:[%s2551_s21 + $0x118] sm:$0xff] }
 0x1b6   : > { %v2290_v44 = vpop.eup %2289  ;;  %1236 = vmatpush.msra.mxu1 %v3084_v22  ;;  %v3164_v12 = vld [vmem:[%s2551_s21 + $0x108] sm:$0xff]  ;;  %1261 = vmatpush.msra.mxu2 %v3167_v13 }
 0x1b7   : > { %v3060_v25 = vadd.f32 %v962_v41, %v961_v40  ;;  %v956_v26 = vmul.f32 0.5, %v2290_v44  ;;  %1281 = vmatpush.msra.mxu3 %v3172_v37  ;;  %v3177_v40 = vld [vmem:[%s2551_s21 + $0xe0] sm:$0xff]  ;;  %v3180_v41 = vld [vmem:[%s2551_s21 + $0xe8] sm:$0xff]  ;;  %v3183_v44 = vld [vmem:[%s2551_s21 + $0xf0] sm:$0xff] }
 0x1b8   : > { %1237 = vmatpush.msra.mxu1 %v3100_v63  ;;  %1222 = vmatpush.msra.mxu0 %v3177_v40 }
 0x1b9   : > { %2291 = vtanh.f32 %v3060_v25  ;;  %v959_v45 = vadd.f32 0.5, %v956_v26  ;;  %v3188_v26 = vld [vmem:[%s2551_s21 + $0xf8] sm:$0xff]  ;;  %1262 = vmatpush.msra.mxu2 %v3183_v44 }
 0x1ba   : > { %1238 = vmatpush.msra.mxu1 %v3116_v11  ;;  %1282 = vmatpush.msra.mxu3 %v3188_v26 }
 0x1bc   : > { %1239 = vmatpush.msra.mxu1 %v3132_v28  ;;  %1283 = vmatpush.msra.mxu3 %v3204_v17 }
 0x1be   : > { %1240 = vmatpush.msra.mxu1 %v3148_v9  ;;  %1284 = vmatpush.msra.mxu3 %v3220_v5 }
 0x1bf   : > { %v2292_v49 = vpop.eup %2291 }
 0x1c0   : > { %v965_v50 = vmul.f32 %v2292_v49, %v959_v45  ;;  %1241 = vmatpush.msra.mxu1 %v3164_v12  ;;  %v3193_v45 = vld [vmem:[%s2551_s21 + $0xc0] sm:$0xff]  ;;  %v3196_v49 = vld [vmem:[%s2551_s21 + $0xc8] sm:$0xff]  ;;  %1285 = vmatpush.msra.mxu3 %v3236_v61 }
 0x1c1   : > { %1223 = vmatpush.msra.mxu0 %v3193_v45 }
 0x1c2   : > { %2219 = vst [vmem:[%s3037_s29 + $0x8] sm:$0xff] %v965_v50  ;;  %1055 = vmatmul.f32.vlgmr.msrb.gmra.mxu0 %v965_v50  ;;  %1075 = vmatmul.f32.vlgmr.msrb.gmra.mxu1 %v965_v50 }
 0x1c3   : > { %1095 = vmatmul.f32.vlgmr.msrb.gmra.mxu2 %v965_v50  ;;  %1115 = vmatmul.f32.vlgmr.msrb.gmra.mxu3 %v965_v50  ;;  %v3199_v50 = vld [vmem:[%s2551_s21 + $0xd0] sm:$0xff] }
 0x1c4   : > { %1242 = vmatpush.msra.mxu1 %v3180_v41  ;;  %1263 = vmatpush.msra.mxu2 %v3199_v50 }
 0x1c5   : > { %1224 = vmatpush.msra.mxu0 %v3209_v16  ;;  %1286 = vmatpush.msra.mxu3 %v3250_v52  ;;  %v3293_v52 = vld [vmem:[%s2551_s21 + $0x10] sm:$0xff] }
 0x1c6   : > { %1243 = vmatpush.msra.mxu1 %v3196_v49  ;;  %1264 = vmatpush.msra.mxu2 %v3215_v34  ;;  %3725 = vst [vmem:[#allocation46_spill] sm:$0xff] %v3293_v52 }
 0x1c7   : > { %1225 = vmatpush.msra.mxu0 %v3225_v4  ;;  %1287 = vmatpush.msra.mxu3 %v3264_v43 }
 0x1c8   : > { %1244 = vmatpush.msra.mxu1 %v3212_v47  ;;  %1265 = vmatpush.msra.mxu2 %v3231_v0 }
 0x1c9   : > { %1226 = vmatpush.msra.mxu0 %v3239_v59  ;;  %v3285_v59 = vld [vmem:[%s2551_s21] sm:$0xff] }
 0x1ca   : > { %1245 = vmatpush.msra.mxu1 %v3228_v1  ;;  %1266 = vmatpush.msra.mxu2 %v3247_v55  ;;  %3723 = vst [vmem:[#allocation44_spill] sm:$0xff] %v3285_v59  ;;  %v3288_v55 = vld [vmem:[%s2551_s21 + $0x8] sm:$0xff] }
 0x1cb   : > { %1227 = vmatpush.msra.mxu0 %v3253_v51  ;;  %3724 = vst [vmem:[#allocation45_spill] sm:$0xff] %v3288_v55  ;;  %v3296_v51 = vld [vmem:[%s2551_s21 + $0x18] sm:$0xff] }
 0x1cc   : > { %1246 = vmatpush.msra.mxu1 %v3242_v56  ;;  %v3280_v56 = vld [vmem:[%s2551_s21 + $0x38] sm:$0xff]  ;;  %1267 = vmatpush.msra.mxu2 %v3261_v46  ;;  %3726 = vst [vmem:[#allocation47_spill] sm:$0xff] %v3296_v51 }
 0x1cd   : > { %3722 = vst [vmem:[#allocation43_spill] sm:$0xff] %v3280_v56  ;;  %1228 = vmatpush.msra.mxu0 %v3269_v42  ;;  %1288 = vmatpush.msra.mxu3 %v3280_v56 }
 0x1ce   : > { %1247 = vmatpush.msra.mxu1 %v3258_v48  ;;  %1268 = vmatpush.msra.mxu2 %v3277_v38 }
 0x1cf   : > { %1229 = vmatpush.msra.mxu0 %v3285_v59  ;;  %1289 = vmatpush.msra.mxu3 %v3296_v51 }
 0x1d0   : > { %1248 = vmatpush.msra.mxu1 %v3272_v39  ;;  %1269 = vmatpush.msra.mxu2 %v3293_v52 }
 0x1d1   : > { %1389 = vmatpush.msrb.mxu0 %v3041_v2  ;;  %1449 = vmatpush.msrb.mxu3 %v3052_v21 }
 0x1d2   : > { %1249 = vmatpush.msra.mxu1 %v3288_v55  ;;  %1429 = vmatpush.msrb.mxu2 %v3047_v6 }
 0x1d3   : > { %1390 = vmatpush.msrb.mxu0 %v3065_v53  ;;  %1450 = vmatpush.msrb.mxu3 %v3076_v15 }
 0x1d4   : > { %1409 = vmatpush.msrb.mxu1 %v3044_v3  ;;  %1430 = vmatpush.msrb.mxu2 %v3071_v14 }
 0x1d5   : > { %1391 = vmatpush.msrb.mxu0 %v3081_v20  ;;  %1451 = vmatpush.msrb.mxu3 %v3092_v58 }
 0x1d6   : > { %1410 = vmatpush.msrb.mxu1 %v3068_v54  ;;  %1431 = vmatpush.msrb.mxu2 %v3087_v57 }
 0x1d7   : > { %1392 = vmatpush.msrb.mxu0 %v3097_v62  ;;  %1452 = vmatpush.msrb.mxu3 %v3108_v60 }
 0x1d8   : > { %1411 = vmatpush.msrb.mxu1 %v3084_v22  ;;  %1432 = vmatpush.msrb.mxu2 %v3103_v8 }
 0x1d9   : > { %1393 = vmatpush.msrb.mxu0 %v3113_v7  ;;  %1453 = vmatpush.msrb.mxu3 %v3124_v24 }
 0x1da   : > { %1412 = vmatpush.msrb.mxu1 %v3100_v63  ;;  %1433 = vmatpush.msrb.mxu2 %v3119_v23 }
 0x1db   : > { %1394 = vmatpush.msrb.mxu0 %v3129_v27  ;;  %1454 = vmatpush.msrb.mxu3 %v3140_v32 }
 0x1dc   : > { %1413 = vmatpush.msrb.mxu1 %v3116_v11  ;;  %1434 = vmatpush.msrb.mxu2 %v3135_v31 }
 0x1dd   : > { %1395 = vmatpush.msrb.mxu0 %v3145_v36  ;;  %1455 = vmatpush.msrb.mxu3 %v3156_v19 }
 0x1de   : > { %1414 = vmatpush.msrb.mxu1 %v3132_v28  ;;  %1435 = vmatpush.msrb.mxu2 %v3151_v18 }
 0x1df   : > { %1396 = vmatpush.msrb.mxu0 %v3161_v10  ;;  %1456 = vmatpush.msrb.mxu3 %v3172_v37 }
 0x1e0   : > { %1415 = vmatpush.msrb.mxu1 %v3148_v9  ;;  %1436 = vmatpush.msrb.mxu2 %v3167_v13 }
 0x1e1   : > { %1397 = vmatpush.msrb.mxu0 %v3177_v40  ;;  %1457 = vmatpush.msrb.mxu3 %v3188_v26 }
 0x1e2   : > { %1416 = vmatpush.msrb.mxu1 %v3164_v12  ;;  %1437 = vmatpush.msrb.mxu2 %v3183_v44 }
 0x1e3   : > { %1398 = vmatpush.msrb.mxu0 %v3193_v45  ;;  %1458 = vmatpush.msrb.mxu3 %v3204_v17 }
 0x1e4   : > { %1417 = vmatpush.msrb.mxu1 %v3180_v41  ;;  %1438 = vmatpush.msrb.mxu2 %v3199_v50 }
 0x1e5   : > { %1399 = vmatpush.msrb.mxu0 %v3209_v16  ;;  %1459 = vmatpush.msrb.mxu3 %v3220_v5 }
 0x1e6   : > { %1418 = vmatpush.msrb.mxu1 %v3196_v49  ;;  %1439 = vmatpush.msrb.mxu2 %v3215_v34 }
 0x1e7   : > { %1400 = vmatpush.msrb.mxu0 %v3225_v4  ;;  %1460 = vmatpush.msrb.mxu3 %v3236_v61 }
 0x1e8   : > { %1419 = vmatpush.msrb.mxu1 %v3212_v47  ;;  %1440 = vmatpush.msrb.mxu2 %v3231_v0 }
 0x1ea   : > { %1420 = vmatpush.msrb.mxu1 %v3228_v1 }
 0x23f   : > { %v1056_v39 = vpop.f32.mrf.mxu0  ;;  %v1076_v42 = vpop.f32.mrf.mxu1 }
 0x240   : > { %v1119_v56 = vadd.f32 %v1056_v39, %v2972_v29  ;;  %v1120_v59 = vadd.f32 %v1076_v42, %v2974_v30 }
 0x242   : > { %v1123_v2 = vmul.f32 0.5, %v1119_v56  ;;  %v1124_v3 = vmul.f32 0.5, %v1120_v59 }
 0x244   : > { %2293 = vtanh.f32 %v1123_v2 }
 0x245   : > { %2295 = vtanh.f32 %v1124_v3 }
 0x246   : > { %v1096_v29 = vpop.f32.mrf.mxu2  ;;  %v1116_v30 = vpop.f32.mrf.mxu3 }
 0x247   : > { %v1121_v39 = vadd.f32 %v1096_v29, %v2977_v33  ;;  %v1122_v42 = vadd.f32 %v1116_v30, %v2980_v35 }
 0x249   : > { %v1125_v56 = vmul.f32 0.5, %v1121_v39  ;;  %2297 = vtanh.f32 %v1122_v42 }
 0x24a   : > { %v2294_v59 = vpop.eup %2293 }
 0x24b   : > { %v2296_v33 = vpop.eup %2295  ;;  %v1129_v35 = vmul.f32 0.5, %v2294_v59  ;;  %2299 = vtanh.f32 %v1125_v56 }
 0x24c   : > { %v1130_v2 = vmul.f32 0.5, %v2296_v33  ;;  %v3728_v33 = vld [vmem:[#allocation32_spill] sm:$0xff] }
 0x24d   : > { %v1132_v3 = vadd.f32 0.5, %v1129_v35  ;;  %1401 = vmatpush.msrb.mxu0 %v3728_v33  ;;  %v3729_v35 = vld [vmem:[#allocation33_spill] sm:$0xff] }
 0x24e   : > { %v1133_v29 = vadd.f32 0.5, %v1130_v2  ;;  %1421 = vmatpush.msrb.mxu1 %v3729_v35  ;;  %v3730_v2 = vld [vmem:[#allocation34_spill] sm:$0xff] }
 0x24f   : > { %v2298_v30 = vpop.eup %2297  ;;  %1441 = vmatpush.msrb.mxu2 %v3730_v2  ;;  %v3735_v2 = vld [vmem:[#allocation43_spill] sm:$0xff] }
 0x250   : > { %v1136_v39 = vmul.f32 %v1133_v29, %v3060_v25  ;;  %v1137_v42 = vmul.f32 %v2298_v30, %v1132_v3  ;;  %v3731_v3 = vld [vmem:[#allocation35_spill] sm:$0xff]  ;;  %v3732_v29 = vld [vmem:[#allocation36_spill] sm:$0xff]  ;;  %1422 = vmatpush.msrb.mxu1 %v3258_v48 }
 0x251   : > { %v2300_v56 = vpop.eup %2299  ;;  %1461 = vmatpush.msrb.mxu3 %v3731_v3  ;;  %1402 = vmatpush.msrb.mxu0 %v3732_v29  ;;  %v3736_v3 = vld [vmem:[#allocation44_spill] sm:$0xff] }
 0x252   : > { %v3349_v59 = vadd.f32 %v1137_v42, %v1136_v39  ;;  %v1131_v25 = vmul.f32 0.5, %v2300_v56  ;;  %1442 = vmatpush.msrb.mxu2 %v3261_v46  ;;  %v3733_v42 = vld [vmem:[#allocation40_spill] sm:$0xff]  ;;  %v3734_v56 = vld [vmem:[#allocation41_spill] sm:$0xff] }
 0x253   : > { %1462 = vmatpush.msrb.mxu3 %v3264_v43  ;;  %1403 = vmatpush.msrb.mxu0 %v3733_v42 }
 0x254   : > { %3727 = vst [vmem:[#allocation48_spill] sm:$0xff] %v3349_v59  ;;  %2301 = vtanh.f32 %v3349_v59  ;;  %v1134_v30 = vadd.f32 0.5, %v1131_v25  ;;  %1423 = vmatpush.msrb.mxu1 %v3734_v56  ;;  %1443 = vmatpush.msrb.mxu2 %v3277_v38  ;;  %v3737_v25 = vld [vmem:[#allocation27_spill] sm:$0xff] }
 0x255   : > { %1463 = vmatpush.msrb.mxu3 %v3735_v2  ;;  %1404 = vmatpush.msrb.mxu0 %v3736_v3 }
 0x256   : > { %1424 = vmatpush.msrb.mxu1 %v3288_v55  ;;  %1444 = vmatpush.msrb.mxu2 %v3293_v52 }
 0x257   : > { %1464 = vmatpush.msrb.mxu3 %v3296_v51 }
 0x25a   : > { %v2302_v39 = vpop.eup %2301 }
 0x25b   : > { %v1140_v59 = vmul.f32 %v2302_v39, %v1134_v30  ;;  %v3738_v30 = vld [vmem:[#allocation28_spill] sm:$0xff]  ;;  %v3740_v39 = vld [vmem:[#allocation35_spill] sm:$0xff] }
 0x25d   : > { %2220 = vst [vmem:[%s3037_s29 + $0x10] sm:$0xff] %v1140_v59  ;;  %1230 = vmatmul.f32.vlgmr.msra.gmra.mxu0 %v1140_v59  ;;  %1250 = vmatmul.f32.vlgmr.msra.gmra.mxu1 %v1140_v59 }
 0x25e   : > { %1270 = vmatmul.f32.vlgmr.msra.gmra.mxu2 %v1140_v59  ;;  %1290 = vmatmul.f32.vlgmr.msra.gmra.mxu3 %v1140_v59  ;;  %v3739_v59 = vld [vmem:[#allocation34_spill] sm:$0xff] }
 0x25f   : > { %1564 = vmatpush.msra.mxu0 %v3737_v25  ;;  %1584 = vmatpush.msra.mxu1 %v3738_v30 }
 0x260   : > { %1604 = vmatpush.msra.mxu2 %v3047_v6  ;;  %1624 = vmatpush.msra.mxu3 %v3052_v21 }
 0x261   : > { %1565 = vmatpush.msra.mxu0 %v3065_v53  ;;  %1585 = vmatpush.msra.mxu1 %v3068_v54 }
 0x262   : > { %1605 = vmatpush.msra.mxu2 %v3071_v14  ;;  %1625 = vmatpush.msra.mxu3 %v3076_v15 }
 0x263   : > { %1566 = vmatpush.msra.mxu0 %v3081_v20  ;;  %1586 = vmatpush.msra.mxu1 %v3084_v22 }
 0x264   : > { %1606 = vmatpush.msra.mxu2 %v3087_v57  ;;  %1626 = vmatpush.msra.mxu3 %v3092_v58 }
 0x265   : > { %1567 = vmatpush.msra.mxu0 %v3097_v62  ;;  %1587 = vmatpush.msra.mxu1 %v3100_v63 }
 0x266   : > { %1607 = vmatpush.msra.mxu2 %v3103_v8  ;;  %1627 = vmatpush.msra.mxu3 %v3108_v60 }
 0x267   : > { %1568 = vmatpush.msra.mxu0 %v3113_v7  ;;  %1588 = vmatpush.msra.mxu1 %v3116_v11 }
 0x268   : > { %1608 = vmatpush.msra.mxu2 %v3119_v23  ;;  %1628 = vmatpush.msra.mxu3 %v3124_v24 }
 0x269   : > { %1569 = vmatpush.msra.mxu0 %v3129_v27  ;;  %1589 = vmatpush.msra.mxu1 %v3132_v28 }
 0x26a   : > { %1609 = vmatpush.msra.mxu2 %v3135_v31  ;;  %1629 = vmatpush.msra.mxu3 %v3140_v32 }
 0x26b   : > { %1570 = vmatpush.msra.mxu0 %v3145_v36  ;;  %1590 = vmatpush.msra.mxu1 %v3148_v9 }
 0x26c   : > { %1610 = vmatpush.msra.mxu2 %v3151_v18  ;;  %1630 = vmatpush.msra.mxu3 %v3156_v19 }
 0x26d   : > { %1571 = vmatpush.msra.mxu0 %v3161_v10  ;;  %1591 = vmatpush.msra.mxu1 %v3164_v12 }
 0x26e   : > { %1611 = vmatpush.msra.mxu2 %v3167_v13  ;;  %1631 = vmatpush.msra.mxu3 %v3172_v37 }
 0x26f   : > { %1572 = vmatpush.msra.mxu0 %v3177_v40  ;;  %1592 = vmatpush.msra.mxu1 %v3180_v41 }
 0x270   : > { %1612 = vmatpush.msra.mxu2 %v3183_v44  ;;  %1632 = vmatpush.msra.mxu3 %v3188_v26 }
 0x271   : > { %1573 = vmatpush.msra.mxu0 %v3193_v45  ;;  %1593 = vmatpush.msra.mxu1 %v3196_v49 }
 0x272   : > { %1613 = vmatpush.msra.mxu2 %v3199_v50  ;;  %1633 = vmatpush.msra.mxu3 %v3204_v17 }
 0x273   : > { %1574 = vmatpush.msra.mxu0 %v3209_v16  ;;  %1594 = vmatpush.msra.mxu1 %v3212_v47 }
 0x274   : > { %1614 = vmatpush.msra.mxu2 %v3215_v34  ;;  %1634 = vmatpush.msra.mxu3 %v3220_v5 }
 0x275   : > { %1575 = vmatpush.msra.mxu0 %v3225_v4  ;;  %1595 = vmatpush.msra.mxu1 %v3228_v1 }
 0x276   : > { %1615 = vmatpush.msra.mxu2 %v3231_v0  ;;  %1635 = vmatpush.msra.mxu3 %v3236_v61 }
 0x277   : > { %1576 = vmatpush.msra.mxu0 %v3728_v33  ;;  %1596 = vmatpush.msra.mxu1 %v3729_v35  ;;  %v3743_v35 = vld [vmem:[#allocation9_spill] sm:$0xff]  ;;  %v3744_v33 = vld [vmem:[#allocation10_spill] sm:$0xff] }
 0x278   : > { %1616 = vmatpush.msra.mxu2 %v3739_v59  ;;  %1636 = vmatpush.msra.mxu3 %v3740_v39  ;;  %v3742_v39 = vld [vmem:[#allocation8_spill] sm:$0xff] }
 0x279   : > { %1577 = vmatpush.msra.mxu0 %v3732_v29  ;;  %1597 = vmatpush.msra.mxu1 %v3258_v48  ;;  %v3741_v29 = vld [vmem:[#allocation7_spill] sm:$0xff] }
 0x27a   : > { %1617 = vmatpush.msra.mxu2 %v3261_v46  ;;  %1637 = vmatpush.msra.mxu3 %v3264_v43 }
 0x27b   : > { %1578 = vmatpush.msra.mxu0 %v3733_v42  ;;  %1598 = vmatpush.msra.mxu1 %v3734_v56 }
 0x27c   : > { %1618 = vmatpush.msra.mxu2 %v3277_v38  ;;  %1638 = vmatpush.msra.mxu3 %v3735_v2 }
 0x27d   : > { %1579 = vmatpush.msra.mxu0 %v3736_v3  ;;  %1599 = vmatpush.msra.mxu1 %v3288_v55 }
 0x27e   : > { %1619 = vmatpush.msra.mxu2 %v3293_v52  ;;  %1639 = vmatpush.msra.mxu3 %v3296_v51 }
 0x2da   : > { %v1231_v48 = vpop.f32.mrf.mxu0  ;;  %v1251_v46 = vpop.f32.mrf.mxu1 }
 0x2db   : > { %v1294_v43 = vadd.f32 %v1231_v48, %v3741_v29  ;;  %v1295_v42 = vadd.f32 %v1251_v46, %v3742_v39  ;;  %v3745_v29 = vld [vmem:[#allocation48_spill] sm:$0xff] }
 0x2dd   : > { %v1298_v59 = vmul.f32 0.5, %v1294_v43  ;;  %v1299_v56 = vmul.f32 0.5, %v1295_v42 }
 0x2df   : > { %2303 = vtanh.f32 %v1298_v59 }
 0x2e0   : > { %2305 = vtanh.f32 %v1299_v56 }
 0x2e1   : > { %v1271_v38 = vpop.f32.mrf.mxu2  ;;  %v1291_v2 = vpop.f32.mrf.mxu3 }
 0x2e2   : > { %v1296_v3 = vadd.f32 %v1271_v38, %v3743_v35  ;;  %v1297_v55 = vadd.f32 %v1291_v2, %v3744_v33 }
 0x2e4   : > { %v1300_v61 = vmul.f32 0.5, %v1296_v3  ;;  %2307 = vtanh.f32 %v1297_v55  ;;  %v1910_v3 = vld [vmem:[%s2551_s21 + $0x1e0] sm:$0xff] }
 0x2e5   : > { %v2304_v52 = vpop.eup %2303 }
 0x2e6   : > { %v2306_v51 = vpop.eup %2305  ;;  %v1304_v0 = vmul.f32 0.5, %v2304_v52  ;;  %2309 = vtanh.f32 %v1300_v61  ;;  %v3747_v52 = vld [vmem:[#allocation30_spill] sm:$0xff]  ;;  %v3748_v61 = vld [vmem:[#allocation31_spill] sm:$0xff] }
 0x2e7   : > { %v1305_v1 = vmul.f32 0.5, %v2306_v51  ;;  %v3746_v51 = vld [vmem:[#allocation29_spill] sm:$0xff] }
 0x2e8   : > { %v1307_v48 = vadd.f32 0.5, %v1304_v0  ;;  %v3749_v0 = vld [vmem:[#allocation32_spill] sm:$0xff] }
 0x2e9   : > { %v1308_v46 = vadd.f32 0.5, %v1305_v1  ;;  %v3750_v1 = vld [vmem:[#allocation33_spill] sm:$0xff] }
 0x2ea   : > { %v2308_v43 = vpop.eup %2307 }
 0x2eb   : > { %v1311_v42 = vmul.f32 %v1308_v46, %v3745_v29  ;;  %v1312_v56 = vmul.f32 %v2308_v43, %v1307_v48  ;;  %v1913_v43 = vld [vmem:[%s2551_s21 + $0x1f8] sm:$0xff]  ;;  %v3769_v29 = vld [vmem:[#allocation15_spill] sm:$0xff] }
 0x2ec   : > { %v2310_v59 = vpop.eup %2309 }
 0x2ed   : > { %v3446_v39 = vadd.f32 %v1312_v56, %v1311_v42  ;;  %v1306_v38 = vmul.f32 0.5, %v2310_v59  ;;  %v3770_v56 = vld [vmem:[#allocation16_spill] sm:$0xff] }
 0x2ef   : > { %2311 = vtanh.f32 %v3446_v39  ;;  %v1309_v33 = vadd.f32 0.5, %v1306_v38 }
 0x2f5   : > { %v2312_v55 = vpop.eup %2311 }
 0x2f6   : > { %v1315_v35 = vmul.f32 %v2312_v55, %v1309_v33 }
 0x2f8   : > { %2221 = vst [vmem:[%s3037_s29 + $0x18] sm:$0xff] %v1315_v35  ;;  %1405 = vmatmul.f32.vlgmr.msrb.gmra.mxu0 %v1315_v35  ;;  %1425 = vmatmul.f32.vlgmr.msrb.gmra.mxu1 %v1315_v35 }
 0x2f9   : > { %1445 = vmatmul.f32.vlgmr.msrb.gmra.mxu2 %v1315_v35  ;;  %1465 = vmatmul.f32.vlgmr.msrb.gmra.mxu3 %v1315_v35  ;;  %v3771_v35 = vld [vmem:[#allocation17_spill] sm:$0xff] }
 0x2fa   : > { %1739 = vmatpush.msrb.mxu0 %v3737_v25  ;;  %1759 = vmatpush.msrb.mxu1 %v3738_v30  ;;  %v1911_v25 = vld [vmem:[%s2551_s21 + $0x1e8] sm:$0xff]  ;;  %v1912_v30 = vld [vmem:[%s2551_s21 + $0x1f0] sm:$0xff] }
 0x2fb   : > { %1779 = vmatpush.msrb.mxu2 %v3047_v6  ;;  %1799 = vmatpush.msrb.mxu3 %v3052_v21  ;;  %v3757_v6 = vld [vmem:[#allocation40_spill] sm:$0xff]  ;;  %v3758_v21 = vld [vmem:[#allocation41_spill] sm:$0xff] }
 0x2fc   : > { %1740 = vmatpush.msrb.mxu0 %v3065_v53  ;;  %1760 = vmatpush.msrb.mxu1 %v3068_v54  ;;  %v3759_v53 = vld [vmem:[#allocation42_spill] sm:$0xff]  ;;  %v3760_v54 = vld [vmem:[#allocation43_spill] sm:$0xff] }
 0x2fd   : > { %1780 = vmatpush.msrb.mxu2 %v3071_v14  ;;  %1800 = vmatpush.msrb.mxu3 %v3076_v15  ;;  %v3761_v14 = vld [vmem:[#allocation44_spill] sm:$0xff]  ;;  %v3762_v15 = vld [vmem:[#allocation45_spill] sm:$0xff] }
 0x2fe   : > { %1741 = vmatpush.msrb.mxu0 %v3081_v20  ;;  %1761 = vmatpush.msrb.mxu1 %v3084_v22  ;;  %v3763_v20 = vld [vmem:[#allocation46_spill] sm:$0xff]  ;;  %v3764_v22 = vld [vmem:[#allocation47_spill] sm:$0xff] }
 0x2ff   : > { %1781 = vmatpush.msrb.mxu2 %v3087_v57  ;;  %1801 = vmatpush.msrb.mxu3 %v3092_v58 }
 0x300   : > { %1742 = vmatpush.msrb.mxu0 %v3097_v62  ;;  %1762 = vmatpush.msrb.mxu1 %v3100_v63  ;;  %v3765_v62 = vld [vmem:[#allocation11_spill] sm:$0xff] }
 0x301   : > { %1782 = vmatpush.msrb.mxu2 %v3103_v8  ;;  %1802 = vmatpush.msrb.mxu3 %v3108_v60  ;;  %v3766_v8 = vld [vmem:[#allocation12_spill] sm:$0xff] }
 0x302   : > { %1743 = vmatpush.msrb.mxu0 %v3113_v7  ;;  %1763 = vmatpush.msrb.mxu1 %v3116_v11 }
 0x303   : > { %1783 = vmatpush.msrb.mxu2 %v3119_v23  ;;  %1803 = vmatpush.msrb.mxu3 %v3124_v24 }
 0x304   : > { %1744 = vmatpush.msrb.mxu0 %v3129_v27  ;;  %1764 = vmatpush.msrb.mxu1 %v3132_v28  ;;  %v3767_v27 = vld [vmem:[#allocation13_spill] sm:$0xff] }
 0x305   : > { %1784 = vmatpush.msrb.mxu2 %v3135_v31  ;;  %1804 = vmatpush.msrb.mxu3 %v3140_v32  ;;  %v3768_v31 = vld [vmem:[#allocation14_spill] sm:$0xff] }
 0x306   : > { %1745 = vmatpush.msrb.mxu0 %v3145_v36  ;;  %1765 = vmatpush.msrb.mxu1 %v3148_v9 }
 0x307   : > { %1785 = vmatpush.msrb.mxu2 %v3151_v18  ;;  %1805 = vmatpush.msrb.mxu3 %v3156_v19 }
 0x308   : > { %1746 = vmatpush.msrb.mxu0 %v3161_v10  ;;  %1766 = vmatpush.msrb.mxu1 %v3164_v12 }
 0x309   : > { %1786 = vmatpush.msrb.mxu2 %v3167_v13  ;;  %1806 = vmatpush.msrb.mxu3 %v3172_v37 }
 0x30a   : > { %1747 = vmatpush.msrb.mxu0 %v3177_v40  ;;  %1767 = vmatpush.msrb.mxu1 %v3180_v41 }
 0x30b   : > { %1787 = vmatpush.msrb.mxu2 %v3183_v44  ;;  %1807 = vmatpush.msrb.mxu3 %v3188_v26 }
 0x30c   : > { %1748 = vmatpush.msrb.mxu0 %v3193_v45  ;;  %1768 = vmatpush.msrb.mxu1 %v3196_v49 }
 0x30d   : > { %1788 = vmatpush.msrb.mxu2 %v3199_v50  ;;  %1808 = vmatpush.msrb.mxu3 %v3204_v17  ;;  %v3751_v17 = vld [vmem:[#allocation34_spill] sm:$0xff] }
 0x30e   : > { %1749 = vmatpush.msrb.mxu0 %v3209_v16  ;;  %1769 = vmatpush.msrb.mxu1 %v3212_v47  ;;  %v3752_v16 = vld [vmem:[#allocation35_spill] sm:$0xff]  ;;  %v3753_v47 = vld [vmem:[#allocation36_spill] sm:$0xff] }
 0x30f   : > { %1789 = vmatpush.msrb.mxu2 %v3215_v34  ;;  %1809 = vmatpush.msrb.mxu3 %v3220_v5  ;;  %v3754_v34 = vld [vmem:[#allocation37_spill] sm:$0xff]  ;;  %v3755_v5 = vld [vmem:[#allocation38_spill] sm:$0xff] }
 0x310   : > { %1750 = vmatpush.msrb.mxu0 %v3225_v4  ;;  %1770 = vmatpush.msrb.mxu1 %v3746_v51  ;;  %v3756_v4 = vld [vmem:[#allocation39_spill] sm:$0xff] }
 0x311   : > { %1790 = vmatpush.msrb.mxu2 %v3747_v52  ;;  %1810 = vmatpush.msrb.mxu3 %v3748_v61  ;;  %v3772_v52 = vld [vmem:[#allocation18_spill] sm:$0xff] }
 0x312   : > { %1751 = vmatpush.msrb.mxu0 %v3749_v0  ;;  %1771 = vmatpush.msrb.mxu1 %v3750_v1 }
 0x313   : > { %1791 = vmatpush.msrb.mxu2 %v3751_v17  ;;  %1811 = vmatpush.msrb.mxu3 %v3752_v16 }
 0x314   : > { %1752 = vmatpush.msrb.mxu0 %v3753_v47  ;;  %1772 = vmatpush.msrb.mxu1 %v3754_v34 }
 0x315   : > { %1792 = vmatpush.msrb.mxu2 %v3755_v5  ;;  %1812 = vmatpush.msrb.mxu3 %v3756_v4 }
 0x316   : > { %1753 = vmatpush.msrb.mxu0 %v3757_v6  ;;  %1773 = vmatpush.msrb.mxu1 %v3758_v21 }
 0x317   : > { %1793 = vmatpush.msrb.mxu2 %v3759_v53  ;;  %1813 = vmatpush.msrb.mxu3 %v3760_v54 }
 0x318   : > { %1754 = vmatpush.msrb.mxu0 %v3761_v14  ;;  %1774 = vmatpush.msrb.mxu1 %v3762_v15 }
 0x319   : > { %1794 = vmatpush.msrb.mxu2 %v3763_v20  ;;  %1814 = vmatpush.msrb.mxu3 %v3764_v22 }
 0x375   : > { %v1406_v57 = vpop.f32.mrf.mxu0  ;;  %v1426_v58 = vpop.f32.mrf.mxu1 }
 0x376   : > { %v1469_v63 = vadd.f32 %v1406_v57, %v3765_v62  ;;  %v1470_v60 = vadd.f32 %v1426_v58, %v3766_v8  ;;  %v1906_v57 = vld [vmem:[%s2551_s21 + $0x1c0] sm:$0xff]  ;;  %v1907_v58 = vld [vmem:[%s2551_s21 + $0x1c8] sm:$0xff]  ;;  %v1908_v62 = vld [vmem:[%s2551_s21 + $0x1d0] sm:$0xff] }
 0x377   : > { %v1902_v8 = vld [vmem:[%s2551_s21 + $0x1a0] sm:$0xff] }
 0x378   : > { %v1473_v7 = vmul.f32 0.5, %v1469_v63  ;;  %v1474_v11 = vmul.f32 0.5, %v1470_v60  ;;  %v1909_v63 = vld [vmem:[%s2551_s21 + $0x1d8] sm:$0xff]  ;;  %v1903_v60 = vld [vmem:[%s2551_s21 + $0x1a8] sm:$0xff] }
 0x37a   : > { %2313 = vtanh.f32 %v1473_v7  ;;  %v1904_v7 = vld [vmem:[%s2551_s21 + $0x1b0] sm:$0xff] }
 0x37b   : > { %2315 = vtanh.f32 %v1474_v11  ;;  %v1905_v11 = vld [vmem:[%s2551_s21 + $0x1b8] sm:$0xff] }
 0x37c   : > { %v1446_v23 = vpop.f32.mrf.mxu2  ;;  %v1466_v24 = vpop.f32.mrf.mxu3 }
 0x37d   : > { %v1471_v28 = vadd.f32 %v1446_v23, %v3767_v27  ;;  %v1472_v32 = vadd.f32 %v1466_v24, %v3768_v31  ;;  %v1898_v23 = vld [vmem:[%s2551_s21 + $0x180] sm:$0xff]  ;;  %v1899_v24 = vld [vmem:[%s2551_s21 + $0x188] sm:$0xff]  ;;  %v1900_v27 = vld [vmem:[%s2551_s21 + $0x190] sm:$0xff] }
 0x37e   : > { %v1894_v31 = vld [vmem:[%s2551_s21 + $0x160] sm:$0xff] }
 0x37f   : > { %v1475_v36 = vmul.f32 0.5, %v1471_v28  ;;  %2317 = vtanh.f32 %v1472_v32  ;;  %v1901_v28 = vld [vmem:[%s2551_s21 + $0x198] sm:$0xff]  ;;  %v1895_v32 = vld [vmem:[%s2551_s21 + $0x168] sm:$0xff] }
 0x380   : > { %v2314_v9 = vpop.eup %2313 }
 0x381   : > { %v2316_v18 = vpop.eup %2315  ;;  %v1479_v19 = vmul.f32 0.5, %v2314_v9  ;;  %2319 = vtanh.f32 %v1475_v36  ;;  %v1896_v36 = vld [vmem:[%s2551_s21 + $0x170] sm:$0xff]  ;;  %v1897_v9 = vld [vmem:[%s2551_s21 + $0x178] sm:$0xff] }
 0x382   : > { %v1480_v10 = vmul.f32 0.5, %v2316_v18  ;;  %v1890_v18 = vld [vmem:[%s2551_s21 + $0x140] sm:$0xff] }
 0x383   : > { %v1482_v12 = vadd.f32 0.5, %v1479_v19  ;;  %v1891_v19 = vld [vmem:[%s2551_s21 + $0x148] sm:$0xff] }
 0x384   : > { %v1483_v13 = vadd.f32 0.5, %v1480_v10  ;;  %v1892_v10 = vld [vmem:[%s2551_s21 + $0x150] sm:$0xff] }
 0x385   : > { %v2318_v37 = vpop.eup %2317 }
 0x386   : > { %v1486_v40 = vmul.f32 %v1483_v13, %v3446_v39  ;;  %v1487_v41 = vmul.f32 %v2318_v37, %v1482_v12  ;;  %v1893_v12 = vld [vmem:[%s2551_s21 + $0x158] sm:$0xff]  ;;  %v1886_v13 = vld [vmem:[%s2551_s21 + $0x120] sm:$0xff]  ;;  %v1887_v37 = vld [vmem:[%s2551_s21 + $0x128] sm:$0xff] }
 0x387   : > { %v2320_v44 = vpop.eup %2319 }
 0x388   : > { %v1488_v26 = vadd.f32 %v1487_v41, %v1486_v40  ;;  %v1481_v45 = vmul.f32 0.5, %v2320_v44  ;;  %v1888_v40 = vld [vmem:[%s2551_s21 + $0x130] sm:$0xff]  ;;  %v1889_v41 = vld [vmem:[%s2551_s21 + $0x138] sm:$0xff]  ;;  %v1882_v44 = vld [vmem:[%s2551_s21 + $0x100] sm:$0xff] }
 0x38a   : > { %2321 = vtanh.f32 %v1488_v26  ;;  %v1484_v49 = vadd.f32 0.5, %v1481_v45  ;;  %v1884_v45 = vld [vmem:[%s2551_s21 + $0x110] sm:$0xff] }
 0x390   : > { %v2322_v50 = vpop.eup %2321 }
 0x391   : > { %v1490_v2 = vmul.f32 %v2322_v50, %v1484_v49  ;;  %v1885_v49 = vld [vmem:[%s2551_s21 + $0x118] sm:$0xff]  ;;  %v1878_v50 = vld [vmem:[%s2551_s21 + $0xe0] sm:$0xff] }
 0x393   : > { %2222 = vst [vmem:[%s3037_s29 + $0x20] sm:$0xff] %v1490_v2  ;;  %1580 = vmatmul.f32.vlgmr.msra.gmra.mxu0 %v1490_v2  ;;  %1600 = vmatmul.f32.vlgmr.msra.gmra.mxu1 %v1490_v2 }
 0x394   : > { %1620 = vmatmul.f32.vlgmr.msra.gmra.mxu2 %v1490_v2  ;;  %1640 = vmatmul.f32.vlgmr.msra.gmra.mxu3 %v1490_v2  ;;  %v1879_v2 = vld [vmem:[%s2551_s21 + $0xe8] sm:$0xff] }
 0x395   : > { %1914 = vmatpush.msra.mxu0 %v1910_v3  ;;  %1934 = vmatpush.msra.mxu1 %v1911_v25  ;;  %v1880_v3 = vld [vmem:[%s2551_s21 + $0xf0] sm:$0xff]  ;;  %v1881_v25 = vld [vmem:[%s2551_s21 + $0xf8] sm:$0xff] }
 0x396   : > { %1954 = vmatpush.msra.mxu2 %v1912_v30  ;;  %1974 = vmatpush.msra.mxu3 %v1913_v43  ;;  %v1874_v30 = vld [vmem:[%s2551_s21 + $0xc0] sm:$0xff]  ;;  %v1877_v43 = vld [vmem:[%s2551_s21 + $0xd8] sm:$0xff] }
 0x397   : > { %1915 = vmatpush.msra.mxu0 %v1906_v57  ;;  %1935 = vmatpush.msra.mxu1 %v1907_v58  ;;  %v3774_v58 = vld [vmem:[#allocation20_spill] sm:$0xff] }
 0x398   : > { %1955 = vmatpush.msra.mxu2 %v1908_v62  ;;  %1975 = vmatpush.msra.mxu3 %v1909_v63 }
 0x399   : > { %1916 = vmatpush.msra.mxu0 %v1902_v8  ;;  %1936 = vmatpush.msra.mxu1 %v1903_v60 }
 0x39a   : > { %1956 = vmatpush.msra.mxu2 %v1904_v7  ;;  %1976 = vmatpush.msra.mxu3 %v1905_v11  ;;  %v3775_v11 = vld [vmem:[#allocation21_spill] sm:$0xff] }
 0x39b   : > { %1917 = vmatpush.msra.mxu0 %v1898_v23  ;;  %1937 = vmatpush.msra.mxu1 %v1899_v24  ;;  %v3776_v24 = vld [vmem:[#allocation22_spill] sm:$0xff] }
 0x39c   : > { %1957 = vmatpush.msra.mxu2 %v1900_v27  ;;  %1977 = vmatpush.msra.mxu3 %v1901_v28 }
 0x39d   : > { %1918 = vmatpush.msra.mxu0 %v1894_v31  ;;  %1938 = vmatpush.msra.mxu1 %v1895_v32 }
 0x39e   : > { %1958 = vmatpush.msra.mxu2 %v1896_v36  ;;  %1978 = vmatpush.msra.mxu3 %v1897_v9 }
 0x39f   : > { %1919 = vmatpush.msra.mxu0 %v1890_v18  ;;  %1939 = vmatpush.msra.mxu1 %v1891_v19 }
 0x3a0   : > { %1959 = vmatpush.msra.mxu2 %v1892_v10  ;;  %1979 = vmatpush.msra.mxu3 %v1893_v12 }
 0x3a1   : > { %1920 = vmatpush.msra.mxu0 %v1886_v13  ;;  %1940 = vmatpush.msra.mxu1 %v1887_v37 }
 0x3a2   : > { %1960 = vmatpush.msra.mxu2 %v1888_v40  ;;  %1980 = vmatpush.msra.mxu3 %v1889_v41 }
 0x3a3   : > { %1921 = vmatpush.msra.mxu0 %v1882_v44 }
 0x3a4   : > { %1961 = vmatpush.msra.mxu2 %v1884_v45  ;;  %1981 = vmatpush.msra.mxu3 %v1885_v49 }
 0x3a5   : > { %1922 = vmatpush.msra.mxu0 %v1878_v50 }
 0x3a6   : > { %1962 = vmatpush.msra.mxu2 %v1880_v3  ;;  %1982 = vmatpush.msra.mxu3 %v1881_v25  ;;  %v3778_v25 = vld [vmem:[#allocation24_spill] sm:$0xff] }
 0x3a7   : > { %1923 = vmatpush.msra.mxu0 %v1874_v30 }
 0x3a8   : > { %1983 = vmatpush.msra.mxu3 %v1877_v43 }
 0x410   : > { %v1581_v48 = vpop.f32.mrf.mxu0  ;;  %v1601_v46 = vpop.f32.mrf.mxu1 }
 0x411   : > { %v1644_v42 = vadd.f32 %v1581_v48, %v3769_v29  ;;  %v1645_v59 = vadd.f32 %v1601_v46, %v3770_v56  ;;  %v1875_v48 = vld [vmem:[%s2551_s21 + $0xc8] sm:$0xff]  ;;  %v1876_v46 = vld [vmem:[%s2551_s21 + $0xd0] sm:$0xff]  ;;  %v1870_v29 = vld [vmem:[%s2551_s21 + $0xa0] sm:$0xff] }
 0x412   : > { %1963 = vmatpush.msra.mxu2 %v1876_v46  ;;  %v1872_v56 = vld [vmem:[%s2551_s21 + $0xb0] sm:$0xff]  ;;  %1924 = vmatpush.msra.mxu0 %v1870_v29 }
 0x413   : > { %v1648_v39 = vmul.f32 0.5, %v1644_v42  ;;  %v1649_v38 = vmul.f32 0.5, %v1645_v59  ;;  %v1871_v42 = vld [vmem:[%s2551_s21 + $0xa8] sm:$0xff]  ;;  %v1873_v59 = vld [vmem:[%s2551_s21 + $0xb8] sm:$0xff]  ;;  %v3779_v29 = vld [vmem:[#allocation25_spill] sm:$0xff] }
 0x414   : > { %1964 = vmatpush.msra.mxu2 %v1872_v56  ;;  %1984 = vmatpush.msra.mxu3 %v1873_v59  ;;  %v3780_v56 = vld [vmem:[#allocation26_spill] sm:$0xff] }
 0x415   : > { %2323 = vtanh.f32 %v1648_v39  ;;  %v1866_v39 = vld [vmem:[%s2551_s21 + $0x80] sm:$0xff] }
 0x416   : > { %2325 = vtanh.f32 %v1649_v38  ;;  %v1867_v38 = vld [vmem:[%s2551_s21 + $0x88] sm:$0xff]  ;;  %1925 = vmatpush.msra.mxu0 %v1866_v39 }
 0x417   : > { %v1621_v33 = vpop.f32.mrf.mxu2  ;;  %v1641_v55 = vpop.f32.mrf.mxu3 }
 0x418   : > { %v1646_v51 = vadd.f32 %v1621_v33, %v3771_v35  ;;  %v1647_v61 = vadd.f32 %v1641_v55, %v3772_v52  ;;  %v1868_v33 = vld [vmem:[%s2551_s21 + $0x90] sm:$0xff]  ;;  %v1869_v55 = vld [vmem:[%s2551_s21 + $0x98] sm:$0xff]  ;;  %v1862_v35 = vld [vmem:[%s2551_s21 + $0x60] sm:$0xff] }
 0x419   : > { %1965 = vmatpush.msra.mxu2 %v1868_v33  ;;  %1985 = vmatpush.msra.mxu3 %v1869_v55  ;;  %v1864_v52 = vld [vmem:[%s2551_s21 + $0x70] sm:$0xff] }
 0x41a   : > { %v1650_v0 = vmul.f32 0.5, %v1646_v51  ;;  %2327 = vtanh.f32 %v1647_v61  ;;  %v1863_v51 = vld [vmem:[%s2551_s21 + $0x68] sm:$0xff]  ;;  %v1865_v61 = vld [vmem:[%s2551_s21 + $0x78] sm:$0xff]  ;;  %1926 = vmatpush.msra.mxu0 %v1862_v35 }
 0x41b   : > { %v2324_v1 = vpop.eup %2323  ;;  %1966 = vmatpush.msra.mxu2 %v1864_v52  ;;  %1986 = vmatpush.msra.mxu3 %v1865_v61 }
 0x41c   : > { %v2326_v17 = vpop.eup %2325  ;;  %v1654_v16 = vmul.f32 0.5, %v2324_v1  ;;  %2329 = vtanh.f32 %v1650_v0  ;;  %v1858_v0 = vld [vmem:[%s2551_s21 + $0x40] sm:$0xff]  ;;  %v1859_v1 = vld [vmem:[%s2551_s21 + $0x48] sm:$0xff] }
 0x41d   : > { %v1655_v47 = vmul.f32 0.5, %v2326_v17  ;;  %v1860_v17 = vld [vmem:[%s2551_s21 + $0x50] sm:$0xff]  ;;  %1927 = vmatpush.msra.mxu0 %v1858_v0 }
 0x41e   : > { %v1657_v34 = vadd.f32 0.5, %v1654_v16  ;;  %v1861_v16 = vld [vmem:[%s2551_s21 + $0x58] sm:$0xff]  ;;  %1967 = vmatpush.msra.mxu2 %v1860_v17 }
 0x41f   : > { %v1658_v5 = vadd.f32 0.5, %v1655_v47  ;;  %v1854_v47 = vld [vmem:[%s2551_s21 + $0x20] sm:$0xff]  ;;  %1987 = vmatpush.msra.mxu3 %v1861_v16 }
 0x420   : > { %v2328_v4 = vpop.eup %2327  ;;  %1928 = vmatpush.msra.mxu0 %v1854_v47 }
 0x421   : > { %v1661_v6 = vmul.f32 %v1658_v5, %v1488_v26  ;;  %v1662_v21 = vmul.f32 %v2328_v4, %v1657_v34  ;;  %v1883_v26 = vld [vmem:[%s2551_s21 + $0x108] sm:$0xff]  ;;  %v1856_v5 = vld [vmem:[%s2551_s21 + $0x30] sm:$0xff]  ;;  %v1857_v4 = vld [vmem:[%s2551_s21 + $0x38] sm:$0xff] }
 0x422   : > { %v2330_v53 = vpop.eup %2329  ;;  %1941 = vmatpush.msra.mxu1 %v1883_v26  ;;  %v1855_v34 = vld [vmem:[%s2551_s21 + $0x28] sm:$0xff]  ;;  %1968 = vmatpush.msra.mxu2 %v1856_v5 }
 0x423   : > { %v3528_v54 = vadd.f32 %v1662_v21, %v1661_v6  ;;  %v1656_v14 = vmul.f32 0.5, %v2330_v53  ;;  %v1850_v6 = vld [vmem:[%s2551_s21] sm:$0xff]  ;;  %v1851_v21 = vld [vmem:[%s2551_s21 + $0x8] sm:$0xff]  ;;  %v1852_v53 = vld [vmem:[%s2551_s21 + $0x10] sm:$0xff]  ;;  %1988 = vmatpush.msra.mxu3 %v1857_v4 }
 0x424   : > { %1942 = vmatpush.msra.mxu1 %v1879_v2  ;;  %1929 = vmatpush.msra.mxu0 %v1850_v6  ;;  %v3777_v2 = vld [vmem:[#allocation23_spill] sm:$0xff] }
 0x425   : > { %2331 = vtanh.f32 %v3528_v54  ;;  %v1659_v15 = vadd.f32 0.5, %v1656_v14  ;;  %v1853_v14 = vld [vmem:[%s2551_s21 + $0x18] sm:$0xff]  ;;  %1969 = vmatpush.msra.mxu2 %v1852_v53  ;;  %v2074_v6 = vld [vmem:[%s3037_s29] sm:$0xff] (%p2454_p6)  ;;  %v2078_v53 = vld [vmem:[%s3037_s29 + $0x10] sm:$0xff] (%p2454_p6) }
 0x426   : > { %1943 = vmatpush.msra.mxu1 %v1875_v48  ;;  %1989 = vmatpush.msra.mxu3 %v1853_v14  ;;  %2075 = vst [vmem:[%s2031_s7] sm:$0xff] (%p2454_p6), %v2074_v6  ;;  %v2080_v14 = vld [vmem:[%s3037_s29 + $0x18] sm:$0xff] (%p2454_p6) }
 0x427   : > { %2079 = vst [vmem:[%s2031_s7 + $0x20] sm:$0xff] (%p2454_p6), %v2078_v53 }
 0x428   : > { %1944 = vmatpush.msra.mxu1 %v1871_v42  ;;  %2081 = vst [vmem:[%s2031_s7 + $0x30] sm:$0xff] (%p2454_p6), %v2080_v14 }
 0x42a   : > { %1945 = vmatpush.msra.mxu1 %v1867_v38 }
 0x42b   : > { %v2332_v20 = vpop.eup %2331 }
 0x42c   : > { %v1665_v22 = vmul.f32 %v2332_v20, %v1659_v15  ;;  %1946 = vmatpush.msra.mxu1 %v1863_v51 }
 0x42e   : > { %2223 = vst [vmem:[%s3037_s29 + $0x28] sm:$0xff] %v1665_v22  ;;  %1755 = vmatmul.f32.vlgmr.msrb.gmra.mxu0 %v1665_v22  ;;  %1775 = vmatmul.f32.vlgmr.msrb.gmra.mxu1 %v1665_v22 }
 0x42f   : > { %1795 = vmatmul.f32.vlgmr.msrb.gmra.mxu2 %v1665_v22  ;;  %1815 = vmatmul.f32.vlgmr.msrb.gmra.mxu3 %v1665_v22  ;;  %v3773_v22 = vld [vmem:[#allocation19_spill] sm:$0xff] }
 0x430   : > { %1947 = vmatpush.msra.mxu1 %v1859_v1 }
 0x432   : > { %1948 = vmatpush.msra.mxu1 %v1855_v34 }
 0x434   : > { %1949 = vmatpush.msra.mxu1 %v1851_v21  ;;  %v2076_v21 = vld [vmem:[%s3037_s29 + $0x8] sm:$0xff] (%p2454_p6) }
 0x435   : > { %2077 = vst [vmem:[%s2031_s7 + $0x10] sm:$0xff] (%p2454_p6), %v2076_v21 }
 0x4ab   : > { %v1756_v15 = vpop.f32.mrf.mxu0  ;;  %v1776_v20 = vpop.f32.mrf.mxu1 }
 0x4ac   : > { %v1819_v57 = vadd.f32 %v1756_v15, %v3773_v22  ;;  %v1820_v62 = vadd.f32 %v1776_v20, %v3774_v58  ;;  %v2082_v15 = vld [vmem:[%s3037_s29 + $0x20] sm:$0xff] (%p2454_p6)  ;;  %v2084_v20 = vld [vmem:[%s3037_s29 + $0x28] sm:$0xff] (%p2454_p6) }
 0x4ad   : > { %2083 = vst [vmem:[%s2031_s7 + $0x40] sm:$0xff] (%p2454_p6), %v2082_v15 }
 0x4ae   : > { %v1823_v63 = vmul.f32 0.5, %v1819_v57  ;;  %v1824_v8 = vmul.f32 0.5, %v1820_v62  ;;  %2085 = vst [vmem:[%s2031_s7 + $0x50] sm:$0xff] (%p2454_p6), %v2084_v20 }
 0x4b0   : > { %2333 = vtanh.f32 %v1823_v63 }
 0x4b1   : > { %2335 = vtanh.f32 %v1824_v8 }
 0x4b2   : > { %v1796_v60 = vpop.f32.mrf.mxu2  ;;  %v1816_v7 = vpop.f32.mrf.mxu3 }
 0x4b3   : > { %v1821_v23 = vadd.f32 %v1796_v60, %v3775_v11  ;;  %v1822_v27 = vadd.f32 %v1816_v7, %v3776_v24 }
 0x4b5   : > { %v1825_v28 = vmul.f32 0.5, %v1821_v23  ;;  %2337 = vtanh.f32 %v1822_v27 }
 0x4b6   : > { %v2334_v31 = vpop.eup %2333 }
 0x4b7   : > { %v2336_v32 = vpop.eup %2335  ;;  %v1829_v36 = vmul.f32 0.5, %v2334_v31  ;;  %2339 = vtanh.f32 %v1825_v28 }
 0x4b8   : > { %v1830_v9 = vmul.f32 0.5, %v2336_v32 }
 0x4b9   : > { %v1832_v18 = vadd.f32 0.5, %v1829_v36 }
 0x4ba   : > { %v1833_v19 = vadd.f32 0.5, %v1830_v9 }
 0x4bb   : > { %v2338_v10 = vpop.eup %2337 }
 0x4bc   : > { %v1836_v12 = vmul.f32 %v1833_v19, %v3528_v54  ;;  %v1837_v13 = vmul.f32 %v2338_v10, %v1832_v18 }
 0x4bd   : > { %v2340_v37 = vpop.eup %2339 }
 0x4be   : > { %v1838_v40 = vadd.f32 %v1837_v13, %v1836_v12  ;;  %v1831_v41 = vmul.f32 0.5, %v2340_v37 }
 0x4c0   : > { %2341 = vtanh.f32 %v1838_v40  ;;  %v1834_v44 = vadd.f32 0.5, %v1831_v41 }
 0x4c6   : > { %v2342_v26 = vpop.eup %2341 }
 0x4c7   : > { %v1840_v45 = vmul.f32 %v2342_v26, %v1834_v44 }
 0x4c9   : > { %2224 = vst [vmem:[%s3037_s29 + $0x30] sm:$0xff] %v1840_v45  ;;  %1930 = vmatmul.f32.vlgmr.msra.gmra.mxu0 %v1840_v45  ;;  %1950 = vmatmul.f32.vlgmr.msra.gmra.mxu1 %v1840_v45 }
 0x4ca   : > { %1970 = vmatmul.f32.vlgmr.msra.gmra.mxu2 %v1840_v45  ;;  %1990 = vmatmul.f32.vlgmr.msra.gmra.mxu3 %v1840_v45 }
 0x4d0   : > { %v2086_v22 = vld [vmem:[%s3037_s29 + $0x30] sm:$0xff] (%p2454_p6) }
 0x4d1   : > { %2087 = vst [vmem:[%s2031_s7 + $0x60] sm:$0xff] (%p2454_p6), %v2086_v22 }
 0x546   : > { %v1931_v49 = vpop.f32.mrf.mxu0  ;;  %v1951_v50 = vpop.f32.mrf.mxu1 }
 0x547   : > { %v1994_v3 = vadd.f32 %v1931_v49, %v3777_v2  ;;  %v1995_v30 = vadd.f32 %v1951_v50, %v3778_v25 }
 0x549   : > { %v1998_v54 = vmul.f32 0.5, %v1994_v3  ;;  %v1999_v48 = vmul.f32 0.5, %v1995_v30 }
 0x54b   : > { %2343 = vtanh.f32 %v1998_v54 }
 0x54c   : > { %2345 = vtanh.f32 %v1999_v48 }
 0x54d   : > { %v1971_v46 = vpop.f32.mrf.mxu2  ;;  %v1991_v43 = vpop.f32.mrf.mxu3 }
 0x54e   : > { %v1996_v42 = vadd.f32 %v1971_v46, %v3779_v29  ;;  %v1997_v59 = vadd.f32 %v1991_v43, %v3780_v56 }
 0x550   : > { %v2000_v39 = vmul.f32 0.5, %v1996_v42  ;;  %2347 = vtanh.f32 %v1997_v59 }
 0x551   : > { %v2344_v38 = vpop.eup %2343 }
 0x552   : > { %v2346_v33 = vpop.eup %2345  ;;  %v2004_v55 = vmul.f32 0.5, %v2344_v38  ;;  %2349 = vtanh.f32 %v2000_v39 }
 0x553   : > { %v2005_v35 = vmul.f32 0.5, %v2346_v33 }
 0x554   : > { %v2007_v51 = vadd.f32 0.5, %v2004_v55 }
 0x555   : > { %v2008_v52 = vadd.f32 0.5, %v2005_v35 }
 0x556   : > { %v2348_v61 = vpop.eup %2347 }
 0x557   : > { %v2011_v0 = vmul.f32 %v2008_v52, %v1838_v40  ;;  %v2012_v1 = vmul.f32 %v2348_v61, %v2007_v51 }
 0x558   : > { %v2350_v17 = vpop.eup %2349 }
 0x559   : > { %v2013_v16 = vadd.f32 %v2012_v1, %v2011_v0  ;;  %v2006_v47 = vmul.f32 0.5, %v2350_v17 }
 0x55b   : > { %2351 = vtanh.f32 %v2013_v16  ;;  %v2009_v34 = vadd.f32 0.5, %v2006_v47 }
 0x560   : > { %2026 = sbr.rel (!%p2454_p6) target bundleno = 1389 (0x56d), region = 82 }
 0x561   : > { %v2352_v5 = vpop.eup %2351 }
 0x562   : > { %v2015_v4 = vmul.f32 %v2352_v5, %v2009_v34 }
 0x564   : > { %2225 = vst [vmem:[%s3037_s29 + $0x38] sm:$0xff] %v2015_v4 }
 0x56b   : > { %v2088_v57 = vld [vmem:[%s3037_s29 + $0x38] sm:$0xff] }
 0x56c   : > { %2089 = vst [vmem:[%s2031_s7 + $0x70] sm:$0xff] %v2088_v57 }
 0x56d PF: > { %s14_s19 = sadd.s32 1, %s2391_s19   ;;  %s3781_s15 = smov %s2379_s16 }
 0x56e   : > { %p11_p12 = scmp.ge.s32.totalorder %s14_s19, 4   ;;  %s3782_s16 = smov %s2459_s25 }
 0x56f   : > { %s3783_s17 = smov %s2387_s18  ;;  %s3784_s18 = smov %s3786_s20 }
 0x570   :  { %13 = sbr.rel (!%p11_p12) target bundleno = 3 (0x3), region = 175 }

</bundles_post_ra>
